<compile_context>
chip_gen: v6e
topology: v6e:2x2x1
jax: 0.10.0
libtpu: 0.0.40
codegen_flags: <defaults>
</compile_context>

<pallas_src>
import jax
import jax.numpy as jnp
from jax.experimental import pallas as pl
from jax.experimental.pallas import tpu as pltpu


LATENT_DIM = 16
# (in, out) of each nn.Linear, and the lane-padded (multiple-of-128) dims.
LAYER_DIMS = [(16, 250), (250, 500), (500, 1000), (1000, 28 * 28)]
PADDED_OUT = [256, 512, 1024, 896]
PADDED_IN = [16, 256, 512, 1024]  # = previous layer's padded out (16 stays 16)


def _layer(h, w_ref, b_ref, relu=True):
    """One Linear (+ optional ReLU): bf16 MXU inputs, f32 accumulate/epilogue."""
    h = jnp.dot(h.astype(jnp.bfloat16), w_ref[...],
                preferred_element_type=jnp.float32) + b_ref[...]
    return jnp.maximum(h, 0.0) if relu else h


def decoder_kernel_overlap(x_ref,
                           w1_ref, b1_ref,
                           w2_ref, b2_ref,
                           b3_ref, b4_ref,
                           w3_hbm, w4_hbm,
                           o_ref,
                           w3_vmem, w4_vmem, sem):
    """Small-batch path: manual DMA of the two big weights overlapped with
    the first two layers' compute (P4-style)."""
    cp3 = pltpu.make_async_copy(w3_hbm, w3_vmem, sem.at[0])
    cp4 = pltpu.make_async_copy(w4_hbm, w4_vmem, sem.at[1])
    cp3.start()
    cp4.start()

    h = _layer(x_ref[...], w1_ref, b1_ref)
    h = _layer(h, w2_ref, b2_ref)

    cp3.wait()
    h = _layer(h, w3_vmem, b3_ref)

    cp4.wait()
    h = _layer(h, w4_vmem, b4_ref, relu=False)
    o_ref[...] = jnp.tanh(h)


def decoder_kernel_resident(x_ref,
                            w1_ref, b1_ref,
                            w2_ref, b2_ref,
                            w3_ref, b3_ref,
                            w4_ref, b4_ref,
                            o_ref):
    """Batch-grid path: weights are VMEM-resident (constant index_map) and the
    batch-tile axis is pipelined / core-parallel."""
    h = _layer(x_ref[...], w1_ref, b1_ref)
    h = _layer(h, w2_ref, b2_ref)
    h = _layer(h, w3_ref, b3_ref)
    h = _layer(h, w4_ref, b4_ref, relu=False)
    o_ref[...] = jnp.tanh(h)


def init_decoder_params(key):
    """Deterministic init mimicking PyTorch nn.Linear default U[-1/sqrt(fan_in), +].

    Returns unpadded float32 params: list of (w:(in,out), b:(1,out))."""
    params = []
    for fan_in, fan_out in LAYER_DIMS:
        kw, kb, key = jax.random.split(key, 3)
        bound = 1.0 / jnp.sqrt(float(fan_in))
        w = jax.random.uniform(kw, (fan_in, fan_out), jnp.float32, -bound, bound)
        b = jax.random.uniform(kb, (1, fan_out), jnp.float32, -bound, bound)
        params.append((w, b))
    return params


def prepare_decoder_params(params):
    """Zero-pad feature dims to lane multiples and cast weights to bf16.

    Padded weight rows/cols and bias lanes are exactly zero, so (with ReLU
    between layers, tanh(0)=0 at the end) the first `out` lanes of every layer
    are identical to the unpadded computation."""
    prepared = []
    for (w, b), pin, pout in zip(params, PADDED_IN, PADDED_OUT):
        fin, fout = w.shape
        w_pad = jnp.pad(w, ((0, pin - fin), (0, pout - fout))).astype(jnp.bfloat16)
        b_pad = jnp.pad(b, ((0, 0), (0, pout - fout))).astype(jnp.float32)
        prepared.append((w_pad, b_pad))
    return prepared


def _cost_estimate(batch):
    flops = 2 * batch * sum(i * o for i, o in LAYER_DIMS)
    weight_bytes = sum(pi * po * 2 for pi, po in zip(PADDED_IN, PADDED_OUT))  # bf16
    bias_bytes = sum(po * 4 for po in PADDED_OUT)                             # f32
    act_bytes = batch * (LATENT_DIM * 4 + PADDED_OUT[-1] * 4)
    return pl.CostEstimate(flops=flops,
                           transcendentals=batch * LAYER_DIMS[-1][1],
                           bytes_accessed=weight_bytes + bias_bytes + act_bytes)


def _decoder_forward_small(x, prepared_params, batch_size):
    """Grid-less call with manual w3/w4 DMA overlapped with layers 1-2."""
    (w1, b1), (w2, b2), (w3, b3), (w4, b4) = prepared_params

    vmem_spec = pl.BlockSpec(memory_space=pltpu.MemorySpace.VMEM)
    any_spec = pl.BlockSpec(memory_space=pl.ANY)

    return pl.pallas_call(
        decoder_kernel_overlap,
        out_shape=jax.ShapeDtypeStruct((batch_size, PADDED_OUT[-1]), jnp.float32),
        in_specs=[vmem_spec] * 7 + [any_spec, any_spec],
        out_specs=vmem_spec,
        scratch_shapes=[
            pltpu.VMEM((PADDED_IN[2], PADDED_OUT[2]), jnp.bfloat16),  # w3
            pltpu.VMEM((PADDED_IN[3], PADDED_OUT[3]), jnp.bfloat16),  # w4
            pltpu.SemaphoreType.DMA((2,)),
        ],
        cost_estimate=_cost_estimate(batch_size),
    )(x, w1, b1, w2, b2, b3, b4, w3, w4)


def _decoder_forward_batched(x, prepared_params, batch_size, batch_tile):
    """Resident-weight batch-grid call: weights DMA'd once, batch tiles
    pipelined (and core-parallel on v7x)."""
    (w1, b1), (w2, b2), (w3, b3), (w4, b4) = prepared_params

    num_tiles = (batch_size + batch_tile - 1) // batch_tile
    padded_batch = num_tiles * batch_tile
    if padded_batch != batch_size:
        x = jnp.pad(x, ((0, padded_batch - batch_size), (0, 0)))

    def const_spec(arr):
        return pl.BlockSpec(arr.shape, lambda i: (0, 0))

    grid_spec = pltpu.PrefetchScalarGridSpec(
        num_scalar_prefetch=0,
        grid=(num_tiles,),
        in_specs=[
            pl.BlockSpec((batch_tile, LATENT_DIM), lambda i: (i, 0)),
            const_spec(w1), const_spec(b1),
            const_spec(w2), const_spec(b2),
            const_spec(w3), const_spec(b3),
            const_spec(w4), const_spec(b4),
        ],
        out_specs=pl.BlockSpec((batch_tile, PADDED_OUT[-1]), lambda i: (i, 0)),
    )

    return pl.pallas_call(
        decoder_kernel_resident,
        out_shape=jax.ShapeDtypeStruct((padded_batch, PADDED_OUT[-1]), jnp.float32),
        grid_spec=grid_spec,
        compiler_params=pltpu.CompilerParams(
            dimension_semantics=("parallel",)),
        cost_estimate=_cost_estimate(padded_batch),
    )(x, w1, b1, w2, b2, w3, b3, w4, b4)


def decoder_forward(x, prepared_params, batch_size,
                    *, batch_tile=256, small_batch_threshold=128):
    """x: (batch_size, 16) float32 -> (batch_size, 1, 28, 28) float32."""
    if batch_size <= small_batch_threshold:
        out_padded = _decoder_forward_small(x, prepared_params, batch_size)
    else:
        out_padded = _decoder_forward_batched(x, prepared_params, batch_size,
                                              batch_tile)
    # Drop zero-padded lanes / padded batch rows, then reshape to NCHW exactly
    # like the PyTorch `x.reshape(batch_size, 1, 28, 28)`.
    out_flat = out_padded[:batch_size, : 28 * 28]
    return out_flat.reshape(batch_size, 1, 28, 28)


def decoder_reference(x, params):
    """Pure-JAX f32 reference matching the PyTorch forward."""
    (w1, b1), (w2, b2), (w3, b3), (w4, b4) = params
    h = jnp.maximum(x @ w1 + b1, 0.0)
    h = jnp.maximum(h @ w2 + b2, 0.0)
    h = jnp.maximum(h @ w3 + b3, 0.0)
    h = jnp.tanh(h @ w4 + b4)
    return h.reshape(x.shape[0], 1, 28, 28)


if __name__ == "__main__":
    key = jax.random.PRNGKey(0)
    k_params, k_x = jax.random.split(key)

    params = init_decoder_params(k_params)
    prepared = prepare_decoder_params(params)

    # --- Small batch: DMA/compute-overlap path -----------------------------
    batch_size = 8
    x_small = jax.random.normal(k_x, (batch_size, LATENT_DIM), dtype=jnp.float32)

    out_small = decoder_forward(x_small, prepared, batch_size)
    out_small = jax.block_until_ready(out_small)

    assert out_small.shape == (batch_size, 1, 28, 28)
    assert out_small.dtype == jnp.float32
    assert bool(jnp.all(jnp.abs(out_small) <= 1.0 + 1e-6))  # tanh range

    ref_small = decoder_reference(x_small, params)
    err_small = float(jnp.max(jnp.abs(out_small - ref_small)))
    # bf16 weights vs f32 PyTorch: bit-level parity is not expected; typical
    # drift is ~1e-2 on a tanh-bounded output.
    assert err_small < 0.1, f"small-batch max abs err too large: {err_small}"

    # --- Larger batch: resident-weight batch-grid path (exercises padding) --
    batch_size_big = 300
    x_big = jax.random.normal(jax.random.fold_in(k_x, 1),
                              (batch_size_big, LATENT_DIM), dtype=jnp.float32)

    out_big = decoder_forward(x_big, prepared, batch_size_big)
    out_big = jax.block_until_ready(out_big)

    assert out_big.shape == (batch_size_big, 1, 28, 28)
    assert out_big.dtype == jnp.float32

    ref_big = decoder_reference(x_big, params)
    err_big = float(jnp.max(jnp.abs(out_big - ref_big)))
    assert err_big < 0.1, f"batched max abs err too large: {err_big}"

    print("KERNEL_OK")
</pallas_src>

<mosaic_0001>
module attributes {stable_mosaic.version = 11 : i64} {
  func.func @decoder_kernel_overlap(%arg0: memref<8x16xf32, #tpu.memory_space<vmem>>, %arg1: memref<16x256xbf16, #tpu.memory_space<vmem>>, %arg2: memref<1x256xf32, #tpu.memory_space<vmem>>, %arg3: memref<256x512xbf16, #tpu.memory_space<vmem>>, %arg4: memref<1x512xf32, #tpu.memory_space<vmem>>, %arg5: memref<1x1024xf32, #tpu.memory_space<vmem>>, %arg6: memref<1x896xf32, #tpu.memory_space<vmem>>, %arg7: memref<512x1024xbf16, #tpu.memory_space<any>>, %arg8: memref<1024x896xbf16, #tpu.memory_space<any>>, %arg9: memref<8x896xf32, #tpu.memory_space<vmem>>, %arg10: memref<512x1024xbf16, #tpu.memory_space<vmem>>, %arg11: memref<1024x896xbf16, #tpu.memory_space<vmem>>, %arg12: memref<2x!tpu.dma_semaphore, #tpu.memory_space<semaphore_mem>>) attributes {dimension_semantics = [], scalar_prefetch = 0 : i64, scratch_operands = 3 : i64, tpu.core_type = #tpu.core_type<tc>} {
    %c0_i32 = arith.constant 0 : i32
    %0 = tpu.memref_slice %arg12[%c0_i32] : memref<2x!tpu.dma_semaphore, #tpu.memory_space<semaphore_mem>> -> memref<1x!tpu.dma_semaphore, #tpu.memory_space<semaphore_mem>>
    %1 = tpu.memref_squeeze %0 : memref<1x!tpu.dma_semaphore, #tpu.memory_space<semaphore_mem>> -> memref<!tpu.dma_semaphore, #tpu.memory_space<semaphore_mem>>
    tpu.enqueue_dma source(%arg7 : memref<512x1024xbf16, #tpu.memory_space<any>>) target(%arg10 : memref<512x1024xbf16, #tpu.memory_space<vmem>>) target_semaphore(%1 : memref<!tpu.dma_semaphore, #tpu.memory_space<semaphore_mem>>)
    %c1_i32 = arith.constant 1 : i32
    %2 = tpu.memref_slice %arg12[%c1_i32] : memref<2x!tpu.dma_semaphore, #tpu.memory_space<semaphore_mem>> -> memref<1x!tpu.dma_semaphore, #tpu.memory_space<semaphore_mem>>
    %3 = tpu.memref_squeeze %2 : memref<1x!tpu.dma_semaphore, #tpu.memory_space<semaphore_mem>> -> memref<!tpu.dma_semaphore, #tpu.memory_space<semaphore_mem>>
    tpu.enqueue_dma source(%arg8 : memref<1024x896xbf16, #tpu.memory_space<any>>) target(%arg11 : memref<1024x896xbf16, #tpu.memory_space<vmem>>) target_semaphore(%3 : memref<!tpu.dma_semaphore, #tpu.memory_space<semaphore_mem>>)
    %c0 = arith.constant 0 : index
    %c0_0 = arith.constant 0 : index
    %4 = vector.load %arg0[%c0, %c0_0] : memref<8x16xf32, #tpu.memory_space<vmem>>, vector<8x16xf32>
    %5 = arith.truncf %4 : vector<8x16xf32> to vector<8x16xbf16>
    %c0_1 = arith.constant 0 : index
    %c0_2 = arith.constant 0 : index
    %6 = vector.load %arg1[%c0_1, %c0_2] : memref<16x256xbf16, #tpu.memory_space<vmem>>, vector<16x256xbf16>
    %cst = arith.constant dense<0.000000e+00> : vector<8x256xf32>
    %7 = tpu.matmul %5, %6, %cst {dimension_numbers = #tpu.dot_dimension_numbers<[1], [0], [0], [1], [0, 0, 1, 1], [], []>} : vector<8x16xbf16>, vector<16x256xbf16>, vector<8x256xf32> -> vector<8x256xf32>
    %c0_3 = arith.constant 0 : index
    %c0_4 = arith.constant 0 : index
    %8 = vector.load %arg2[%c0_3, %c0_4] : memref<1x256xf32, #tpu.memory_space<vmem>>, vector<1x256xf32>
    %9 = vector.broadcast %8 : vector<1x256xf32> to vector<8x256xf32>
    %10 = arith.addf %7, %9 : vector<8x256xf32>
    %cst_5 = arith.constant 0.000000e+00 : f32
    %11 = vector.broadcast %cst_5 : f32 to vector<8x256xf32>
    %12 = arith.maximumf %10, %11 : vector<8x256xf32>
    %13 = arith.truncf %12 : vector<8x256xf32> to vector<8x256xbf16>
    %c0_6 = arith.constant 0 : index
    %c0_7 = arith.constant 0 : index
    %14 = vector.load %arg3[%c0_6, %c0_7] : memref<256x512xbf16, #tpu.memory_space<vmem>>, vector<256x512xbf16>
    %cst_8 = arith.constant dense<0.000000e+00> : vector<8x512xf32>
    %15 = tpu.matmul %13, %14, %cst_8 {dimension_numbers = #tpu.dot_dimension_numbers<[1], [0], [0], [1], [0, 0, 1, 1], [], []>} : vector<8x256xbf16>, vector<256x512xbf16>, vector<8x512xf32> -> vector<8x512xf32>
    %c0_9 = arith.constant 0 : index
    %c0_10 = arith.constant 0 : index
    %16 = vector.load %arg4[%c0_9, %c0_10] : memref<1x512xf32, #tpu.memory_space<vmem>>, vector<1x512xf32>
    %17 = vector.broadcast %16 : vector<1x512xf32> to vector<8x512xf32>
    %18 = arith.addf %15, %17 : vector<8x512xf32>
    %cst_11 = arith.constant 0.000000e+00 : f32
    %19 = vector.broadcast %cst_11 : f32 to vector<8x512xf32>
    %20 = arith.maximumf %18, %19 : vector<8x512xf32>
    %c0_i32_12 = arith.constant 0 : i32
    %21 = tpu.memref_slice %arg12[%c0_i32_12] : memref<2x!tpu.dma_semaphore, #tpu.memory_space<semaphore_mem>> -> memref<1x!tpu.dma_semaphore, #tpu.memory_space<semaphore_mem>>
    %22 = tpu.memref_squeeze %21 : memref<1x!tpu.dma_semaphore, #tpu.memory_space<semaphore_mem>> -> memref<!tpu.dma_semaphore, #tpu.memory_space<semaphore_mem>>
    tpu.wait_dma2 semaphore(%22 : memref<!tpu.dma_semaphore, #tpu.memory_space<semaphore_mem>>) src(%arg7 : memref<512x1024xbf16, #tpu.memory_space<any>>) dst(%arg10 : memref<512x1024xbf16, #tpu.memory_space<vmem>>)
    %23 = arith.truncf %20 : vector<8x512xf32> to vector<8x512xbf16>
    %c0_13 = arith.constant 0 : index
    %c0_14 = arith.constant 0 : index
    %24 = vector.load %arg10[%c0_13, %c0_14] : memref<512x1024xbf16, #tpu.memory_space<vmem>>, vector<512x1024xbf16>
    %cst_15 = arith.constant dense<0.000000e+00> : vector<8x1024xf32>
    %25 = tpu.matmul %23, %24, %cst_15 {dimension_numbers = #tpu.dot_dimension_numbers<[1], [0], [0], [1], [0, 0, 1, 1], [], []>} : vector<8x512xbf16>, vector<512x1024xbf16>, vector<8x1024xf32> -> vector<8x1024xf32>
    %c0_16 = arith.constant 0 : index
    %c0_17 = arith.constant 0 : index
    %26 = vector.load %arg5[%c0_16, %c0_17] : memref<1x1024xf32, #tpu.memory_space<vmem>>, vector<1x1024xf32>
    %27 = vector.broadcast %26 : vector<1x1024xf32> to vector<8x1024xf32>
    %28 = arith.addf %25, %27 : vector<8x1024xf32>
    %cst_18 = arith.constant 0.000000e+00 : f32
    %29 = vector.broadcast %cst_18 : f32 to vector<8x1024xf32>
    %30 = arith.maximumf %28, %29 : vector<8x1024xf32>
    %c1_i32_19 = arith.constant 1 : i32
    %31 = tpu.memref_slice %arg12[%c1_i32_19] : memref<2x!tpu.dma_semaphore, #tpu.memory_space<semaphore_mem>> -> memref<1x!tpu.dma_semaphore, #tpu.memory_space<semaphore_mem>>
    %32 = tpu.memref_squeeze %31 : memref<1x!tpu.dma_semaphore, #tpu.memory_space<semaphore_mem>> -> memref<!tpu.dma_semaphore, #tpu.memory_space<semaphore_mem>>
    tpu.wait_dma2 semaphore(%32 : memref<!tpu.dma_semaphore, #tpu.memory_space<semaphore_mem>>) src(%arg8 : memref<1024x896xbf16, #tpu.memory_space<any>>) dst(%arg11 : memref<1024x896xbf16, #tpu.memory_space<vmem>>)
    %33 = arith.truncf %30 : vector<8x1024xf32> to vector<8x1024xbf16>
    %c0_20 = arith.constant 0 : index
    %c0_21 = arith.constant 0 : index
    %34 = vector.load %arg11[%c0_20, %c0_21] : memref<1024x896xbf16, #tpu.memory_space<vmem>>, vector<1024x896xbf16>
    %cst_22 = arith.constant dense<0.000000e+00> : vector<8x896xf32>
    %35 = tpu.matmul %33, %34, %cst_22 {dimension_numbers = #tpu.dot_dimension_numbers<[1], [0], [0], [1], [0, 0, 1, 1], [], []>} : vector<8x1024xbf16>, vector<1024x896xbf16>, vector<8x896xf32> -> vector<8x896xf32>
    %c0_23 = arith.constant 0 : index
    %c0_24 = arith.constant 0 : index
    %36 = vector.load %arg6[%c0_23, %c0_24] : memref<1x896xf32, #tpu.memory_space<vmem>>, vector<1x896xf32>
    %37 = vector.broadcast %36 : vector<1x896xf32> to vector<8x896xf32>
    %38 = arith.addf %35, %37 : vector<8x896xf32>
    %39 = math.tanh %38 : vector<8x896xf32>
    %c0_25 = arith.constant 0 : index
    %c0_26 = arith.constant 0 : index
    %40 = vector.load %arg9[%c0_25, %c0_26] : memref<8x896xf32, #tpu.memory_space<vmem>>, vector<8x896xf32>
    tpu.vector_store %arg9[%c0_25, %c0_26], %39 {strides = array<i32>} : memref<8x896xf32, #tpu.memory_space<vmem>>, vector<8x896xf32>,
    return
  }
}

</mosaic_0001>

<bundles_post_ra>
// kernel: tpu_custom_call.1
= control target key start
LH: loop header
LB: loop body
LE: loop exit
PB: predicated region body
PF: predicated region fallthrough
CT: control target
= control target key end

     0   :  { %14 = vsyncpa [#allocation6], 0  ;;  %s8324_s0 = inlined_call_operand.hbm [shape: f32[8,16], index: 0, kind: input, shape index: {}]   ;;  %s8325_s1 = inlined_call_operand.hbm [shape: bf16[16,256], index: 1, kind: input, shape index: {}]   ;;  %s8326_s2 = inlined_call_operand.hbm [shape: f32[1,256], index: 2, kind: input, shape index: {}]   ;;  %s8327_s3 = inlined_call_operand.hbm [shape: bf16[256,512], index: 3, kind: input, shape index: {}]   ;;  %s8328_s4 = inlined_call_operand.hbm [shape: f32[1,512], index: 4, kind: input, shape index: {}]   ;;  %s8329_s5 = inlined_call_operand.hbm [shape: f32[1,1024], index: 5, kind: input, shape index: {}]   ;;  %s8330_s6 = inlined_call_operand.hbm [shape: f32[1,896], index: 6, kind: input, shape index: {}]   ;;  %s8331_s7 = inlined_call_operand.hbm [shape: bf16[512,1024], index: 7, kind: input, shape index: {}]   ;;  %s8332_s8 = inlined_call_operand.hbm [shape: bf16[1024,896], index: 8, kind: input, shape index: {}]   ;;  %s8333_s9 = inlined_call_operand.hbm [shape: f32[8,896], index: 9, kind: output, shape index: {}]  }
   0x1   :  { %15 = vsyncpa [#allocation9], 0 }
   0x2   :  { %16 = vsyncpa [#allocation12], 0 }
   0x3   :  { %17 = vsyncpa [#allocation15], 0 }
   0x4   :  { %18 = vsyncpa [#allocation7], 0  ;;  %s8032_s30 = smov [#allocation8]  }
   0x5   :  { %s34_s10 = sshll.u32 %s8032_s30, 4  ;;  %s35_s10 = int_to_ptr.vmem [resolvable:$true] %s34_s10 }
   0x6   :  { %s7826_s11 = scalar_lea.vmem %s35_s10, 256  ;;  %p7831_p1 = scmp.lt.s32.totalorder %s35_s10, %s35_s10 }
   0x7   :  { %p7827_p0 = scmp.ne.s32.totalorder %s35_s10, %s7826_s11  ;;  %p7832_p2 = scmp.lt.s32.totalorder %s7826_s11, %s7826_s11 }
   0x9   :  { %p7833_p3 = por %p7832_p2, %p7831_p1 }
   0xb   :  { %p7834_p4 = pnand %p7833_p3, %p7827_p0 }
   0xd   :  { %7837 = shalt.err (!%p7834_p4)
}
   0xe   :  { %s8033_s12 = smov 128   ;;  %s8034_s13 = smov 8  }
   0xf   :  { %40 = dma.hbm_to_vmem [thread:$0]  %s8325_s1, 256, %s35_s10, [#allocation9], %s8033_s12, %s8033_s12, %s8034_s13  }
  0x10   :  { %s8035_s16 = smov [#allocation11]  }
  0x11   :  { %s56_s17 = sshll.u32 %s8035_s16, 4  ;;  %s57_s17 = int_to_ptr.vmem [resolvable:$true] %s56_s17 }
  0x12   :  { %s7846_s18 = scalar_lea.vmem %s57_s17, 8192  ;;  %p7851_p6 = scmp.lt.s32.totalorder %s57_s17, %s57_s17 }
  0x13   :  { %p7847_p5 = scmp.ne.s32.totalorder %s57_s17, %s7846_s18  ;;  %p7852_p7 = scmp.lt.s32.totalorder %s7846_s18, %s7846_s18 }
  0x15   :  { %p7853_p8 = por %p7852_p7, %p7851_p6 }
  0x17   :  { %p7854_p9 = pnand %p7853_p8, %p7847_p5 }
  0x19   :  { %7857 = shalt.err (!%p7854_p9)
}
  0x1a   :  { %s8036_s19 = smov 256   ;;  %s8037_s20 = smov 16  }
  0x1b   :  { %62 = dma.hbm_to_vmem [thread:$0]  %s8327_s3, 8192, %s57_s17, [#allocation12], %s8036_s19, %s8036_s19, %s8037_s20  }
  0x1c   :  { %s8038_s23 = smov [#allocation14]   ;;  %s8039_s25 = smov [#allocation5]  }
  0x1d   :  { %s79_s24 = sshll.u32 %s8038_s23, 4  ;;  %s25_s1 = sshll.u32 %s8039_s25, 4  ;;  %s80_s24 = int_to_ptr.vmem [resolvable:$true] %s79_s24  ;;  %s26_s1 = int_to_ptr.vmem [resolvable:$true] %s25_s1 }
  0x1e   :  { %s7866_s26 = scalar_lea.vmem %s80_s24, 128  ;;  %p7871_p11 = scmp.lt.s32.totalorder %s80_s24, %s80_s24 }
  0x1f   :  { %p7867_p10 = scmp.ne.s32.totalorder %s80_s24, %s7866_s26  ;;  %p7872_p12 = scmp.lt.s32.totalorder %s7866_s26, %s7866_s26 }
  0x21   :  { %p7873_p13 = por %p7872_p12, %p7871_p11 }
  0x23   :  { %p7874_p0 = pnand %p7873_p13, %p7867_p10 }
  0x25   :  { %7877 = shalt.err (!%p7874_p0)
}
  0x26   :  { %82 = dma.hbm_to_vmem [thread:$0]  %s8329_s5, 128, %s80_s24, [#allocation15]  }
  0x27   :  { %s7886_s29 = scalar_lea.vmem %s26_s1, 128  ;;  %p7891_p2 = scmp.lt.s32.totalorder %s26_s1, %s26_s1 }
  0x28   :  { %p7887_p1 = scmp.ne.s32.totalorder %s26_s1, %s7886_s29  ;;  %p7892_p3 = scmp.lt.s32.totalorder %s7886_s29, %s7886_s29 }
  0x2a   :  { %p7893_p4 = por %p7892_p3, %p7891_p2 }
  0x2c   :  { %p7894_p5 = pnand %p7893_p4, %p7887_p1 }
  0x2e   :  { %7897 = shalt.err (!%p7894_p5)
}
  0x2f   :  { %28 = dma.hbm_to_vmem [thread:$0]  %s8324_s0, 128, %s26_s1, [#allocation6]  }
  0x30   :  { %s8040_s10 = smov [#allocation10]   ;;  %s8041_s12 = smov [#allocation13]  }
  0x31   :  { %s47_s11 = sshll.u32 %s8040_s10, 4  ;;  %s69_s13 = sshll.u32 %s8041_s12, 4  ;;  %s48_s11 = int_to_ptr.vmem [resolvable:$true] %s47_s11  ;;  %s70_s13 = int_to_ptr.vmem [resolvable:$true] %s69_s13 }
  0x32   :  { %s7906_s14 = scalar_lea.vmem %s48_s11, 32  ;;  %p7911_p7 = scmp.lt.s32.totalorder %s48_s11, %s48_s11 }
  0x33   :  { %p7907_p6 = scmp.ne.s32.totalorder %s48_s11, %s7906_s14  ;;  %p7912_p8 = scmp.lt.s32.totalorder %s7906_s14, %s7906_s14 }
  0x35   :  { %p7913_p9 = por %p7912_p8, %p7911_p7 }
  0x37   :  { %p7914_p10 = pnand %p7913_p9, %p7907_p6 }
  0x39   :  { %7917 = shalt.err (!%p7914_p10)
}
  0x3a   :  { %50 = dma.hbm_to_vmem [thread:$0]  %s8326_s2, 32, %s48_s11, [#allocation9]  }
  0x3b   :  { %s7926_s16 = scalar_lea.vmem %s70_s13, 64  ;;  %p7931_p12 = scmp.lt.s32.totalorder %s70_s13, %s70_s13 }
  0x3c   :  { %p7927_p11 = scmp.ne.s32.totalorder %s70_s13, %s7926_s16  ;;  %p7932_p13 = scmp.lt.s32.totalorder %s7926_s16, %s7926_s16 }
  0x3e   :  { %p7933_p0 = por %p7932_p13, %p7931_p12 }
  0x40   :  { %p7934_p1 = pnand %p7933_p0, %p7927_p11 }
  0x42   :  { %7937 = shalt.err (!%p7934_p1)
}
  0x43   :  { %72 = dma.hbm_to_vmem [thread:$0]  %s8328_s4, 64, %s70_s13, [#allocation12]  }
  0x44   :  { %s8042_s18 = smov [#allocation16]  }
  0x45   :  { %s89_s19 = sshll.u32 %s8042_s18, 4  ;;  %s90_s19 = int_to_ptr.vmem [resolvable:$true] %s89_s19 }
  0x46   :  { %s7946_s20 = scalar_lea.vmem %s90_s19, 112  ;;  %s7950_s21 = scalar_lea.vmem %s90_s19, 128 }
  0x47   :  { %p7947_p2 = scmp.ne.s32.totalorder %s90_s19, %s7946_s20  ;;  %p7951_p3 = scmp.lt.s32.totalorder %s90_s19, %s90_s19 }
  0x48   :  { %p7952_p4 = scmp.lt.s32.totalorder %s7950_s21, %s7946_s20 }
  0x4a   :  { %p7953_p5 = por %p7952_p4, %p7951_p3 }
  0x4c   :  { %p7954_p6 = pnand %p7953_p5, %p7947_p2 }
  0x4e   :  { %7957 = shalt.err (!%p7954_p6)
}
  0x4f   :  { %92 = dma.hbm_to_vmem [thread:$0]  %s8330_s6, 112, %s90_s19, [#allocation15]  }
  0x50   :  { %8018 = dma.done.wait [#allocation6], 128  }
  0x51   :  { %8019 = vsyncadd [#allocation6], 4294967168 }
  0x52   :  { %8020 = dma.done.wait [#allocation9], 288  }
  0x53   :  { %8021 = vsyncadd [#allocation9], 4294967008 }
  0x54   :  { %8022 = dma.done.wait [#allocation12], 8256  }
  0x55   :  { %8023 = vsyncadd [#allocation12], 4294959040 }
  0x56   :  { %8024 = dma.done.wait [#allocation15], 240  }
  0x57   :  { %8025 = vsyncadd [#allocation15], 4294967056  ;;  %v8043_v0 = vmov 0   ;;  %v7065_v1 = vld [vmem:[#allocation8 + $0x4] ss:$8 sps:$4 sm:$0xff]   ;;  %v138_v3 = vld [vmem:[#allocation5] sm:$0xff] }
  0x58   :  { %200 = vmatprep.mubr.bf16.mxu0 %v8043_v0  ;;  %v7067_v2 = vld [vmem:[#allocation8] ss:$8 sps:$4 sm:$0xff]   ;;  %182 = vmatprep.subr.bf16.mxu0 %v7065_v1  ;;  %v139_v4 = vpack.c.bf16 %v138_v3, %v138_v3  ;;  %vm164_vm0 = vcmask 130048   ;;  %s8044_s4 = smov [#allocation2]   ;;  %s8045_s23 = smov [#allocation3]  }
  0x59   :  { %v7068_v5 = vld [vmem:[#allocation11 + $0xe4] ss:$16 sps:$4 sm:$0xff]   ;;  %183 = vmatpush1.bf16.msra.mxu0 %v7067_v2  ;;  %v7070_v6 = vld [vmem:[#allocation11 + $0xe8] ss:$16 sps:$4 sm:$0xff]   ;;  %v7072_v7 = vld [vmem:[#allocation11 + $0xec] ss:$16 sps:$4 sm:$0xff]  }
  0x5a   :  { %619 = vmatprep.subr.bf16.mxu1 %v7068_v5  ;;  %v7073_v8 = vld [vmem:[#allocation11 + $0xe0] ss:$16 sps:$4 sm:$0xff]   ;;  %660 = vmatprep.subr.bf16.mxu0 %v7072_v7  ;;  %v7074_v9 = vld [vmem:[#allocation11 + $0xc4] ss:$16 sps:$4 sm:$0xff]   ;;  %v7076_v10 = vld [vmem:[#allocation11 + $0xc8] ss:$16 sps:$4 sm:$0xff]   ;;  %v144_v5 = vlaneseq }
  0x5b   :  { %620 = vmatpush1.bf16.msra.mxu1 %v7073_v8  ;;  %v7078_v11 = vld [vmem:[#allocation11 + $0xcc] ss:$16 sps:$4 sm:$0xff]   ;;  %v7079_v12 = vld [vmem:[#allocation11 + $0xc0] ss:$16 sps:$4 sm:$0xff]   ;;  %v7080_v13 = vld [vmem:[#allocation11 + $0xa4] ss:$16 sps:$4 sm:$0xff]  }
  0x5c   :  { %6191 = vmatmul.mubr.msk.bf16.vlgmr.msra.gmra.mxu0 %vm164_vm0, %v139_v4  ;;  %621 = vmatprep.subr.bf16.mxu1 %v7074_v9  ;;  %v7084_v14 = vld [vmem:[#allocation11 + $0xac] ss:$16 sps:$4 sm:$0xff]   ;;  %v7085_v15 = vld [vmem:[#allocation11 + $0xa0] ss:$16 sps:$4 sm:$0xff]   ;;  %v7082_v16 = vld [vmem:[#allocation11 + $0xa8] ss:$16 sps:$4 sm:$0xff]  }
  0x5d   :  { %661 = vmatpush1.bf16.msra.mxu0 %v7070_v6  ;;  %v7086_v17 = vld [vmem:[#allocation11 + $0x84] ss:$16 sps:$4 sm:$0xff]   ;;  %v7090_v18 = vld [vmem:[#allocation11 + $0x8c] ss:$16 sps:$4 sm:$0xff]   ;;  %v7088_v19 = vld [vmem:[#allocation11 + $0x88] ss:$16 sps:$4 sm:$0xff]  }
  0x5e   :  { %662 = vmatprep.subr.bf16.mxu0 %v7078_v11  ;;  %v7091_v20 = vld [vmem:[#allocation11 + $0x80] ss:$16 sps:$4 sm:$0xff]   ;;  %v7092_v21 = vld [vmem:[#allocation11 + $0x64] ss:$16 sps:$4 sm:$0xff]   ;;  %v7096_v22 = vld [vmem:[#allocation11 + $0x6c] ss:$16 sps:$4 sm:$0xff]  }
  0x5f   :  { %622 = vmatpush1.bf16.msra.mxu1 %v7079_v12  ;;  %v7097_v23 = vld [vmem:[#allocation11 + $0x60] ss:$16 sps:$4 sm:$0xff]   ;;  %v7094_v24 = vld [vmem:[#allocation11 + $0x68] ss:$16 sps:$4 sm:$0xff]   ;;  %v7098_v25 = vld [vmem:[#allocation11 + $0x44] ss:$16 sps:$4 sm:$0xff]  }
  0x60   :  { %623 = vmatprep.subr.bf16.mxu1 %v7080_v13  ;;  %v7102_v26 = vld [vmem:[#allocation11 + $0x4c] ss:$16 sps:$4 sm:$0xff]   ;;  %v7100_v27 = vld [vmem:[#allocation11 + $0x48] ss:$16 sps:$4 sm:$0xff]   ;;  %v7103_v28 = vld [vmem:[#allocation11 + $0x40] ss:$16 sps:$4 sm:$0xff]  }
  0x61   :  { %663 = vmatpush1.bf16.msra.mxu0 %v7076_v10  ;;  %v7104_v29 = vld [vmem:[#allocation11 + $0x24] ss:$16 sps:$4 sm:$0xff]   ;;  %v7108_v30 = vld [vmem:[#allocation11 + $0x2c] ss:$16 sps:$4 sm:$0xff]   ;;  %v7109_v31 = vld [vmem:[#allocation11 + $0x20] ss:$16 sps:$4 sm:$0xff]  }
  0x62   :  { %664 = vmatprep.subr.bf16.mxu0 %v7084_v14  ;;  %v7106_v32 = vld [vmem:[#allocation11 + $0x28] ss:$16 sps:$4 sm:$0xff]   ;;  %v7110_v33 = vld [vmem:[#allocation11 + $0x4] ss:$16 sps:$4 sm:$0xff]   ;;  %v7114_v34 = vld [vmem:[#allocation11 + $0xc] ss:$16 sps:$4 sm:$0xff]  }
  0x63   :  { %624 = vmatpush1.bf16.msra.mxu1 %v7085_v15  ;;  %v7112_v35 = vld [vmem:[#allocation11 + $0x8] ss:$16 sps:$4 sm:$0xff]   ;;  %v7115_v36 = vld [vmem:[#allocation11] ss:$16 sps:$4 sm:$0xff]   ;;  %v7116_v37 = vld [vmem:[#allocation11 + $0x1e4] ss:$16 sps:$4 sm:$0xff]  }
  0x64   :  { %625 = vmatprep.subr.bf16.mxu1 %v7086_v17  ;;  %v7120_v38 = vld [vmem:[#allocation11 + $0x1ec] ss:$16 sps:$4 sm:$0xff]   ;;  %v7121_v39 = vld [vmem:[#allocation11 + $0x1e0] ss:$16 sps:$4 sm:$0xff]   ;;  %v7118_v40 = vld [vmem:[#allocation11 + $0x1e8] ss:$16 sps:$4 sm:$0xff]  }
  0x65   :  { %665 = vmatpush1.bf16.msra.mxu0 %v7082_v16  ;;  %v7122_v41 = vld [vmem:[#allocation11 + $0x1c4] ss:$16 sps:$4 sm:$0xff]   ;;  %v7126_v42 = vld [vmem:[#allocation11 + $0x1cc] ss:$16 sps:$4 sm:$0xff]   ;;  %v7124_v43 = vld [vmem:[#allocation11 + $0x1c8] ss:$16 sps:$4 sm:$0xff]  }
  0x66   :  { %666 = vmatprep.subr.bf16.mxu0 %v7090_v18  ;;  %v7127_v44 = vld [vmem:[#allocation11 + $0x1c0] ss:$16 sps:$4 sm:$0xff]   ;;  %v7128_v45 = vld [vmem:[#allocation11 + $0x1a4] ss:$16 sps:$4 sm:$0xff]   ;;  %v7132_v46 = vld [vmem:[#allocation11 + $0x1ac] ss:$16 sps:$4 sm:$0xff]  }
  0x67   :  { %626 = vmatpush1.bf16.msra.mxu1 %v7091_v20  ;;  %v7133_v47 = vld [vmem:[#allocation11 + $0x1a0] ss:$16 sps:$4 sm:$0xff]   ;;  %v7130_v48 = vld [vmem:[#allocation11 + $0x1a8] ss:$16 sps:$4 sm:$0xff]   ;;  %v7134_v49 = vld [vmem:[#allocation11 + $0x184] ss:$16 sps:$4 sm:$0xff]  }
  0x68   :  { %627 = vmatprep.subr.bf16.mxu1 %v7092_v21  ;;  %v7138_v50 = vld [vmem:[#allocation11 + $0x18c] ss:$16 sps:$4 sm:$0xff]   ;;  %v7139_v51 = vld [vmem:[#allocation11 + $0x180] ss:$16 sps:$4 sm:$0xff]   ;;  %v7136_v52 = vld [vmem:[#allocation11 + $0x188] ss:$16 sps:$4 sm:$0xff]  }
  0x69   :  { %667 = vmatpush1.bf16.msra.mxu0 %v7088_v19  ;;  %v7140_v53 = vld [vmem:[#allocation11 + $0x164] ss:$16 sps:$4 sm:$0xff]   ;;  %v7144_v54 = vld [vmem:[#allocation11 + $0x16c] ss:$16 sps:$4 sm:$0xff]   ;;  %v7145_v55 = vld [vmem:[#allocation11 + $0x160] ss:$16 sps:$4 sm:$0xff]  }
  0x6a   :  { %668 = vmatprep.subr.bf16.mxu0 %v7096_v22  ;;  %v7142_v56 = vld [vmem:[#allocation11 + $0x168] ss:$16 sps:$4 sm:$0xff]   ;;  %v7146_v57 = vld [vmem:[#allocation11 + $0x144] ss:$16 sps:$4 sm:$0xff]   ;;  %v7150_v58 = vld [vmem:[#allocation11 + $0x14c] ss:$16 sps:$4 sm:$0xff]  }
  0x6b   :  { %628 = vmatpush1.bf16.msra.mxu1 %v7097_v23  ;;  %v7151_v59 = vld [vmem:[#allocation11 + $0x140] ss:$16 sps:$4 sm:$0xff]   ;;  %v7148_v60 = vld [vmem:[#allocation11 + $0x148] ss:$16 sps:$4 sm:$0xff]   ;;  %v7152_v61 = vld [vmem:[#allocation11 + $0x124] ss:$16 sps:$4 sm:$0xff]  }
  0x6c   :  { %629 = vmatprep.subr.bf16.mxu1 %v7098_v25  ;;  %v7156_v62 = vld [vmem:[#allocation11 + $0x12c] ss:$16 sps:$4 sm:$0xff]   ;;  %v7154_v63 = vld [vmem:[#allocation11 + $0x128] ss:$16 sps:$4 sm:$0xff]   ;;  %v7157_v0 = vld [vmem:[#allocation11 + $0x120] ss:$16 sps:$4 sm:$0xff]  }
  0x6d   :  { %669 = vmatpush1.bf16.msra.mxu0 %v7094_v24  ;;  %v7158_v1 = vld [vmem:[#allocation11 + $0x104] ss:$16 sps:$4 sm:$0xff]   ;;  %v7162_v2 = vld [vmem:[#allocation11 + $0x10c] ss:$16 sps:$4 sm:$0xff]   ;;  %v7160_v3 = vld [vmem:[#allocation11 + $0x108] ss:$16 sps:$4 sm:$0xff]  }
  0x6e   :  { %670 = vmatprep.subr.bf16.mxu0 %v7102_v26  ;;  %v7163_v4 = vld [vmem:[#allocation11 + $0x100] ss:$16 sps:$4 sm:$0xff]   ;;  %v8118_v6 = vshrl.u32 %v144_v5, 7  ;;  %v142_v8 = vld [vmem:[#allocation10] sm:$0x3]  ;;  %s122_s6 = sshll.u32 %s8044_s4, 4  ;;  %s123_s6 = int_to_ptr.vmem [resolvable:$true] %s122_s6 }
  0x6f   :  { %630 = vmatpush1.bf16.msra.mxu1 %v7103_v28  ;;  %s134_s24 = sshll.u32 %s8045_s23, 4  ;;  %s7966_s25 = scalar_lea.vmem %s123_s6, 32768  ;;  %s135_s24 = int_to_ptr.vmem [resolvable:$true] %s134_s24 }
  0x70   :  { %631 = vmatprep.subr.bf16.mxu1 %v7104_v29  ;;  %v8121_v7 = vsub.s32 0, %v8118_v6  ;;  %v8124_v9 = vsub.s32 1, %v8118_v6  ;;  %p7967_p7 = scmp.ne.s32.totalorder %s123_s6, %s7966_s25  ;;  %p7971_p8 = scmp.lt.s32.totalorder %s123_s6, %s123_s6 }
  0x71   :  { %671 = vmatpush1.bf16.msra.mxu0 %v7100_v27  ;;  %p7972_p9 = scmp.lt.s32.totalorder %s7966_s25, %s7966_s25 }
  0x72   :  { %672 = vmatprep.subr.bf16.mxu0 %v7108_v30  ;;  %v147_v10 = vrot.slane %v142_v8, %v8121_v7  ;;  %v151_v11 = vrot.slane %v142_v8, %v8124_v9 }
  0x73   :  { %632 = vmatpush1.bf16.msra.mxu1 %v7109_v31  ;;  %p7973_p10 = por %p7972_p9, %p7971_p8 }
  0x74   :  { %633 = vmatprep.subr.bf16.mxu1 %v7110_v33 }
  0x75   :  { %673 = vmatpush1.bf16.msra.mxu0 %v7106_v32  ;;  %p7974_p11 = pnand %p7973_p10, %p7967_p7 }
  0x76   :  { %674 = vmatprep.subr.bf16.mxu0 %v7114_v34 }
  0x77   :  { %634 = vmatpush1.bf16.msra.mxu1 %v7115_v36 }
  0x78   :  { %635 = vmatprep.subr.bf16.mxu1 %v7116_v37 }
  0x79   :  { %675 = vmatpush1.bf16.msra.mxu0 %v7112_v35 }
  0x7a   :  { %676 = vmatprep.subr.bf16.mxu0 %v7120_v38 }
  0x7b   :  { %636 = vmatpush2.bf16.msra.mxu1 %v7121_v39 }
  0x7c   :  { %637 = vmatprep.subr.bf16.mxu1 %v7122_v41 }
  0x7d   :  { %677 = vmatpush2.bf16.msra.mxu0 %v7118_v40 }
  0x7e   :  { %678 = vmatprep.subr.bf16.mxu0 %v7126_v42 }
  0x7f   :  { %638 = vmatpush2.bf16.msra.mxu1 %v7127_v44 }
  0x80   :  { %639 = vmatprep.subr.bf16.mxu1 %v7128_v45 }
  0x81   :  { %679 = vmatpush2.bf16.msra.mxu0 %v7124_v43 }
  0x82   :  { %680 = vmatprep.subr.bf16.mxu0 %v7132_v46 }
  0x83   :  { %640 = vmatpush2.bf16.msra.mxu1 %v7133_v47 }
  0x84   :  { %641 = vmatprep.subr.bf16.mxu1 %v7134_v49 }
  0x85   :  { %681 = vmatpush2.bf16.msra.mxu0 %v7130_v48 }
  0x86   :  { %682 = vmatprep.subr.bf16.mxu0 %v7138_v50 }
  0x87   :  { %642 = vmatpush2.bf16.msra.mxu1 %v7139_v51 }
  0x88   :  { %643 = vmatprep.subr.bf16.mxu1 %v7140_v53 }
  0x89   :  { %683 = vmatpush2.bf16.msra.mxu0 %v7136_v52 }
  0x8a   :  { %684 = vmatprep.subr.bf16.mxu0 %v7144_v54 }
  0x8b   :  { %644 = vmatpush2.bf16.msra.mxu1 %v7145_v55 }
  0x8c   :  { %645 = vmatprep.subr.bf16.mxu1 %v7146_v57 }
  0x8d   :  { %685 = vmatpush2.bf16.msra.mxu0 %v7142_v56 }
  0x8e   :  { %686 = vmatprep.subr.bf16.mxu0 %v7150_v58 }
  0x8f   :  { %646 = vmatpush2.bf16.msra.mxu1 %v7151_v59 }
  0x90   :  { %647 = vmatprep.subr.bf16.mxu1 %v7152_v61 }
  0x91   :  { %687 = vmatpush2.bf16.msra.mxu0 %v7148_v60 }
  0x92   :  { %688 = vmatprep.subr.bf16.mxu0 %v7156_v62 }
  0x93   :  { %648 = vmatpush2.bf16.msra.mxu1 %v7157_v0 }
  0x94   :  { %649 = vmatprep.subr.bf16.mxu1 %v7158_v1 }
  0x95   :  { %689 = vmatpush2.bf16.msra.mxu0 %v7154_v63 }
  0x96   :  { %690 = vmatprep.subr.bf16.mxu0 %v7162_v2 }
  0x97   :  { %650 = vmatpush2.bf16.msra.mxu1 %v7163_v4 }
  0x99   :  { %691 = vmatpush2.bf16.msra.mxu0 %v7160_v3 }
 0x11c   :  { %v202_v12 = vpop.f32.mrf.mxu0 }
 0x11d   :  { %v203_v13 = vadd.f32 %v202_v12, %v147_v10 }
 0x11e   :  { %v204_v14 = vpop.f32.mrf.mxu0 }
 0x11f   :  { %v205_v15 = vadd.f32 %v204_v14, %v151_v11  ;;  %v209_v16 = vmax.f32 %v203_v13, 0.0 }
 0x120   :  { %v206_v17 = vpop.f32.mrf.mxu0 }
 0x121   :  { %v210_v18 = vmax.f32 %v205_v15, 0.0  ;;  %v211_v21 = vpack.c.bf16 %v209_v16, %v209_v16 }
 0x122   :  { %v207_v19 = vpop.f32.mrf.mxu0 }
 0x123   :  { %v212_v20 = vpack.c.bf16 %v210_v18, %v210_v18 }
 0x125   :  { %651 = vmatprep.mubr.bf16.mxu1 %v212_v20  ;;  %692 = vmatprep.mubr.bf16.mxu0 %v212_v20 }
 0x126   :  { %652 = vmatmul.mubr.bf16.vlgmr.msra.gmra.mxu1 %v211_v21  ;;  %693 = vmatmul.mubr.bf16.vlgmr.msra.gmra.mxu0 %v211_v21 }
 0x127   :  { %7977 = shalt.err (!%p7974_p11)  }
 0x128   :  { %125 = dma.hbm_to_vmem [thread:$0]  %s8331_s7, 32768, %s123_s6, [#allocation4] }
 0x129   :  { %s7986_s27 = scalar_lea.vmem %s135_s24, 57344  ;;  %p7991_p13 = scmp.lt.s32.totalorder %s135_s24, %s135_s24 }
 0x12a   :  { %p7987_p12 = scmp.ne.s32.totalorder %s135_s24, %s7986_s27  ;;  %p7992_p0 = scmp.lt.s32.totalorder %s7986_s27, %s7986_s27 }
 0x12c   :  { %p7993_p1 = por %p7992_p0, %p7991_p13 }
 0x12e   :  { %p7994_p2 = pnand %p7993_p1, %p7987_p12 }
 0x130   :  { %7997 = shalt.err (!%p7994_p2)  }
 0x131   :  { %137 = dma.hbm_to_vmem [thread:$0]  %s8332_s8, 57344, %s135_s24, [#allocation4 + $0x1]  ;;  %v8135_v22 = vsub.s32 2, %v8118_v6  ;;  %v277_v23 = vld [vmem:[#allocation13] sm:$0xf]  ;;  %v8138_v24 = vsub.s32 3, %v8118_v6 }
 0x132   :  { %v282_v25 = vrot.slane %v277_v23, %v8121_v7  ;;  %v286_v27 = vrot.slane %v277_v23, %v8124_v9 }
 0x133   :  { %v290_v26 = vrot.slane %v277_v23, %v8135_v22  ;;  %v294_v28 = vrot.slane %v277_v23, %v8138_v24 }
 0x1e6   :  { %v653_v29 = vpop.f32.mrf.mxu1  ;;  %v694_v30 = vpop.f32.mrf.mxu0 }
 0x1e7   :  { %v8144_v31 = vadd.f32 %v653_v29, %v282_v25  ;;  %v8146_v32 = vadd.f32 %v694_v30, %v290_v26 }
 0x1e8   :  { %v655_v33 = vpop.f32.mrf.mxu1  ;;  %v696_v34 = vpop.f32.mrf.mxu0 }
 0x1e9   :  { %v701_v35 = vmax.f32 %v8144_v31, 0.0  ;;  %v703_v36 = vmax.f32 %v8146_v32, 0.0  ;;  %v656_v37 = vadd.f32 %v655_v33, %v286_v27  ;;  %v697_v38 = vadd.f32 %v696_v34, %v294_v28 }
 0x1ea   :  { %v657_v39 = vpop.f32.mrf.mxu1  ;;  %v698_v40 = vpop.f32.mrf.mxu0 }
 0x1eb   :  { %v702_v41 = vmax.f32 %v656_v37, 0.0  ;;  %v704_v42 = vmax.f32 %v697_v38, 0.0 }
 0x1ec   :  { %v658_v43 = vpop.f32.mrf.mxu1  ;;  %v699_v44 = vpop.f32.mrf.mxu0 }
 0x1ed   :  { %8026 = dma.done.wait [#allocation4], 32768 }
 0x1ee   :  { %8027 = vsyncadd [#allocation4], 4294934528  ;;  %v8150_v45 = vpack.c.bf16 %v702_v41, %v702_v41  ;;  %v8152_v46 = vpack.c.bf16 %v704_v42, %v704_v42  ;;  %v769_v47 = vld [vmem:[#allocation2 + $0x1c0] sm:$0xff]  ;;  %v758_v31 = vld [vmem:[#allocation2 + $0x168] sm:$0xff] }
 0x1ef   :  { %v773_v48 = vld [vmem:[#allocation2 + $0x1e0] sm:$0xff] }
 0x1f0   :  { %2323 = vmatprep.mubr.bf16.mxu1 %v8150_v45  ;;  %2364 = vmatprep.mubr.bf16.mxu0 %v8152_v46  ;;  %v897_v49 = vld [vmem:[#allocation2 + $0x5c0] sm:$0xff]  ;;  %v6313_v50 = vcombine.high %v769_v47, %v773_v48  ;;  %v6312_v52 = vcombine.low %v769_v47, %v773_v48 }
 0x1f1   :  { %v901_v51 = vld [vmem:[#allocation2 + $0x5e0] sm:$0xff] }
 0x1f2   :  { %v761_v53 = vld [vmem:[#allocation2 + $0x180] sm:$0xff]  ;;  %v6441_v55 = vcombine.high %v897_v49, %v901_v51  ;;  %v6440_v56 = vcombine.low %v897_v49, %v901_v51  ;;  %2291 = vmatprep.subr.bf16.mxu1 %v6313_v50 }
 0x1f3   :  { %v765_v54 = vld [vmem:[#allocation2 + $0x1a0] sm:$0xff]  ;;  %2292 = vmatpush1.bf16.msra.mxu1 %v6312_v52 }
 0x1f4   :  { %v6305_v57 = vcombine.high %v761_v53, %v765_v54  ;;  %v889_v58 = vld [vmem:[#allocation2 + $0x580] sm:$0xff]  ;;  %2332 = vmatprep.subr.bf16.mxu0 %v6441_v55  ;;  %v6304_v1 = vcombine.low %v761_v53, %v765_v54 }
 0x1f5   :  { %v893_v59 = vld [vmem:[#allocation2 + $0x5a0] sm:$0xff]  ;;  %2333 = vmatpush1.bf16.msra.mxu0 %v6440_v56 }
 0x1f6   :  { %v753_v60 = vld [vmem:[#allocation2 + $0x140] sm:$0xff]  ;;  %v6433_v61 = vcombine.high %v889_v58, %v893_v59  ;;  %2293 = vmatprep.subr.bf16.mxu1 %v6305_v57  ;;  %v6432_v2 = vcombine.low %v889_v58, %v893_v59 }
 0x1f7   :  { %v757_v62 = vld [vmem:[#allocation2 + $0x160] sm:$0xff]  ;;  %2294 = vmatpush1.bf16.msra.mxu1 %v6304_v1 }
 0x1f8   :  { %v881_v63 = vld [vmem:[#allocation2 + $0x540] sm:$0xff]  ;;  %v6297_v3 = vcombine.high %v753_v60, %v757_v62  ;;  %2334 = vmatprep.subr.bf16.mxu0 %v6433_v61  ;;  %v6296_v12 = vcombine.low %v753_v60, %v757_v62 }
 0x1f9   :  { %v885_v0 = vld [vmem:[#allocation2 + $0x560] sm:$0xff]  ;;  %2335 = vmatpush1.bf16.msra.mxu0 %v6432_v2 }
 0x1fa   :  { %v6425_v4 = vcombine.high %v881_v63, %v885_v0  ;;  %v745_v5 = vld [vmem:[#allocation2 + $0x100] sm:$0xff]  ;;  %2295 = vmatprep.subr.bf16.mxu1 %v6297_v3  ;;  %v6424_v13 = vcombine.low %v881_v63, %v885_v0 }
 0x1fb   :  { %v749_v8 = vld [vmem:[#allocation2 + $0x120] sm:$0xff]  ;;  %2296 = vmatpush1.bf16.msra.mxu1 %v6296_v12 }
 0x1fc   :  { %v873_v10 = vld [vmem:[#allocation2 + $0x500] sm:$0xff]  ;;  %v6289_v14 = vcombine.high %v745_v5, %v749_v8  ;;  %2336 = vmatprep.subr.bf16.mxu0 %v6425_v4  ;;  %v6288_v20 = vcombine.low %v745_v5, %v749_v8 }
 0x1fd   :  { %v877_v11 = vld [vmem:[#allocation2 + $0x520] sm:$0xff]  ;;  %2337 = vmatpush1.bf16.msra.mxu0 %v6424_v13 }
 0x1fe   :  { %v6417_v15 = vcombine.high %v873_v10, %v877_v11  ;;  %v737_v16 = vld [vmem:[#allocation2 + $0xc0] sm:$0xff]  ;;  %2297 = vmatprep.subr.bf16.mxu1 %v6289_v14  ;;  %v6416_v21 = vcombine.low %v873_v10, %v877_v11 }
 0x1ff   :  { %v741_v17 = vld [vmem:[#allocation2 + $0xe0] sm:$0xff]  ;;  %2298 = vmatpush1.bf16.msra.mxu1 %v6288_v20 }
 0x200   :  { %v865_v18 = vld [vmem:[#allocation2 + $0x4c0] sm:$0xff]  ;;  %v6281_v23 = vcombine.high %v737_v16, %v741_v17  ;;  %2338 = vmatprep.subr.bf16.mxu0 %v6417_v15  ;;  %v6280_v30 = vcombine.low %v737_v16, %v741_v17 }
 0x201   :  { %v869_v19 = vld [vmem:[#allocation2 + $0x4e0] sm:$0xff]  ;;  %2339 = vmatpush1.bf16.msra.mxu0 %v6416_v21 }
 0x202   :  { %v6409_v25 = vcombine.high %v865_v18, %v869_v19  ;;  %v729_v26 = vld [vmem:[#allocation2 + $0x80] sm:$0xff]  ;;  %2299 = vmatprep.subr.bf16.mxu1 %v6281_v23  ;;  %v6408_v33 = vcombine.low %v865_v18, %v869_v19 }
 0x203   :  { %v733_v27 = vld [vmem:[#allocation2 + $0xa0] sm:$0xff]  ;;  %2300 = vmatpush1.bf16.msra.mxu1 %v6280_v30 }
 0x204   :  { %v857_v28 = vld [vmem:[#allocation2 + $0x480] sm:$0xff]  ;;  %v6273_v34 = vcombine.high %v729_v26, %v733_v27  ;;  %2340 = vmatprep.subr.bf16.mxu0 %v6409_v25  ;;  %v6272_v42 = vcombine.low %v729_v26, %v733_v27 }
 0x205   :  { %v861_v29 = vld [vmem:[#allocation2 + $0x4a0] sm:$0xff]  ;;  %2341 = vmatpush1.bf16.msra.mxu0 %v6408_v33 }
 0x206   :  { %v6401_v37 = vcombine.high %v857_v28, %v861_v29  ;;  %v721_v38 = vld [vmem:[#allocation2 + $0x40] sm:$0xff]  ;;  %2301 = vmatprep.subr.bf16.mxu1 %v6273_v34  ;;  %v6400_v43 = vcombine.low %v857_v28, %v861_v29 }
 0x207   :  { %v725_v39 = vld [vmem:[#allocation2 + $0x60] sm:$0xff]  ;;  %2302 = vmatpush1.bf16.msra.mxu1 %v6272_v42 }
 0x208   :  { %v849_v40 = vld [vmem:[#allocation2 + $0x440] sm:$0xff]  ;;  %v6265_v44 = vcombine.high %v721_v38, %v725_v39  ;;  %2342 = vmatprep.subr.bf16.mxu0 %v6401_v37  ;;  %v6264_v52 = vcombine.low %v721_v38, %v725_v39 }
 0x209   :  { %v853_v41 = vld [vmem:[#allocation2 + $0x460] sm:$0xff]  ;;  %2343 = vmatpush1.bf16.msra.mxu0 %v6400_v43 }
 0x20a   :  { %v6393_v47 = vcombine.high %v849_v40, %v853_v41  ;;  %v713_v48 = vld [vmem:[#allocation2] sm:$0xff]  ;;  %2303 = vmatprep.subr.bf16.mxu1 %v6265_v44  ;;  %v6392_v53 = vcombine.low %v849_v40, %v853_v41 }
 0x20b   :  { %v717_v49 = vld [vmem:[#allocation2 + $0x20] sm:$0xff]  ;;  %2304 = vmatpush1.bf16.msra.mxu1 %v6264_v52 }
 0x20c   :  { %v841_v50 = vld [vmem:[#allocation2 + $0x400] sm:$0xff]  ;;  %v6257_v54 = vcombine.high %v713_v48, %v717_v49  ;;  %2344 = vmatprep.subr.bf16.mxu0 %v6393_v47  ;;  %v6256_v60 = vcombine.low %v713_v48, %v717_v49 }
 0x20d   :  { %v845_v51 = vld [vmem:[#allocation2 + $0x420] sm:$0xff]  ;;  %2345 = vmatpush1.bf16.msra.mxu0 %v6392_v53 }
 0x20e   :  { %v6385_v55 = vcombine.high %v841_v50, %v845_v51  ;;  %v833_v56 = vld [vmem:[#allocation2 + $0x3c0] sm:$0xff]  ;;  %2305 = vmatprep.subr.bf16.mxu1 %v6257_v54  ;;  %v6384_v61 = vcombine.low %v841_v50, %v845_v51 }
 0x20f   :  { %v837_v57 = vld [vmem:[#allocation2 + $0x3e0] sm:$0xff]  ;;  %2306 = vmatpush1.bf16.msra.mxu1 %v6256_v60 }
 0x210   :  { %v961_v58 = vld [vmem:[#allocation2 + $0x7c0] sm:$0xff]  ;;  %v6377_v62 = vcombine.high %v833_v56, %v837_v57  ;;  %2346 = vmatprep.subr.bf16.mxu0 %v6385_v55  ;;  %v6376_v4 = vcombine.low %v833_v56, %v837_v57 }
 0x211   :  { %v965_v59 = vld [vmem:[#allocation2 + $0x7e0] sm:$0xff]  ;;  %2347 = vmatpush1.bf16.msra.mxu0 %v6384_v61 }
 0x212   :  { %v6505_v63 = vcombine.high %v961_v58, %v965_v59  ;;  %v825_v0 = vld [vmem:[#allocation2 + $0x380] sm:$0xff]  ;;  %2307 = vmatprep.subr.bf16.mxu1 %v6377_v62  ;;  %v6504_v5 = vcombine.low %v961_v58, %v965_v59 }
 0x213   :  { %v829_v1 = vld [vmem:[#allocation2 + $0x3a0] sm:$0xff]  ;;  %2308 = vmatpush2.bf16.msra.mxu1 %v6376_v4  ;;  %v774_v4 = vld [vmem:[#allocation2 + $0x1e8] sm:$0xff] }
 0x214   :  { %v953_v2 = vld [vmem:[#allocation2 + $0x780] sm:$0xff]  ;;  %v6369_v8 = vcombine.high %v825_v0, %v829_v1  ;;  %2348 = vmatprep.subr.bf16.mxu0 %v6505_v63  ;;  %v6368_v15 = vcombine.low %v825_v0, %v829_v1 }
 0x215   :  { %v957_v3 = vld [vmem:[#allocation2 + $0x7a0] sm:$0xff]  ;;  %2349 = vmatpush2.bf16.msra.mxu0 %v6504_v5  ;;  %v898_v5 = vld [vmem:[#allocation2 + $0x5c8] sm:$0xff] }
 0x216   :  { %v6497_v10 = vcombine.high %v953_v2, %v957_v3  ;;  %v817_v11 = vld [vmem:[#allocation2 + $0x340] sm:$0xff]  ;;  %2309 = vmatprep.subr.bf16.mxu1 %v6369_v8  ;;  %v6496_v16 = vcombine.low %v953_v2, %v957_v3  ;;  %v770_v3 = vld [vmem:[#allocation2 + $0x1c8] sm:$0xff] }
 0x217   :  { %v821_v12 = vld [vmem:[#allocation2 + $0x360] sm:$0xff]  ;;  %2310 = vmatpush2.bf16.msra.mxu1 %v6368_v15  ;;  %v902_v8 = vld [vmem:[#allocation2 + $0x5e8] sm:$0xff] }
 0x218   :  { %v945_v13 = vld [vmem:[#allocation2 + $0x740] sm:$0xff]  ;;  %v6361_v17 = vcombine.high %v817_v11, %v821_v12  ;;  %2350 = vmatprep.subr.bf16.mxu0 %v6497_v10  ;;  %v6360_v25 = vcombine.low %v817_v11, %v821_v12  ;;  %v6315_v12 = vcombine.high %v770_v3, %v774_v4  ;;  %v766_v15 = vld [vmem:[#allocation2 + $0x1a8] sm:$0xff] }
 0x219   :  { %v949_v14 = vld [vmem:[#allocation2 + $0x760] sm:$0xff]  ;;  %2351 = vmatpush2.bf16.msra.mxu0 %v6496_v16  ;;  %v8159_v16 = vpack.c.bf16 %v701_v35, %v701_v35  ;;  %v882_v35 = vld [vmem:[#allocation2 + $0x548] sm:$0xff] }
 0x21a   :  { %v6489_v18 = vcombine.high %v945_v13, %v949_v14  ;;  %v809_v19 = vld [vmem:[#allocation2 + $0x300] sm:$0xff]  ;;  %2311 = vmatprep.subr.bf16.mxu1 %v6361_v17  ;;  %v6488_v26 = vcombine.low %v945_v13, %v949_v14  ;;  %v6443_v13 = vcombine.high %v898_v5, %v902_v8  ;;  %v762_v14 = vld [vmem:[#allocation2 + $0x188] sm:$0xff] }
 0x21b   :  { %v813_v20 = vld [vmem:[#allocation2 + $0x320] sm:$0xff]  ;;  %2312 = vmatpush2.bf16.msra.mxu1 %v6360_v25  ;;  %v890_v17 = vld [vmem:[#allocation2 + $0x588] sm:$0xff]  ;;  %v6306_v32 = vcombine.low %v762_v14, %v766_v15 }
 0x21c   :  { %v937_v21 = vld [vmem:[#allocation2 + $0x700] sm:$0xff]  ;;  %v6353_v27 = vcombine.high %v809_v19, %v813_v20  ;;  %2352 = vmatprep.subr.bf16.mxu0 %v6489_v18  ;;  %v6352_v37 = vcombine.low %v809_v19, %v813_v20  ;;  %v894_v18 = vld [vmem:[#allocation2 + $0x5a8] sm:$0xff]  ;;  %v8164_v19 = vpack.c.bf16 %v703_v36, %v703_v36  ;;  %v6314_v20 = vcombine.low %v770_v3, %v774_v4 }
 0x21d   :  { %v941_v23 = vld [vmem:[#allocation2 + $0x720] sm:$0xff]  ;;  %2353 = vmatpush2.bf16.msra.mxu0 %v6488_v26  ;;  %v6435_v25 = vcombine.high %v890_v17, %v894_v18  ;;  %v754_v26 = vld [vmem:[#allocation2 + $0x148] sm:$0xff]  ;;  %v6434_v36 = vcombine.low %v890_v17, %v894_v18 }
 0x21e   :  { %v6481_v28 = vcombine.high %v937_v21, %v941_v23  ;;  %v801_v29 = vld [vmem:[#allocation2 + $0x2c0] sm:$0xff]  ;;  %2313 = vmatprep.subr.bf16.mxu1 %v6353_v27  ;;  %v6480_v38 = vcombine.low %v937_v21, %v941_v23  ;;  %v6442_v21 = vcombine.low %v898_v5, %v902_v8  ;;  %v6307_v23 = vcombine.high %v762_v14, %v766_v15  ;;  %v886_v27 = vld [vmem:[#allocation2 + $0x568] sm:$0xff] }
 0x21f   :  { %v805_v30 = vld [vmem:[#allocation2 + $0x2e0] sm:$0xff]  ;;  %2314 = vmatpush2.bf16.msra.mxu1 %v6352_v37  ;;  %v878_v37 = vld [vmem:[#allocation2 + $0x528] sm:$0xff] }
 0x220   :  { %v929_v33 = vld [vmem:[#allocation2 + $0x6c0] sm:$0xff]  ;;  %v6345_v39 = vcombine.high %v801_v29, %v805_v30  ;;  %2354 = vmatprep.subr.bf16.mxu0 %v6481_v28  ;;  %v6344_v47 = vcombine.low %v801_v29, %v805_v30  ;;  %v6299_v28 = vcombine.high %v754_v26, %v758_v31  ;;  %v6427_v29 = vcombine.high %v882_v35, %v886_v27  ;;  %v746_v30 = vld [vmem:[#allocation2 + $0x108] sm:$0xff] }
 0x221   :  { %v933_v34 = vld [vmem:[#allocation2 + $0x6e0] sm:$0xff]  ;;  %2355 = vmatpush2.bf16.msra.mxu0 %v6480_v38  ;;  %v6298_v38 = vcombine.low %v754_v26, %v758_v31  ;;  %v714_v4 = vld [vmem:[#allocation2 + $0x8] sm:$0xff] }
 0x222   :  { %v6473_v40 = vcombine.high %v929_v33, %v933_v34  ;;  %v793_v41 = vld [vmem:[#allocation2 + $0x280] sm:$0xff]  ;;  %2315 = vmatprep.subr.bf16.mxu1 %v6345_v39  ;;  %v6472_v48 = vcombine.low %v929_v33, %v933_v34  ;;  %v750_v33 = vld [vmem:[#allocation2 + $0x128] sm:$0xff]  ;;  %v6426_v39 = vcombine.low %v882_v35, %v886_v27 }
 0x223   :  { %v797_v42 = vld [vmem:[#allocation2 + $0x2a0] sm:$0xff]  ;;  %2316 = vmatpush2.bf16.msra.mxu1 %v6344_v47  ;;  %v874_v34 = vld [vmem:[#allocation2 + $0x508] sm:$0xff] }
 0x224   :  { %v921_v43 = vld [vmem:[#allocation2 + $0x680] sm:$0xff]  ;;  %v6337_v49 = vcombine.high %v793_v41, %v797_v42  ;;  %2356 = vmatprep.subr.bf16.mxu0 %v6473_v40  ;;  %v6336_v55 = vcombine.low %v793_v41, %v797_v42  ;;  %v6291_v40 = vcombine.high %v746_v30, %v750_v33  ;;  %v6419_v41 = vcombine.high %v874_v34, %v878_v37  ;;  %v738_v42 = vld [vmem:[#allocation2 + $0xc8] sm:$0xff] }
 0x225   :  { %v925_v44 = vld [vmem:[#allocation2 + $0x6a0] sm:$0xff]  ;;  %2357 = vmatpush2.bf16.msra.mxu0 %v6472_v48  ;;  %v870_v47 = vld [vmem:[#allocation2 + $0x4e8] sm:$0xff]  ;;  %v6290_v48 = vcombine.low %v746_v30, %v750_v33 }
 0x226   :  { %v6465_v50 = vcombine.high %v921_v43, %v925_v44  ;;  %v785_v51 = vld [vmem:[#allocation2 + $0x240] sm:$0xff]  ;;  %2317 = vmatprep.subr.bf16.mxu1 %v6337_v49  ;;  %v6464_v56 = vcombine.low %v921_v43, %v925_v44  ;;  %v742_v43 = vld [vmem:[#allocation2 + $0xe8] sm:$0xff]  ;;  %v6418_v49 = vcombine.low %v874_v34, %v878_v37 }
 0x227   :  { %v789_v52 = vld [vmem:[#allocation2 + $0x260] sm:$0xff]  ;;  %2318 = vmatpush2.bf16.msra.mxu1 %v6336_v55  ;;  %v866_v44 = vld [vmem:[#allocation2 + $0x4c8] sm:$0xff] }
 0x228   :  { %v913_v53 = vld [vmem:[#allocation2 + $0x640] sm:$0xff]  ;;  %v6329_v57 = vcombine.high %v785_v51, %v789_v52  ;;  %2358 = vmatprep.subr.bf16.mxu0 %v6465_v50  ;;  %v6328_v63 = vcombine.low %v785_v51, %v789_v52  ;;  %v6283_v50 = vcombine.high %v738_v42, %v742_v43  ;;  %v6411_v51 = vcombine.high %v866_v44, %v870_v47  ;;  %v730_v52 = vld [vmem:[#allocation2 + $0x88] sm:$0xff] }
 0x229   :  { %v917_v54 = vld [vmem:[#allocation2 + $0x660] sm:$0xff]  ;;  %2359 = vmatpush2.bf16.msra.mxu0 %v6464_v56  ;;  %v862_v55 = vld [vmem:[#allocation2 + $0x4a8] sm:$0xff]  ;;  %v6282_v56 = vcombine.low %v738_v42, %v742_v43 }
 0x22a   :  { %v6457_v58 = vcombine.high %v913_v53, %v917_v54  ;;  %v777_v59 = vld [vmem:[#allocation2 + $0x200] sm:$0xff]  ;;  %2319 = vmatprep.subr.bf16.mxu1 %v6329_v57  ;;  %v6456_v0 = vcombine.low %v913_v53, %v917_v54  ;;  %v734_v53 = vld [vmem:[#allocation2 + $0xa8] sm:$0xff]  ;;  %v6410_v57 = vcombine.low %v866_v44, %v870_v47 }
 0x22b   :  { %v781_v60 = vld [vmem:[#allocation2 + $0x220] sm:$0xff]  ;;  %2320 = vmatpush2.bf16.msra.mxu1 %v6328_v63  ;;  %v858_v54 = vld [vmem:[#allocation2 + $0x488] sm:$0xff] }
 0x22c   :  { %v905_v61 = vld [vmem:[#allocation2 + $0x600] sm:$0xff]  ;;  %v6321_v1 = vcombine.high %v777_v59, %v781_v60  ;;  %2360 = vmatprep.subr.bf16.mxu0 %v6457_v58  ;;  %v6320_v10 = vcombine.low %v777_v59, %v781_v60  ;;  %v6275_v58 = vcombine.high %v730_v52, %v734_v53  ;;  %v6403_v59 = vcombine.high %v858_v54, %v862_v55  ;;  %v722_v60 = vld [vmem:[#allocation2 + $0x48] sm:$0xff] }
 0x22d   :  { %v909_v62 = vld [vmem:[#allocation2 + $0x620] sm:$0xff]  ;;  %2361 = vmatpush2.bf16.msra.mxu0 %v6456_v0  ;;  %v854_v63 = vld [vmem:[#allocation2 + $0x468] sm:$0xff]  ;;  %v6274_v0 = vcombine.low %v730_v52, %v734_v53 }
 0x22e   :  { %v6449_v2 = vcombine.high %v905_v61, %v909_v62  ;;  %2321 = vmatprep.subr.bf16.mxu1 %v6321_v1  ;;  %v6448_v11 = vcombine.low %v905_v61, %v909_v62  ;;  %v726_v61 = vld [vmem:[#allocation2 + $0x68] sm:$0xff]  ;;  %v6402_v1 = vcombine.low %v858_v54, %v862_v55 }
 0x22f   :  { %2322 = vmatpush2.bf16.msra.mxu1 %v6320_v10  ;;  %v850_v62 = vld [vmem:[#allocation2 + $0x448] sm:$0xff] }
 0x230   :  { %2362 = vmatprep.subr.bf16.mxu0 %v6449_v2  ;;  %2373 = vmatprep.subr.bf16.mxu1 %v6315_v12  ;;  %v6267_v2 = vcombine.high %v722_v60, %v726_v61  ;;  %v6395_v3 = vcombine.high %v850_v62, %v854_v63  ;;  %v718_v5 = vld [vmem:[#allocation2 + $0x28] sm:$0xff]  ;;  %v6394_v12 = vcombine.low %v850_v62, %v854_v63 }
 0x231   :  { %2363 = vmatpush2.bf16.msra.mxu0 %v6448_v11  ;;  %v842_v8 = vld [vmem:[#allocation2 + $0x408] sm:$0xff]  ;;  %v6266_v11 = vcombine.low %v722_v60, %v726_v61 }
 0x232   :  { %2414 = vmatprep.subr.bf16.mxu0 %v6443_v13  ;;  %2324 = vmatmul.mubr.bf16.vlgmr.msra.gmra.mxu1 %v8159_v16  ;;  %v846_v10 = vld [vmem:[#allocation2 + $0x428] sm:$0xff]  ;;  %v6259_v13 = vcombine.high %v714_v4, %v718_v5 }
 0x233   :  { %2374 = vmatpush1.bf16.msra.mxu1 %v6314_v20  ;;  %2405 = vmatprep.mubr.bf16.mxu1 %v8150_v45  ;;  %v6387_v14 = vcombine.high %v842_v8, %v846_v10  ;;  %v834_v15 = vld [vmem:[#allocation2 + $0x3c8] sm:$0xff] }
 0x234   :  { %2365 = vmatmul.mubr.bf16.vlgmr.msra.gmra.mxu0 %v8164_v19  ;;  %2375 = vmatprep.subr.bf16.mxu1 %v6307_v23  ;;  %v838_v17 = vld [vmem:[#allocation2 + $0x3e8] sm:$0xff]  ;;  %v6386_v23 = vcombine.low %v842_v8, %v846_v10 }
 0x235   :  { %2415 = vmatpush1.bf16.msra.mxu0 %v6442_v21  ;;  %2446 = vmatprep.mubr.bf16.mxu0 %v8152_v46  ;;  %v962_v18 = vld [vmem:[#allocation2 + $0x7c8] sm:$0xff]  ;;  %v6258_v21 = vcombine.low %v714_v4, %v718_v5 }
 0x236   :  { %2416 = vmatprep.subr.bf16.mxu0 %v6435_v25  ;;  %v966_v20 = vld [vmem:[#allocation2 + $0x7e8] sm:$0xff]  ;;  %v6379_v25 = vcombine.high %v834_v15, %v838_v17 }
 0x237   :  { %2376 = vmatpush1.bf16.msra.mxu1 %v6306_v32  ;;  %v6507_v26 = vcombine.high %v962_v18, %v966_v20  ;;  %v826_v31 = vld [vmem:[#allocation2 + $0x388] sm:$0xff] }
 0x238   :  { %2377 = vmatprep.subr.bf16.mxu1 %v6299_v28  ;;  %v830_v35 = vld [vmem:[#allocation2 + $0x3a8] sm:$0xff]  ;;  %v6506_v28 = vcombine.low %v962_v18, %v966_v20 }
 0x239   :  { %2417 = vmatpush1.bf16.msra.mxu0 %v6434_v36  ;;  %v954_v27 = vld [vmem:[#allocation2 + $0x788] sm:$0xff]  ;;  %v6378_v36 = vcombine.low %v834_v15, %v838_v17 }
 0x23a   :  { %2418 = vmatprep.subr.bf16.mxu0 %v6427_v29  ;;  %v958_v32 = vld [vmem:[#allocation2 + $0x7a8] sm:$0xff]  ;;  %v6371_v29 = vcombine.high %v826_v31, %v830_v35 }
 0x23b   :  { %2378 = vmatpush1.bf16.msra.mxu1 %v6298_v38  ;;  %v6499_v30 = vcombine.high %v954_v27, %v958_v32  ;;  %v818_v33 = vld [vmem:[#allocation2 + $0x348] sm:$0xff] }
 0x23c   :  { %2379 = vmatprep.subr.bf16.mxu1 %v6291_v40  ;;  %v822_v34 = vld [vmem:[#allocation2 + $0x368] sm:$0xff]  ;;  %v6498_v40 = vcombine.low %v954_v27, %v958_v32  ;;  %v775_v27 = vld [vmem:[#allocation2 + $0x1f0] sm:$0xff] }
 0x23d   :  { %2419 = vmatpush1.bf16.msra.mxu0 %v6426_v39  ;;  %v946_v37 = vld [vmem:[#allocation2 + $0x748] sm:$0xff]  ;;  %v6370_v39 = vcombine.low %v826_v31, %v830_v35  ;;  %v771_v35 = vld [vmem:[#allocation2 + $0x1d0] sm:$0xff] }
 0x23e   :  { %2420 = vmatprep.subr.bf16.mxu0 %v6419_v41  ;;  %v950_v38 = vld [vmem:[#allocation2 + $0x768] sm:$0xff]  ;;  %v6363_v41 = vcombine.high %v818_v33, %v822_v34  ;;  %v899_v32 = vld [vmem:[#allocation2 + $0x5d0] sm:$0xff] }
 0x23f   :  { %2380 = vmatpush1.bf16.msra.mxu1 %v6290_v48  ;;  %v6491_v42 = vcombine.high %v946_v37, %v950_v38  ;;  %v810_v43 = vld [vmem:[#allocation2 + $0x308] sm:$0xff] }
 0x240   :  { %2381 = vmatprep.subr.bf16.mxu1 %v6283_v50  ;;  %v814_v44 = vld [vmem:[#allocation2 + $0x328] sm:$0xff]  ;;  %v6490_v50 = vcombine.low %v946_v37, %v950_v38  ;;  %v767_v37 = vld [vmem:[#allocation2 + $0x1b0] sm:$0xff] }
 0x241   :  { %2421 = vmatpush1.bf16.msra.mxu0 %v6418_v49  ;;  %v938_v47 = vld [vmem:[#allocation2 + $0x708] sm:$0xff]  ;;  %v6362_v49 = vcombine.low %v818_v33, %v822_v34  ;;  %v763_v34 = vld [vmem:[#allocation2 + $0x190] sm:$0xff] }
 0x242   :  { %2422 = vmatprep.subr.bf16.mxu0 %v6411_v51  ;;  %v942_v48 = vld [vmem:[#allocation2 + $0x728] sm:$0xff]  ;;  %v6355_v51 = vcombine.high %v810_v43, %v814_v44  ;;  %v891_v38 = vld [vmem:[#allocation2 + $0x590] sm:$0xff] }
 0x243   :  { %2382 = vmatpush1.bf16.msra.mxu1 %v6282_v56  ;;  %v6483_v52 = vcombine.high %v938_v47, %v942_v48  ;;  %v802_v53 = vld [vmem:[#allocation2 + $0x2c8] sm:$0xff] }
 0x244   :  { %2383 = vmatprep.subr.bf16.mxu1 %v6275_v58  ;;  %v806_v54 = vld [vmem:[#allocation2 + $0x2e8] sm:$0xff]  ;;  %v6482_v58 = vcombine.low %v938_v47, %v942_v48  ;;  %v759_v47 = vld [vmem:[#allocation2 + $0x170] sm:$0xff] }
 0x245   :  { %2423 = vmatpush1.bf16.msra.mxu0 %v6410_v57  ;;  %v930_v55 = vld [vmem:[#allocation2 + $0x6c8] sm:$0xff]  ;;  %v6354_v57 = vcombine.low %v810_v43, %v814_v44  ;;  %v755_v44 = vld [vmem:[#allocation2 + $0x150] sm:$0xff] }
 0x246   :  { %2424 = vmatprep.subr.bf16.mxu0 %v6403_v59  ;;  %v934_v56 = vld [vmem:[#allocation2 + $0x6e8] sm:$0xff]  ;;  %v6347_v59 = vcombine.high %v802_v53, %v806_v54  ;;  %v883_v48 = vld [vmem:[#allocation2 + $0x550] sm:$0xff] }
 0x247   :  { %2384 = vmatpush1.bf16.msra.mxu1 %v6274_v0  ;;  %v6475_v60 = vcombine.high %v930_v55, %v934_v56  ;;  %v794_v61 = vld [vmem:[#allocation2 + $0x288] sm:$0xff] }
 0x248   :  { %2385 = vmatprep.subr.bf16.mxu1 %v6267_v2  ;;  %v798_v62 = vld [vmem:[#allocation2 + $0x2a8] sm:$0xff]  ;;  %v6474_v2 = vcombine.low %v930_v55, %v934_v56  ;;  %v751_v55 = vld [vmem:[#allocation2 + $0x130] sm:$0xff] }
 0x249   :  { %2425 = vmatpush1.bf16.msra.mxu0 %v6402_v1  ;;  %v922_v63 = vld [vmem:[#allocation2 + $0x688] sm:$0xff]  ;;  %v6346_v1 = vcombine.low %v802_v53, %v806_v54  ;;  %v747_v54 = vld [vmem:[#allocation2 + $0x110] sm:$0xff] }
 0x24a   :  { %2426 = vmatprep.subr.bf16.mxu0 %v6395_v3  ;;  %v926_v0 = vld [vmem:[#allocation2 + $0x6a8] sm:$0xff]  ;;  %v6339_v3 = vcombine.high %v794_v61, %v798_v62  ;;  %v875_v56 = vld [vmem:[#allocation2 + $0x510] sm:$0xff] }
 0x24b   :  { %2386 = vmatpush1.bf16.msra.mxu1 %v6266_v11  ;;  %v6467_v4 = vcombine.high %v922_v63, %v926_v0  ;;  %v786_v5 = vld [vmem:[#allocation2 + $0x248] sm:$0xff] }
 0x24c   :  { %2387 = vmatprep.subr.bf16.mxu1 %v6259_v13  ;;  %v790_v8 = vld [vmem:[#allocation2 + $0x268] sm:$0xff]  ;;  %v6466_v13 = vcombine.low %v922_v63, %v926_v0  ;;  %v743_v63 = vld [vmem:[#allocation2 + $0xf0] sm:$0xff] }
 0x24d   :  { %2427 = vmatpush1.bf16.msra.mxu0 %v6394_v12  ;;  %v914_v10 = vld [vmem:[#allocation2 + $0x648] sm:$0xff]  ;;  %v6338_v12 = vcombine.low %v794_v61, %v798_v62  ;;  %v739_v62 = vld [vmem:[#allocation2 + $0xd0] sm:$0xff] }
 0x24e   :  { %2428 = vmatprep.subr.bf16.mxu0 %v6387_v14  ;;  %v918_v11 = vld [vmem:[#allocation2 + $0x668] sm:$0xff]  ;;  %v6331_v14 = vcombine.high %v786_v5, %v790_v8  ;;  %v867_v0 = vld [vmem:[#allocation2 + $0x4d0] sm:$0xff] }
 0x24f   :  { %2388 = vmatpush1.bf16.msra.mxu1 %v6258_v21  ;;  %v6459_v15 = vcombine.high %v914_v10, %v918_v11  ;;  %v778_v17 = vld [vmem:[#allocation2 + $0x208] sm:$0xff] }
 0x250   :  { %2389 = vmatprep.subr.bf16.mxu1 %v6379_v25  ;;  %v782_v18 = vld [vmem:[#allocation2 + $0x228] sm:$0xff]  ;;  %v6458_v25 = vcombine.low %v914_v10, %v918_v11  ;;  %v735_v10 = vld [vmem:[#allocation2 + $0xb0] sm:$0xff] }
 0x251   :  { %2429 = vmatpush1.bf16.msra.mxu0 %v6386_v23  ;;  %v906_v20 = vld [vmem:[#allocation2 + $0x608] sm:$0xff]  ;;  %v6330_v23 = vcombine.low %v786_v5, %v790_v8  ;;  %v731_v8 = vld [vmem:[#allocation2 + $0x90] sm:$0xff] }
 0x252   :  { %2430 = vmatprep.subr.bf16.mxu0 %v6507_v26  ;;  %v910_v21 = vld [vmem:[#allocation2 + $0x628] sm:$0xff]  ;;  %v6323_v26 = vcombine.high %v778_v17, %v782_v18  ;;  %v859_v11 = vld [vmem:[#allocation2 + $0x490] sm:$0xff] }
 0x253   :  { %2390 = vmatpush2.bf16.msra.mxu1 %v6378_v36  ;;  %v6451_v31 = vcombine.high %v906_v20, %v910_v21  ;;  %v903_v36 = vld [vmem:[#allocation2 + $0x5f0] sm:$0xff] }
 0x254   :  { %2391 = vmatprep.subr.bf16.mxu1 %v6371_v29  ;;  %v6450_v29 = vcombine.low %v906_v20, %v910_v21  ;;  %v6445_v33 = vcombine.high %v899_v32, %v903_v36  ;;  %v727_v20 = vld [vmem:[#allocation2 + $0x70] sm:$0xff] }
 0x255   :  { %2431 = vmatpush2.bf16.msra.mxu0 %v6506_v28  ;;  %v6322_v28 = vcombine.low %v778_v17, %v782_v18  ;;  %v723_v18 = vld [vmem:[#allocation2 + $0x50] sm:$0xff] }
 0x256   :  { %2432 = vmatprep.subr.bf16.mxu0 %v6499_v30  ;;  %v6317_v30 = vcombine.high %v771_v35, %v775_v27  ;;  %v851_v21 = vld [vmem:[#allocation2 + $0x450] sm:$0xff] }
 0x257   :  { %2392 = vmatpush2.bf16.msra.mxu1 %v6370_v39  ;;  %v895_v39 = vld [vmem:[#allocation2 + $0x5b0] sm:$0xff] }
 0x258   :  { %2393 = vmatprep.subr.bf16.mxu1 %v6363_v41  ;;  %v6444_v41 = vcombine.low %v899_v32, %v903_v36  ;;  %v6437_v43 = vcombine.high %v891_v38, %v895_v39  ;;  %v719_v32 = vld [vmem:[#allocation2 + $0x30] sm:$0xff] }
 0x259   :  { %2433 = vmatpush2.bf16.msra.mxu0 %v6498_v40  ;;  %v6316_v40 = vcombine.low %v771_v35, %v775_v27  ;;  %v715_v27 = vld [vmem:[#allocation2 + $0x10] sm:$0xff] }
 0x25a   :  { %2434 = vmatprep.subr.bf16.mxu0 %v6491_v42  ;;  %v6309_v42 = vcombine.high %v763_v34, %v767_v37  ;;  %v843_v36 = vld [vmem:[#allocation2 + $0x410] sm:$0xff] }
 0x25b   :  { %2394 = vmatpush2.bf16.msra.mxu1 %v6362_v49  ;;  %v887_v49 = vld [vmem:[#allocation2 + $0x570] sm:$0xff] }
 0x25c   :  { %2395 = vmatprep.subr.bf16.mxu1 %v6355_v51  ;;  %v6436_v51 = vcombine.low %v891_v38, %v895_v39  ;;  %v6429_v53 = vcombine.high %v883_v48, %v887_v49  ;;  %v839_v38 = vld [vmem:[#allocation2 + $0x3f0] sm:$0xff] }
 0x25d   :  { %2435 = vmatpush2.bf16.msra.mxu0 %v6490_v50  ;;  %v6308_v50 = vcombine.low %v763_v34, %v767_v37  ;;  %v835_v37 = vld [vmem:[#allocation2 + $0x3d0] sm:$0xff] }
 0x25e   :  { %2436 = vmatprep.subr.bf16.mxu0 %v6483_v52  ;;  %v6301_v52 = vcombine.high %v755_v44, %v759_v47  ;;  %v963_v39 = vld [vmem:[#allocation2 + $0x7d0] sm:$0xff] }
 0x25f   :  { %2396 = vmatpush2.bf16.msra.mxu1 %v6354_v57  ;;  %v879_v57 = vld [vmem:[#allocation2 + $0x530] sm:$0xff] }
 0x260   :  { %2397 = vmatprep.subr.bf16.mxu1 %v6347_v59  ;;  %v6428_v59 = vcombine.low %v883_v48, %v887_v49  ;;  %v6421_v61 = vcombine.high %v875_v56, %v879_v57  ;;  %v831_v48 = vld [vmem:[#allocation2 + $0x3b0] sm:$0xff] }
 0x261   :  { %2437 = vmatpush2.bf16.msra.mxu0 %v6482_v58  ;;  %v6300_v58 = vcombine.low %v755_v44, %v759_v47  ;;  %v827_v47 = vld [vmem:[#allocation2 + $0x390] sm:$0xff] }
 0x262   :  { %2438 = vmatprep.subr.bf16.mxu0 %v6475_v60  ;;  %v6293_v60 = vcombine.high %v747_v54, %v751_v55  ;;  %v955_v49 = vld [vmem:[#allocation2 + $0x790] sm:$0xff] }
 0x263   :  { %2398 = vmatpush2.bf16.msra.mxu1 %v6346_v1  ;;  %v871_v1 = vld [vmem:[#allocation2 + $0x4f0] sm:$0xff] }
 0x264   :  { %2399 = vmatprep.subr.bf16.mxu1 %v6339_v3  ;;  %v6420_v3 = vcombine.low %v875_v56, %v879_v57  ;;  %v6413_v5 = vcombine.high %v867_v0, %v871_v1  ;;  %v823_v56 = vld [vmem:[#allocation2 + $0x370] sm:$0xff] }
 0x265   :  { %2439 = vmatpush2.bf16.msra.mxu0 %v6474_v2  ;;  %v6292_v2 = vcombine.low %v747_v54, %v751_v55  ;;  %v819_v55 = vld [vmem:[#allocation2 + $0x350] sm:$0xff] }
 0x266   :  { %2440 = vmatprep.subr.bf16.mxu0 %v6467_v4  ;;  %v6285_v4 = vcombine.high %v739_v62, %v743_v63  ;;  %v947_v57 = vld [vmem:[#allocation2 + $0x750] sm:$0xff] }
 0x267   :  { %2400 = vmatpush2.bf16.msra.mxu1 %v6338_v12  ;;  %v863_v12 = vld [vmem:[#allocation2 + $0x4b0] sm:$0xff] }
 0x268   :  { %2401 = vmatprep.subr.bf16.mxu1 %v6331_v14  ;;  %v6412_v14 = vcombine.low %v867_v0, %v871_v1  ;;  %v6405_v17 = vcombine.high %v859_v11, %v863_v12  ;;  %v815_v0 = vld [vmem:[#allocation2 + $0x330] sm:$0xff] }
 0x269   :  { %2441 = vmatpush2.bf16.msra.mxu0 %v6466_v13  ;;  %v6284_v13 = vcombine.low %v739_v62, %v743_v63  ;;  %v811_v63 = vld [vmem:[#allocation2 + $0x310] sm:$0xff] }
 0x26a   :  { %2442 = vmatprep.subr.bf16.mxu0 %v6459_v15  ;;  %v6277_v15 = vcombine.high %v731_v8, %v735_v10  ;;  %v939_v1 = vld [vmem:[#allocation2 + $0x710] sm:$0xff] }
 0x26b   :  { %2402 = vmatpush2.bf16.msra.mxu1 %v6330_v23  ;;  %v855_v23 = vld [vmem:[#allocation2 + $0x470] sm:$0xff] }
 0x26c   :  { %2403 = vmatprep.subr.bf16.mxu1 %v6323_v26  ;;  %v6404_v26 = vcombine.low %v859_v11, %v863_v12  ;;  %v6397_v35 = vcombine.high %v851_v21, %v855_v23  ;;  %v807_v11 = vld [vmem:[#allocation2 + $0x2f0] sm:$0xff] }
 0x26d   :  { %2443 = vmatpush2.bf16.msra.mxu0 %v6458_v25  ;;  %v6276_v25 = vcombine.low %v731_v8, %v735_v10  ;;  %v803_v10 = vld [vmem:[#allocation2 + $0x2d0] sm:$0xff] }
 0x26e   :  { %2444 = vmatprep.subr.bf16.mxu0 %v6451_v31  ;;  %v6269_v31 = vcombine.high %v723_v18, %v727_v20  ;;  %v931_v12 = vld [vmem:[#allocation2 + $0x6d0] sm:$0xff] }
 0x26f   :  { %2404 = vmatpush2.bf16.msra.mxu1 %v6322_v28  ;;  %v847_v28 = vld [vmem:[#allocation2 + $0x430] sm:$0xff] }
 0x270   :  { %2455 = vmatprep.subr.bf16.mxu1 %v6317_v30  ;;  %v6396_v30 = vcombine.low %v851_v21, %v855_v23  ;;  %v6389_v34 = vcombine.high %v843_v36, %v847_v28  ;;  %v799_v21 = vld [vmem:[#allocation2 + $0x2b0] sm:$0xff] }
 0x271   :  { %2445 = vmatpush2.bf16.msra.mxu0 %v6450_v29  ;;  %v6268_v29 = vcombine.low %v723_v18, %v727_v20  ;;  %v795_v20 = vld [vmem:[#allocation2 + $0x290] sm:$0xff] }
 0x272   :  { %2496 = vmatprep.subr.bf16.mxu0 %v6445_v33  ;;  %2406 = vmatmul.mubr.bf16.vlgmr.msra.gmra.mxu1 %v8159_v16  ;;  %v6261_v33 = vcombine.high %v715_v27, %v719_v32  ;;  %v923_v23 = vld [vmem:[#allocation2 + $0x690] sm:$0xff] }
 0x273   :  { %2456 = vmatpush1.bf16.msra.mxu1 %v6316_v40  ;;  %2487 = vmatprep.mubr.bf16.mxu1 %v8150_v45  ;;  %v967_v40 = vld [vmem:[#allocation2 + $0x7f0] sm:$0xff] }
 0x274   :  { %2447 = vmatmul.mubr.bf16.vlgmr.msra.gmra.mxu0 %v8164_v19  ;;  %2457 = vmatprep.subr.bf16.mxu1 %v6309_v42  ;;  %v6388_v42 = vcombine.low %v843_v36, %v847_v28  ;;  %v6509_v44 = vcombine.high %v963_v39, %v967_v40  ;;  %v791_v36 = vld [vmem:[#allocation2 + $0x270] sm:$0xff] }
 0x275   :  { %2497 = vmatpush1.bf16.msra.mxu0 %v6444_v41  ;;  %2528 = vmatprep.mubr.bf16.mxu0 %v8152_v46  ;;  %v6260_v41 = vcombine.low %v715_v27, %v719_v32  ;;  %v787_v32 = vld [vmem:[#allocation2 + $0x250] sm:$0xff] }
 0x276   :  { %2498 = vmatprep.subr.bf16.mxu0 %v6437_v43  ;;  %v6381_v43 = vcombine.high %v835_v37, %v839_v38  ;;  %v915_v28 = vld [vmem:[#allocation2 + $0x650] sm:$0xff] }
 0x277   :  { %2458 = vmatpush1.bf16.msra.mxu1 %v6308_v50  ;;  %v959_v50 = vld [vmem:[#allocation2 + $0x7b0] sm:$0xff] }
 0x278   :  { %2459 = vmatprep.subr.bf16.mxu1 %v6301_v52  ;;  %v6508_v52 = vcombine.low %v963_v39, %v967_v40  ;;  %v6501_v54 = vcombine.high %v955_v49, %v959_v50  ;;  %v783_v39 = vld [vmem:[#allocation2 + $0x230] sm:$0xff] }
 0x279   :  { %2499 = vmatpush1.bf16.msra.mxu0 %v6436_v51  ;;  %v6380_v51 = vcombine.low %v835_v37, %v839_v38  ;;  %v779_v38 = vld [vmem:[#allocation2 + $0x210] sm:$0xff] }
 0x27a   :  { %2500 = vmatprep.subr.bf16.mxu0 %v6429_v53  ;;  %v6373_v53 = vcombine.high %v827_v47, %v831_v48  ;;  %v907_v40 = vld [vmem:[#allocation2 + $0x610] sm:$0xff] }
 0x27b   :  { %2460 = vmatpush1.bf16.msra.mxu1 %v6300_v58  ;;  %v951_v58 = vld [vmem:[#allocation2 + $0x770] sm:$0xff] }
 0x27c   :  { %2461 = vmatprep.subr.bf16.mxu1 %v6293_v60  ;;  %v6500_v60 = vcombine.low %v955_v49, %v959_v50  ;;  %v6493_v62 = vcombine.high %v947_v57, %v951_v58  ;;  %v776_v49 = vld [vmem:[#allocation2 + $0x1f8] sm:$0xff] }
 0x27d   :  { %2501 = vmatpush1.bf16.msra.mxu0 %v6428_v59  ;;  %v6372_v59 = vcombine.low %v827_v47, %v831_v48  ;;  %v772_v48 = vld [vmem:[#allocation2 + $0x1d8] sm:$0xff] }
 0x27e   :  { %2502 = vmatprep.subr.bf16.mxu0 %v6421_v61  ;;  %v6365_v61 = vcombine.high %v819_v55, %v823_v56  ;;  %v900_v50 = vld [vmem:[#allocation2 + $0x5d8] sm:$0xff] }
 0x27f   :  { %2462 = vmatpush1.bf16.msra.mxu1 %v6292_v2  ;;  %v943_v2 = vld [vmem:[#allocation2 + $0x730] sm:$0xff] }
 0x280   :  { %2463 = vmatprep.subr.bf16.mxu1 %v6285_v4  ;;  %v6492_v4 = vcombine.low %v947_v57, %v951_v58  ;;  %v6485_v8 = vcombine.high %v939_v1, %v943_v2  ;;  %v768_v57 = vld [vmem:[#allocation2 + $0x1b8] sm:$0xff] }
 0x281   :  { %2503 = vmatpush1.bf16.msra.mxu0 %v6420_v3  ;;  %v6364_v3 = vcombine.low %v819_v55, %v823_v56  ;;  %v764_v56 = vld [vmem:[#allocation2 + $0x198] sm:$0xff] }
 0x282   :  { %2504 = vmatprep.subr.bf16.mxu0 %v6413_v5  ;;  %v6357_v5 = vcombine.high %v811_v63, %v815_v0  ;;  %v892_v58 = vld [vmem:[#allocation2 + $0x598] sm:$0xff] }
 0x283   :  { %2464 = vmatpush1.bf16.msra.mxu1 %v6284_v13  ;;  %v935_v13 = vld [vmem:[#allocation2 + $0x6f0] sm:$0xff] }
 0x284   :  { %2465 = vmatprep.subr.bf16.mxu1 %v6277_v15  ;;  %v6484_v15 = vcombine.low %v939_v1, %v943_v2  ;;  %v6477_v18 = vcombine.high %v931_v12, %v935_v13  ;;  %v760_v1 = vld [vmem:[#allocation2 + $0x178] sm:$0xff] }
 0x285   :  { %2505 = vmatpush1.bf16.msra.mxu0 %v6412_v14  ;;  %v6356_v14 = vcombine.low %v811_v63, %v815_v0  ;;  %v756_v0 = vld [vmem:[#allocation2 + $0x158] sm:$0xff] }
 0x286   :  { %2506 = vmatprep.subr.bf16.mxu0 %v6405_v17  ;;  %v6349_v17 = vcombine.high %v803_v10, %v807_v11  ;;  %v884_v2 = vld [vmem:[#allocation2 + $0x558] sm:$0xff] }
 0x287   :  { %2466 = vmatpush1.bf16.msra.mxu1 %v6276_v25  ;;  %v927_v25 = vld [vmem:[#allocation2 + $0x6b0] sm:$0xff] }
 0x288   :  { %2467 = vmatprep.subr.bf16.mxu1 %v6269_v31  ;;  %v6476_v31 = vcombine.low %v931_v12, %v935_v13  ;;  %v6469_v27 = vcombine.high %v923_v23, %v927_v25  ;;  %v752_v12 = vld [vmem:[#allocation2 + $0x138] sm:$0xff] }
 0x289   :  { %2507 = vmatpush1.bf16.msra.mxu0 %v6404_v26  ;;  %v6348_v26 = vcombine.low %v803_v10, %v807_v11  ;;  %v748_v11 = vld [vmem:[#allocation2 + $0x118] sm:$0xff] }
 0x28a   :  { %2508 = vmatprep.subr.bf16.mxu0 %v6397_v35  ;;  %v6341_v35 = vcombine.high %v795_v20, %v799_v21  ;;  %v876_v13 = vld [vmem:[#allocation2 + $0x518] sm:$0xff] }
 0x28b   :  { %2468 = vmatpush1.bf16.msra.mxu1 %v6268_v29  ;;  %v919_v29 = vld [vmem:[#allocation2 + $0x670] sm:$0xff] }
 0x28c   :  { %2469 = vmatprep.subr.bf16.mxu1 %v6261_v33  ;;  %v6468_v33 = vcombine.low %v923_v23, %v927_v25  ;;  %v6461_v37 = vcombine.high %v915_v28, %v919_v29  ;;  %v744_v23 = vld [vmem:[#allocation2 + $0xf8] sm:$0xff] }
 0x28d   :  { %2509 = vmatpush1.bf16.msra.mxu0 %v6396_v30  ;;  %v6340_v30 = vcombine.low %v795_v20, %v799_v21  ;;  %v740_v21 = vld [vmem:[#allocation2 + $0xd8] sm:$0xff] }
 0x28e   :  { %2510 = vmatprep.subr.bf16.mxu0 %v6389_v34  ;;  %v6333_v34 = vcombine.high %v787_v32, %v791_v36  ;;  %v868_v25 = vld [vmem:[#allocation2 + $0x4d8] sm:$0xff] }
 0x28f   :  { %2470 = vmatpush1.bf16.msra.mxu1 %v6260_v41  ;;  %v911_v41 = vld [vmem:[#allocation2 + $0x630] sm:$0xff] }
 0x290   :  { %2471 = vmatprep.subr.bf16.mxu1 %v6381_v43  ;;  %v6460_v43 = vcombine.low %v915_v28, %v919_v29  ;;  %v6453_v47 = vcombine.high %v907_v40, %v911_v41  ;;  %v864_v28 = vld [vmem:[#allocation2 + $0x4b8] sm:$0xff]  ;;  %v6286_v29 = vcombine.low %v740_v21, %v744_v23 }
 0x291   :  { %2511 = vmatpush1.bf16.msra.mxu0 %v6388_v42  ;;  %v6332_v42 = vcombine.low %v787_v32, %v791_v36  ;;  %v736_v32 = vld [vmem:[#allocation2 + $0xb8] sm:$0xff] }
 0x292   :  { %2512 = vmatprep.subr.bf16.mxu0 %v6509_v44  ;;  %v6325_v44 = vcombine.high %v779_v38, %v783_v39  ;;  %v860_v36 = vld [vmem:[#allocation2 + $0x498] sm:$0xff] }
 0x293   :  { %2472 = vmatpush2.bf16.msra.mxu1 %v6380_v51  ;;  %v904_v51 = vld [vmem:[#allocation2 + $0x5f8] sm:$0xff] }
 0x294   :  { %2473 = vmatprep.subr.bf16.mxu1 %v6373_v53  ;;  %v6452_v53 = vcombine.low %v907_v40, %v911_v41  ;;  %v6447_v55 = vcombine.high %v900_v50, %v904_v51  ;;  %v856_v40 = vld [vmem:[#allocation2 + $0x478] sm:$0xff] }
 0x295   :  { %2513 = vmatpush2.bf16.msra.mxu0 %v6508_v52  ;;  %v6324_v52 = vcombine.low %v779_v38, %v783_v39  ;;  %v728_v38 = vld [vmem:[#allocation2 + $0x78] sm:$0xff] }
 0x296   :  { %2514 = vmatprep.subr.bf16.mxu0 %v6501_v54  ;;  %v6319_v54 = vcombine.high %v772_v48, %v776_v49  ;;  %v852_v39 = vld [vmem:[#allocation2 + $0x458] sm:$0xff] }
 0x297   :  { %2474 = vmatpush2.bf16.msra.mxu1 %v6372_v59  ;;  %v896_v59 = vld [vmem:[#allocation2 + $0x5b8] sm:$0xff] }
 0x298   :  { %2475 = vmatprep.subr.bf16.mxu1 %v6365_v61  ;;  %v6446_v61 = vcombine.low %v900_v50, %v904_v51  ;;  %v6439_v63 = vcombine.high %v892_v58, %v896_v59  ;;  %v848_v50 = vld [vmem:[#allocation2 + $0x438] sm:$0xff] }
 0x299   :  { %2515 = vmatpush2.bf16.msra.mxu0 %v6500_v60  ;;  %v6318_v60 = vcombine.low %v772_v48, %v776_v49  ;;  %v720_v48 = vld [vmem:[#allocation2 + $0x38] sm:$0xff] }
 0x29a   :  { %2516 = vmatprep.subr.bf16.mxu0 %v6493_v62  ;;  %v6311_v62 = vcombine.high %v764_v56, %v768_v57  ;;  %v844_v49 = vld [vmem:[#allocation2 + $0x418] sm:$0xff] }
 0x29b   :  { %2476 = vmatpush2.bf16.msra.mxu1 %v6364_v3  ;;  %v888_v3 = vld [vmem:[#allocation2 + $0x578] sm:$0xff] }
 0x29c   :  { %2477 = vmatprep.subr.bf16.mxu1 %v6357_v5  ;;  %v6438_v5 = vcombine.low %v892_v58, %v896_v59  ;;  %v6431_v10 = vcombine.high %v884_v2, %v888_v3  ;;  %v968_v58 = vld [vmem:[#allocation2 + $0x7f8] sm:$0xff] }
 0x29d   :  { %2517 = vmatpush2.bf16.msra.mxu0 %v6492_v4  ;;  %v6310_v4 = vcombine.low %v764_v56, %v768_v57  ;;  %v840_v56 = vld [vmem:[#allocation2 + $0x3f8] sm:$0xff] }
 0x29e   :  { %2518 = vmatprep.subr.bf16.mxu0 %v6485_v8  ;;  %v6303_v8 = vcombine.high %v756_v0, %v760_v1  ;;  %v964_v57 = vld [vmem:[#allocation2 + $0x7d8] sm:$0xff] }
 0x29f   :  { %2478 = vmatpush2.bf16.msra.mxu1 %v6356_v14  ;;  %v880_v14 = vld [vmem:[#allocation2 + $0x538] sm:$0xff] }
 0x2a0   :  { %2479 = vmatprep.subr.bf16.mxu1 %v6349_v17  ;;  %v6430_v17 = vcombine.low %v884_v2, %v888_v3  ;;  %v6423_v20 = vcombine.high %v876_v13, %v880_v14  ;;  %v960_v2 = vld [vmem:[#allocation2 + $0x7b8] sm:$0xff] }
 0x2a1   :  { %2519 = vmatpush2.bf16.msra.mxu0 %v6484_v15  ;;  %v6302_v15 = vcombine.low %v756_v0, %v760_v1  ;;  %v832_v0 = vld [vmem:[#allocation2 + $0x3b8] sm:$0xff] }
 0x2a2   :  { %2520 = vmatprep.subr.bf16.mxu0 %v6477_v18  ;;  %v6295_v18 = vcombine.high %v748_v11, %v752_v12  ;;  %v956_v1 = vld [vmem:[#allocation2 + $0x798] sm:$0xff] }
 0x2a3   :  { %2480 = vmatpush2.bf16.msra.mxu1 %v6348_v26  ;;  %v872_v26 = vld [vmem:[#allocation2 + $0x4f8] sm:$0xff] }
 0x2a4   :  { %2481 = vmatprep.subr.bf16.mxu1 %v6341_v35  ;;  %v6287_v35 = vcombine.high %v740_v21, %v744_v23  ;;  %v816_v21 = vld [vmem:[#allocation2 + $0x338] sm:$0xff] }
 0x2a5   :  { %2521 = vmatpush2.bf16.msra.mxu0 %v6476_v31  ;;  %v6294_v31 = vcombine.low %v748_v11, %v752_v12  ;;  %v824_v11 = vld [vmem:[#allocation2 + $0x378] sm:$0xff] }
 0x2a6   :  { %2522 = vmatprep.subr.bf16.mxu0 %v6469_v27  ;;  %v732_v27 = vld [vmem:[#allocation2 + $0x98] sm:$0xff] }
 0x2a7   :  { %2482 = vmatpush2.bf16.msra.mxu1 %v6340_v30  ;;  %v6414_v30 = vcombine.low %v868_v25, %v872_v26  ;;  %v6278_v41 = vcombine.low %v732_v27, %v736_v32  ;;  %v948_v12 = vld [vmem:[#allocation2 + $0x758] sm:$0xff] }
 0x2a8   :  { %2483 = vmatprep.subr.bf16.mxu1 %v6333_v34  ;;  %v6407_v34 = vcombine.high %v860_v36, %v864_v28  ;;  %v940_v23 = vld [vmem:[#allocation2 + $0x718] sm:$0xff] }
 0x2a9   :  { %2523 = vmatpush2.bf16.msra.mxu0 %v6468_v33  ;;  %v6279_v33 = vcombine.high %v732_v27, %v736_v32  ;;  %v808_v27 = vld [vmem:[#allocation2 + $0x2f8] sm:$0xff] }
 0x2aa   :  { %2524 = vmatprep.subr.bf16.mxu0 %v6461_v37  ;;  %v724_v37 = vld [vmem:[#allocation2 + $0x58] sm:$0xff] }
 0x2ab   :  { %2484 = vmatpush2.bf16.msra.mxu1 %v6332_v42  ;;  %v6406_v42 = vcombine.low %v860_v36, %v864_v28  ;;  %v6270_v51 = vcombine.low %v724_v37, %v728_v38  ;;  %v932_v32 = vld [vmem:[#allocation2 + $0x6d8] sm:$0xff] }
 0x2ac   :  { %2485 = vmatprep.subr.bf16.mxu1 %v6325_v44  ;;  %v6399_v44 = vcombine.high %v852_v39, %v856_v40  ;;  %v936_v36 = vld [vmem:[#allocation2 + $0x6f8] sm:$0xff] }
 0x2ad   :  { %2525 = vmatpush2.bf16.msra.mxu0 %v6460_v43  ;;  %v6271_v43 = vcombine.high %v724_v37, %v728_v38  ;;  %v800_v37 = vld [vmem:[#allocation2 + $0x2b8] sm:$0xff] }
 0x2ae   :  { %2526 = vmatprep.subr.bf16.mxu0 %v6453_v47  ;;  %v716_v47 = vld [vmem:[#allocation2 + $0x18] sm:$0xff] }
 0x2af   :  { %2486 = vmatpush2.bf16.msra.mxu1 %v6324_v52  ;;  %v6398_v52 = vcombine.low %v852_v39, %v856_v40  ;;  %v6262_v59 = vcombine.low %v716_v47, %v720_v48  ;;  %v924_v38 = vld [vmem:[#allocation2 + $0x698] sm:$0xff] }
 0x2b0   :  { %2537 = vmatprep.subr.bf16.mxu1 %v6319_v54  ;;  %v6391_v54 = vcombine.high %v844_v49, %v848_v50  ;;  %v928_v39 = vld [vmem:[#allocation2 + $0x6b8] sm:$0xff] }
 0x2b1   :  { %2527 = vmatpush2.bf16.msra.mxu0 %v6452_v53  ;;  %v6263_v53 = vcombine.high %v716_v47, %v720_v48  ;;  %v792_v47 = vld [vmem:[#allocation2 + $0x278] sm:$0xff] }
 0x2b2   :  { %2578 = vmatprep.subr.bf16.mxu0 %v6447_v55  ;;  %2488 = vmatmul.mubr.bf16.vlgmr.msra.gmra.mxu1 %v8159_v16  ;;  %v836_v55 = vld [vmem:[#allocation2 + $0x3d8] sm:$0xff] }
 0x2b3   :  { %2538 = vmatpush1.bf16.msra.mxu1 %v6318_v60  ;;  %2569 = vmatprep.mubr.bf16.mxu1 %v8150_v45  ;;  %v6422_v45 = vcombine.low %v876_v13, %v880_v14  ;;  %v6390_v60 = vcombine.low %v844_v49, %v848_v50  ;;  %v6382_v3 = vcombine.low %v836_v55, %v840_v56  ;;  %v952_v13 = vld [vmem:[#allocation2 + $0x778] sm:$0xff] }
 0x2b4   :  { %2529 = vmatmul.mubr.bf16.vlgmr.msra.gmra.mxu0 %v8164_v19  ;;  %2539 = vmatprep.subr.bf16.mxu1 %v6311_v62  ;;  %v6511_v62 = vcombine.high %v964_v57, %v968_v58  ;;  %v916_v48 = vld [vmem:[#allocation2 + $0x658] sm:$0xff] }
 0x2b5   :  { %2579 = vmatpush1.bf16.msra.mxu0 %v6446_v61  ;;  %2610 = vmatprep.mubr.bf16.mxu0 %v8152_v46  ;;  %v6415_v46 = vcombine.high %v868_v25, %v872_v26  ;;  %v6383_v61 = vcombine.high %v836_v55, %v840_v56  ;;  %v944_v25 = vld [vmem:[#allocation2 + $0x738] sm:$0xff] }
 0x2b6   :  { %2580 = vmatprep.subr.bf16.mxu0 %v6439_v63  ;;  %v828_v63 = vld [vmem:[#allocation2 + $0x398] sm:$0xff] }
 0x2b7   :  { %2540 = vmatpush1.bf16.msra.mxu1 %v6310_v4  ;;  %v6510_v4 = vcombine.low %v964_v57, %v968_v58  ;;  %v6374_v14 = vcombine.low %v828_v63, %v832_v0  ;;  %v920_v49 = vld [vmem:[#allocation2 + $0x678] sm:$0xff] }
 0x2b8   :  { %2541 = vmatprep.subr.bf16.mxu1 %v6303_v8  ;;  %v6503_v8 = vcombine.high %v956_v1, %v960_v2  ;;  %v784_v55 = vld [vmem:[#allocation2 + $0x238] sm:$0xff] }
 0x2b9   :  { %2581 = vmatpush1.bf16.msra.mxu0 %v6438_v5  ;;  %v6375_v5 = vcombine.high %v828_v63, %v832_v0  ;;  %v908_v56 = vld [vmem:[#allocation2 + $0x618] sm:$0xff] }
 0x2ba   :  { %2582 = vmatprep.subr.bf16.mxu0 %v6431_v10  ;;  %v820_v10 = vld [vmem:[#allocation2 + $0x358] sm:$0xff] }
 0x2bb   :  { %2542 = vmatpush1.bf16.msra.mxu1 %v6302_v15  ;;  %v6502_v15 = vcombine.low %v956_v1, %v960_v2  ;;  %v6366_v26 = vcombine.low %v820_v10, %v824_v11  ;;  %v912_v57 = vld [vmem:[#allocation2 + $0x638] sm:$0xff] }
 0x2bc   :  { %2543 = vmatprep.subr.bf16.mxu1 %v6295_v18  ;;  %v6495_v18 = vcombine.high %v948_v12, %v952_v13  ;;  %v6454_v63 = vcombine.low %v908_v56, %v912_v57  ;;  %v969_v0 = vld [vmem:[#allocation14] sm:$0xff] }
 0x2bd   :  { %2583 = vmatpush1.bf16.msra.mxu0 %v6430_v17  ;;  %v6367_v17 = vcombine.high %v820_v10, %v824_v11  ;;  %v974_v1 = vrot.slane %v969_v0, %v8121_v7  ;;  %v978_v2 = vrot.slane %v969_v0, %v8124_v9 }
 0x2be   :  { %2584 = vmatprep.subr.bf16.mxu0 %v6423_v20  ;;  %v812_v20 = vld [vmem:[#allocation2 + $0x318] sm:$0xff] }
 0x2bf   :  { %2544 = vmatpush1.bf16.msra.mxu1 %v6294_v31  ;;  %v6494_v31 = vcombine.low %v948_v12, %v952_v13  ;;  %v6358_v28 = vcombine.low %v812_v20, %v816_v21 }
 0x2c0   :  { %2545 = vmatprep.subr.bf16.mxu1 %v6287_v35  ;;  %v6487_v35 = vcombine.high %v940_v23, %v944_v25 }
 0x2c1   :  { %2585 = vmatpush1.bf16.msra.mxu0 %v6422_v45  ;;  %v6359_v45 = vcombine.high %v812_v20, %v816_v21 }
 0x2c2   :  { %2586 = vmatprep.subr.bf16.mxu0 %v6415_v46  ;;  %v804_v46 = vld [vmem:[#allocation2 + $0x2d8] sm:$0xff] }
 0x2c3   :  { %2546 = vmatpush1.bf16.msra.mxu1 %v6286_v29  ;;  %v6486_v29 = vcombine.low %v940_v23, %v944_v25  ;;  %v6350_v40 = vcombine.low %v804_v46, %v808_v27  ;;  %v982_v23 = vrot.slane %v969_v0, %v8135_v22 }
 0x2c4   :  { %2547 = vmatprep.subr.bf16.mxu1 %v6279_v33  ;;  %v6479_v33 = vcombine.high %v932_v32, %v936_v36 }
 0x2c5   :  { %2587 = vmatpush1.bf16.msra.mxu0 %v6414_v30  ;;  %v6351_v30 = vcombine.high %v804_v46, %v808_v27 }
 0x2c6   :  { %2588 = vmatprep.subr.bf16.mxu0 %v6407_v34  ;;  %v796_v34 = vld [vmem:[#allocation2 + $0x298] sm:$0xff] }
 0x2c7   :  { %2548 = vmatpush1.bf16.msra.mxu1 %v6278_v41  ;;  %v6478_v41 = vcombine.low %v932_v32, %v936_v36  ;;  %v6342_v50 = vcombine.low %v796_v34, %v800_v37 }
 0x2c8   :  { %2549 = vmatprep.subr.bf16.mxu1 %v6271_v43  ;;  %v6471_v43 = vcombine.high %v924_v38, %v928_v39 }
 0x2c9   :  { %2589 = vmatpush1.bf16.msra.mxu0 %v6406_v42  ;;  %v6343_v42 = vcombine.high %v796_v34, %v800_v37  ;;  %v989_v34 = vsub.s32 4, %v8118_v6  ;;  %v993_v37 = vsub.s32 5, %v8118_v6 }
 0x2ca   :  { %2590 = vmatprep.subr.bf16.mxu0 %v6399_v44  ;;  %v788_v44 = vld [vmem:[#allocation2 + $0x258] sm:$0xff] }
 0x2cb   :  { %2550 = vmatpush1.bf16.msra.mxu1 %v6270_v51  ;;  %v6470_v51 = vcombine.low %v924_v38, %v928_v39  ;;  %v6334_v58 = vcombine.low %v788_v44, %v792_v47  ;;  %v990_v38 = vrot.slane %v969_v0, %v989_v34  ;;  %v994_v39 = vrot.slane %v969_v0, %v993_v37 }
 0x2cc   :  { %2551 = vmatprep.subr.bf16.mxu1 %v6263_v53  ;;  %v6463_v53 = vcombine.high %v916_v48, %v920_v49 }
 0x2cd   :  { %2591 = vmatpush1.bf16.msra.mxu0 %v6398_v52  ;;  %v6335_v52 = vcombine.high %v788_v44, %v792_v47 }
 0x2ce   :  { %2592 = vmatprep.subr.bf16.mxu0 %v6391_v54  ;;  %v780_v54 = vld [vmem:[#allocation2 + $0x218] sm:$0xff] }
 0x2cf   :  { %2552 = vmatpush1.bf16.msra.mxu1 %v6262_v59  ;;  %v6462_v59 = vcombine.low %v916_v48, %v920_v49 }
 0x2d0   :  { %2553 = vmatprep.subr.bf16.mxu1 %v6383_v61  ;;  %v6455_v61 = vcombine.high %v908_v56, %v912_v57  ;;  %v997_v56 = vsub.s32 6, %v8118_v6  ;;  %v1001_v57 = vsub.s32 7, %v8118_v6 }
 0x2d1   :  { %2593 = vmatpush1.bf16.msra.mxu0 %v6390_v60  ;;  %v6327_v60 = vcombine.high %v780_v54, %v784_v55 }
 0x2d2   :  { %2594 = vmatprep.subr.bf16.mxu0 %v6511_v62  ;;  %v6326_v62 = vcombine.low %v780_v54, %v784_v55 }
 0x2d3   :  { %2554 = vmatpush2.bf16.msra.mxu1 %v6382_v3 }
 0x2d4   :  { %2555 = vmatprep.subr.bf16.mxu1 %v6375_v5 }
 0x2d5   :  { %2595 = vmatpush2.bf16.msra.mxu0 %v6510_v4 }
 0x2d6   :  { %2596 = vmatprep.subr.bf16.mxu0 %v6503_v8 }
 0x2d7   :  { %2556 = vmatpush2.bf16.msra.mxu1 %v6374_v14 }
 0x2d8   :  { %2557 = vmatprep.subr.bf16.mxu1 %v6367_v17 }
 0x2d9   :  { %2597 = vmatpush2.bf16.msra.mxu0 %v6502_v15 }
 0x2da   :  { %2598 = vmatprep.subr.bf16.mxu0 %v6495_v18 }
 0x2db   :  { %2558 = vmatpush2.bf16.msra.mxu1 %v6366_v26 }
 0x2dc   :  { %2559 = vmatprep.subr.bf16.mxu1 %v6359_v45 }
 0x2dd   :  { %2599 = vmatpush2.bf16.msra.mxu0 %v6494_v31 }
 0x2de   :  { %2600 = vmatprep.subr.bf16.mxu0 %v6487_v35 }
 0x2df   :  { %2560 = vmatpush2.bf16.msra.mxu1 %v6358_v28 }
 0x2e0   :  { %2561 = vmatprep.subr.bf16.mxu1 %v6351_v30 }
 0x2e1   :  { %2601 = vmatpush2.bf16.msra.mxu0 %v6486_v29 }
 0x2e2   :  { %2602 = vmatprep.subr.bf16.mxu0 %v6479_v33 }
 0x2e3   :  { %2562 = vmatpush2.bf16.msra.mxu1 %v6350_v40 }
 0x2e4   :  { %2563 = vmatprep.subr.bf16.mxu1 %v6343_v42 }
 0x2e5   :  { %2603 = vmatpush2.bf16.msra.mxu0 %v6478_v41 }
 0x2e6   :  { %2604 = vmatprep.subr.bf16.mxu0 %v6471_v43 }
 0x2e7   :  { %2564 = vmatpush2.bf16.msra.mxu1 %v6342_v50 }
 0x2e8   :  { %2565 = vmatprep.subr.bf16.mxu1 %v6335_v52 }
 0x2e9   :  { %2605 = vmatpush2.bf16.msra.mxu0 %v6470_v51 }
 0x2ea   :  { %2606 = vmatprep.subr.bf16.mxu0 %v6463_v53 }
 0x2eb   :  { %2566 = vmatpush2.bf16.msra.mxu1 %v6334_v58  ;;  %v998_v58 = vrot.slane %v969_v0, %v997_v56 }
 0x2ec   :  { %2567 = vmatprep.subr.bf16.mxu1 %v6327_v60 }
 0x2ed   :  { %2607 = vmatpush2.bf16.msra.mxu0 %v6462_v59  ;;  %v1002_v59 = vrot.slane %v969_v0, %v1001_v57 }
 0x2ee   :  { %2608 = vmatprep.subr.bf16.mxu0 %v6455_v61 }
 0x2ef   :  { %2568 = vmatpush2.bf16.msra.mxu1 %v6326_v62 }
 0x2f1   :  { %2609 = vmatpush2.bf16.msra.mxu0 %v6454_v63 }
 0x2f2   :  { %v2325_v3 = vpop.f32.mrf.mxu1  ;;  %2570 = vmatmul.mubr.bf16.vlgmr.msra.gmra.mxu1 %v8159_v16  ;;  %v986_v16 = vrot.slane %v969_v0, %v8138_v24 }
 0x2f3   :  { %v2326_v4 = vadd.f32 %v2325_v3, %v974_v1 }
 0x2f4   :  { %v2366_v5 = vpop.f32.mrf.mxu0  ;;  %2611 = vmatmul.mubr.bf16.vlgmr.msra.gmra.mxu0 %v8164_v19  ;;  %v2327_v8 = vpop.f32.mrf.mxu1 }
 0x2f5   :  { %v8182_v10 = vadd.f32 %v2366_v5, %v2326_v4  ;;  %v2328_v11 = vadd.f32 %v2327_v8, %v978_v2 }
 0x2f6   :  { %v2368_v12 = vpop.f32.mrf.mxu0  ;;  %v2329_v13 = vpop.f32.mrf.mxu1 }
 0x2f7   :  { %v2619_v14 = vmax.f32 %v8182_v10, 0.0  ;;  %v2369_v15 = vadd.f32 %v2368_v12, %v2328_v11 }
 0x2f8   :  { %v2370_v17 = vpop.f32.mrf.mxu0  ;;  %v2330_v18 = vpop.f32.mrf.mxu1 }
 0x2f9   :  { %v2620_v20 = vmax.f32 %v2369_v15, 0.0 }
 0x2fa   :  { %v2371_v21 = vpop.f32.mrf.mxu0 }
 0x332   :  { %v2407_v25 = vpop.f32.mrf.mxu1 }
 0x333   :  { %v2408_v26 = vadd.f32 %v2407_v25, %v982_v23 }
 0x334   :  { %v2448_v19 = vpop.f32.mrf.mxu0  ;;  %v2409_v31 = vpop.f32.mrf.mxu1 }
 0x335   :  { %v8187_v45 = vadd.f32 %v2448_v19, %v2408_v26  ;;  %v2410_v35 = vadd.f32 %v2409_v31, %v986_v16 }
 0x336   :  { %v2450_v46 = vpop.f32.mrf.mxu0  ;;  %v2411_v27 = vpop.f32.mrf.mxu1 }
 0x337   :  { %v2621_v32 = vmax.f32 %v8187_v45, 0.0  ;;  %v2451_v36 = vadd.f32 %v2450_v46, %v2410_v35 }
 0x338   :  { %v2452_v28 = vpop.f32.mrf.mxu0  ;;  %v2412_v29 = vpop.f32.mrf.mxu1 }
 0x339   :  { %v2622_v30 = vmax.f32 %v2451_v36, 0.0 }
 0x33a   :  { %v2453_v33 = vpop.f32.mrf.mxu0 }
 0x372   :  { %v2489_v40 = vpop.f32.mrf.mxu1 }
 0x373   :  { %v2490_v41 = vadd.f32 %v2489_v40, %v990_v38 }
 0x374   :  { %v2530_v42 = vpop.f32.mrf.mxu0  ;;  %v2491_v43 = vpop.f32.mrf.mxu1 }
 0x375   :  { %v8196_v44 = vadd.f32 %v2530_v42, %v2490_v41  ;;  %v2492_v47 = vadd.f32 %v2491_v43, %v994_v39 }
 0x376   :  { %v2532_v48 = vpop.f32.mrf.mxu0  ;;  %v2493_v49 = vpop.f32.mrf.mxu1 }
 0x377   :  { %v2623_v50 = vmax.f32 %v8196_v44, 0.0  ;;  %v8199_v51 = vadd.f32 %v2532_v48, %v2492_v47 }
 0x378   :  { %v2534_v52 = vpop.f32.mrf.mxu0  ;;  %v2494_v53 = vpop.f32.mrf.mxu1 }
 0x379   :  { %v2624_v54 = vmax.f32 %v8199_v51, 0.0 }
 0x37a   :  { %v2535_v55 = vpop.f32.mrf.mxu0 }
 0x3b2   :  { %v2571_v60 = vpop.f32.mrf.mxu1 }
 0x3b3   :  { %v2572_v61 = vadd.f32 %v2571_v60, %v998_v58 }
 0x3b4   :  { %v2612_v62 = vpop.f32.mrf.mxu0  ;;  %v2573_v63 = vpop.f32.mrf.mxu1 }
 0x3b5   :  { %v8206_v1 = vadd.f32 %v2612_v62, %v2572_v61  ;;  %v2574_v2 = vadd.f32 %v2573_v63, %v1002_v59 }
 0x3b6   :  { %v2614_v3 = vpop.f32.mrf.mxu0  ;;  %v2575_v4 = vpop.f32.mrf.mxu1 }
 0x3b7   :  { %v2625_v5 = vmax.f32 %v8206_v1, 0.0  ;;  %v8209_v8 = vadd.f32 %v2614_v3, %v2574_v2 }
 0x3b8   :  { %v2616_v11 = vpop.f32.mrf.mxu0  ;;  %v2576_v12 = vpop.f32.mrf.mxu1 }
 0x3b9   :  { %v2626_v13 = vmax.f32 %v8209_v8, 0.0 }
 0x3ba   :  { %v2617_v15 = vpop.f32.mrf.mxu0 }
 0x3bb   :  { %8028 = dma.done.wait [#allocation4 + $0x1], 57344 }
 0x3bc   :  { %8029 = vsyncadd [#allocation4 + $0x1], 4294909952  ;;  %v8212_v0 = vpack.c.bf16 %v2620_v20, %v2620_v20  ;;  %v8214_v17 = vpack.c.bf16 %v2622_v30, %v2622_v30  ;;  %v7164_v18 = vld [vmem:[#allocation3 + $0x18c] ss:$28 sps:$4 sm:$0xff]   ;;  %v7170_v25 = vld [vmem:[#allocation3 + $0x154] ss:$28 sps:$4 sm:$0xff]   ;;  %v8231_v10 = vpack.c.bf16 %v2624_v54, %v2624_v54 }
 0x3bd   :  { %v7166_v21 = vld [vmem:[#allocation3 + $0x50c] ss:$28 sps:$4 sm:$0xff]   ;;  %5492 = vmatprep.subr.bf16.mxu1 %v7164_v18  ;;  %v7172_v26 = vld [vmem:[#allocation3 + $0x4d4] ss:$28 sps:$4 sm:$0xff]   ;;  %v7176_v31 = vld [vmem:[#allocation3 + $0x11c] ss:$28 sps:$4 sm:$0xff]  }
 0x3be   :  { %5524 = vmatprep.mubr.bf16.mxu1 %v8212_v0  ;;  %5565 = vmatprep.mubr.bf16.mxu0 %v8214_v17  ;;  %v7168_v23 = vld [vmem:[#allocation3 + $0x188] ss:$28 sps:$4 sm:$0xff]   ;;  %v7174_v19 = vld [vmem:[#allocation3 + $0x150] ss:$28 sps:$4 sm:$0xff]   ;;  %v7178_v35 = vld [vmem:[#allocation3 + $0x49c] ss:$28 sps:$4 sm:$0xff]  }
 0x3bf   :  { %v7169_v16 = vld [vmem:[#allocation3 + $0x508] ss:$28 sps:$4 sm:$0xff]   ;;  %5533 = vmatprep.subr.bf16.mxu0 %v7166_v21  ;;  %5493 = vmatpush1.bf16.msra.mxu1 %v7168_v23  ;;  %v7175_v20 = vld [vmem:[#allocation3 + $0x4d0] ss:$28 sps:$4 sm:$0xff]   ;;  %v7180_v46 = vld [vmem:[#allocation3 + $0x118] ss:$28 sps:$4 sm:$0xff]  }
 0x3c0   :  { %5534 = vmatpush1.bf16.msra.mxu0 %v7169_v16  ;;  %5494 = vmatprep.subr.bf16.mxu1 %v7170_v25  ;;  %v7181_v27 = vld [vmem:[#allocation3 + $0x498] ss:$28 sps:$4 sm:$0xff]   ;;  %v7182_v36 = vld [vmem:[#allocation3 + $0xe4] ss:$28 sps:$4 sm:$0xff]   ;;  %v7188_v33 = vld [vmem:[#allocation3 + $0xac] ss:$28 sps:$4 sm:$0xff]  }
 0x3c1   :  { %5535 = vmatprep.subr.bf16.mxu0 %v7172_v26  ;;  %v7184_v28 = vld [vmem:[#allocation3 + $0x464] ss:$28 sps:$4 sm:$0xff]   ;;  %v7190_v38 = vld [vmem:[#allocation3 + $0x42c] ss:$28 sps:$4 sm:$0xff]   ;;  %v7194_v41 = vld [vmem:[#allocation3 + $0x74] ss:$28 sps:$4 sm:$0xff]  }
 0x3c2   :  { %v7186_v29 = vld [vmem:[#allocation3 + $0xe0] ss:$28 sps:$4 sm:$0xff]   ;;  %v7192_v39 = vld [vmem:[#allocation3 + $0xa8] ss:$28 sps:$4 sm:$0xff]   ;;  %v7196_v42 = vld [vmem:[#allocation3 + $0x3f4] ss:$28 sps:$4 sm:$0xff]  }
 0x3c3   :  { %5495 = vmatpush1.bf16.msra.mxu1 %v7174_v19  ;;  %v7187_v30 = vld [vmem:[#allocation3 + $0x460] ss:$28 sps:$4 sm:$0xff]   ;;  %v7193_v40 = vld [vmem:[#allocation3 + $0x428] ss:$28 sps:$4 sm:$0xff]   ;;  %v7198_v43 = vld [vmem:[#allocation3 + $0x70] ss:$28 sps:$4 sm:$0xff]  }
 0x3c4   :  { %5536 = vmatpush1.bf16.msra.mxu0 %v7175_v20  ;;  %5496 = vmatprep.subr.bf16.mxu1 %v7176_v31  ;;  %v7199_v47 = vld [vmem:[#allocation3 + $0x3f0] ss:$28 sps:$4 sm:$0xff]   ;;  %v7200_v48 = vld [vmem:[#allocation3 + $0x3c] ss:$28 sps:$4 sm:$0xff]   ;;  %v7206_v55 = vld [vmem:[#allocation3 + $0x4] ss:$28 sps:$4 sm:$0xff]  }
 0x3c5   :  { %5537 = vmatprep.subr.bf16.mxu0 %v7178_v35  ;;  %v7202_v49 = vld [vmem:[#allocation3 + $0x3bc] ss:$28 sps:$4 sm:$0xff]   ;;  %v7208_v57 = vld [vmem:[#allocation3 + $0x384] ss:$28 sps:$4 sm:$0xff]   ;;  %v7212_v60 = vld [vmem:[#allocation3 + $0x34c] ss:$28 sps:$4 sm:$0xff]  }
 0x3c6   :  { %v7204_v52 = vld [vmem:[#allocation3 + $0x38] ss:$28 sps:$4 sm:$0xff]   ;;  %v7210_v58 = vld [vmem:[#allocation3] ss:$28 sps:$4 sm:$0xff]   ;;  %v7214_v61 = vld [vmem:[#allocation3 + $0x6cc] ss:$28 sps:$4 sm:$0xff]  }
 0x3c7   :  { %5497 = vmatpush1.bf16.msra.mxu1 %v7180_v46  ;;  %v7205_v53 = vld [vmem:[#allocation3 + $0x3b8] ss:$28 sps:$4 sm:$0xff]   ;;  %v7211_v59 = vld [vmem:[#allocation3 + $0x380] ss:$28 sps:$4 sm:$0xff]   ;;  %v7216_v62 = vld [vmem:[#allocation3 + $0x348] ss:$28 sps:$4 sm:$0xff]  }
 0x3c8   :  { %5538 = vmatpush1.bf16.msra.mxu0 %v7181_v27  ;;  %5498 = vmatprep.subr.bf16.mxu1 %v7182_v36  ;;  %v7217_v63 = vld [vmem:[#allocation3 + $0x6c8] ss:$28 sps:$4 sm:$0xff]   ;;  %v7218_v2 = vld [vmem:[#allocation3 + $0x314] ss:$28 sps:$4 sm:$0xff]   ;;  %v7224_v12 = vld [vmem:[#allocation3 + $0x2dc] ss:$28 sps:$4 sm:$0xff]  }
 0x3c9   :  { %5539 = vmatprep.subr.bf16.mxu0 %v7184_v28  ;;  %v7220_v3 = vld [vmem:[#allocation3 + $0x694] ss:$28 sps:$4 sm:$0xff]   ;;  %v7226_v15 = vld [vmem:[#allocation3 + $0x65c] ss:$28 sps:$4 sm:$0xff]   ;;  %v7230_v23 = vld [vmem:[#allocation3 + $0x2a4] ss:$28 sps:$4 sm:$0xff]  }
 0x3ca   :  { %v7222_v4 = vld [vmem:[#allocation3 + $0x310] ss:$28 sps:$4 sm:$0xff]   ;;  %v7228_v18 = vld [vmem:[#allocation3 + $0x2d8] ss:$28 sps:$4 sm:$0xff]   ;;  %v7232_v16 = vld [vmem:[#allocation3 + $0x624] ss:$28 sps:$4 sm:$0xff]  }
 0x3cb   :  { %5499 = vmatpush1.bf16.msra.mxu1 %v7186_v29  ;;  %v7223_v11 = vld [vmem:[#allocation3 + $0x690] ss:$28 sps:$4 sm:$0xff]   ;;  %v7229_v21 = vld [vmem:[#allocation3 + $0x658] ss:$28 sps:$4 sm:$0xff]   ;;  %v7234_v25 = vld [vmem:[#allocation3 + $0x2a0] ss:$28 sps:$4 sm:$0xff]  }
 0x3cc   :  { %5540 = vmatpush1.bf16.msra.mxu0 %v7187_v30  ;;  %5500 = vmatprep.subr.bf16.mxu1 %v7188_v33  ;;  %v7235_v26 = vld [vmem:[#allocation3 + $0x620] ss:$28 sps:$4 sm:$0xff]   ;;  %v7236_v19 = vld [vmem:[#allocation3 + $0x26c] ss:$28 sps:$4 sm:$0xff]   ;;  %v7242_v46 = vld [vmem:[#allocation3 + $0x234] ss:$28 sps:$4 sm:$0xff]  }
 0x3cd   :  { %5541 = vmatprep.subr.bf16.mxu0 %v7190_v38  ;;  %v7238_v20 = vld [vmem:[#allocation3 + $0x5ec] ss:$28 sps:$4 sm:$0xff]   ;;  %v7244_v27 = vld [vmem:[#allocation3 + $0x5b4] ss:$28 sps:$4 sm:$0xff]   ;;  %v7248_v29 = vld [vmem:[#allocation3 + $0x1fc] ss:$28 sps:$4 sm:$0xff]  }
 0x3ce   :  { %v7240_v31 = vld [vmem:[#allocation3 + $0x268] ss:$28 sps:$4 sm:$0xff]   ;;  %v7246_v36 = vld [vmem:[#allocation3 + $0x230] ss:$28 sps:$4 sm:$0xff]   ;;  %v7250_v30 = vld [vmem:[#allocation3 + $0x57c] ss:$28 sps:$4 sm:$0xff]  }
 0x3cf   :  { %5501 = vmatpush1.bf16.msra.mxu1 %v7192_v39  ;;  %v7241_v35 = vld [vmem:[#allocation3 + $0x5e8] ss:$28 sps:$4 sm:$0xff]   ;;  %v7247_v28 = vld [vmem:[#allocation3 + $0x5b0] ss:$28 sps:$4 sm:$0xff]   ;;  %v7252_v33 = vld [vmem:[#allocation3 + $0x1f8] ss:$28 sps:$4 sm:$0xff]  }
 0x3d0   :  { %5542 = vmatpush1.bf16.msra.mxu0 %v7193_v40  ;;  %5502 = vmatprep.subr.bf16.mxu1 %v7194_v41  ;;  %v7253_v38 = vld [vmem:[#allocation3 + $0x578] ss:$28 sps:$4 sm:$0xff]   ;;  %v7254_v39 = vld [vmem:[#allocation3 + $0x1c4] ss:$28 sps:$4 sm:$0xff]   ;;  %v7266_v45 = vld [vmem:[#allocation3 + $0x850] ss:$28 sps:$4 sm:$0xff]  }
 0x3d1   :  { %5543 = vmatprep.subr.bf16.mxu0 %v7196_v42  ;;  %v7256_v40 = vld [vmem:[#allocation3 + $0x544] ss:$28 sps:$4 sm:$0xff]   ;;  %v7277_v51 = vld [vmem:[#allocation3 + $0xb9c] ss:$28 sps:$4 sm:$0xff]   ;;  %s8046_s7 = smov [#allocation17]  }
 0x3d2   :  { %v7258_v41 = vld [vmem:[#allocation3 + $0x1c0] ss:$28 sps:$4 sm:$0xff]   ;;  %v7272_v54 = vld [vmem:[#allocation3 + $0x818] ss:$28 sps:$4 sm:$0xff]   ;;  %s6164_s8 = sshll.u32 %s8046_s7, 4  ;;  %s6165_s8 = int_to_ptr.vmem [resolvable:$true] %s6164_s8 }
 0x3d3   :  { %5503 = vmatpush1.bf16.msra.mxu1 %v7198_v43  ;;  %v7259_v42 = vld [vmem:[#allocation3 + $0x540] ss:$28 sps:$4 sm:$0xff]   ;;  %v7262_v43 = vld [vmem:[#allocation3 + $0x88c] ss:$28 sps:$4 sm:$0xff]   ;;  %v7275_v8 = vld [vmem:[#allocation3 + $0xb98] ss:$28 sps:$4 sm:$0xff]   ;;  %p8003_p4 = scmp.lt.s32.totalorder %s6165_s8, %s6165_s8 }
 0x3d4   :  { %5544 = vmatpush1.bf16.msra.mxu0 %v7199_v47  ;;  %5504 = vmatprep.subr.bf16.mxu1 %v7200_v48  ;;  %v7265_v47 = vld [vmem:[#allocation3 + $0xc0c] ss:$28 sps:$4 sm:$0xff]   ;;  %v8221_v48 = vpack.c.bf16 %v2619_v14, %v2619_v14  ;;  %v8236_v14 = vpack.c.bf16 %v2626_v13, %v2626_v13  ;;  %v7280_v13 = vld [vmem:[#allocation3 + $0x7e4] ss:$28 sps:$4 sm:$0xff]   ;;  %v7362_v44 = vld [vmem:[#allocation3 + $0x158] ss:$28 sps:$4 sm:$0xff]  }
 0x3d5   :  { %5545 = vmatprep.subr.bf16.mxu0 %v7202_v49  ;;  %v8226_v49 = vpack.c.bf16 %v2621_v32, %v2621_v32  ;;  %v7269_v32 = vld [vmem:[#allocation3 + $0xbd0] ss:$28 sps:$4 sm:$0xff]   ;;  %v7370_v1 = vld [vmem:[#allocation3 + $0x124] ss:$28 sps:$4 sm:$0xff]   ;;  %s7998_s3 = scalar_lea.vmem %s6165_s8, 896 }
 0x3d6   :  { %p7999_p3 = scmp.ne.s32.totalorder %s6165_s8, %s7998_s3  ;;  %p8004_p5 = scmp.lt.s32.totalorder %s7998_s3, %s7998_s3 }
 0x3d7   :  { %5505 = vmatpush1.bf16.msra.mxu1 %v7204_v52  ;;  %v7260_v52 = vld [vmem:[#allocation3 + $0x888] ss:$28 sps:$4 sm:$0xff]  }
 0x3d8   :  { %5546 = vmatpush1.bf16.msra.mxu0 %v7205_v53  ;;  %5506 = vmatprep.subr.bf16.mxu1 %v7206_v55  ;;  %v7263_v53 = vld [vmem:[#allocation3 + $0xc08] ss:$28 sps:$4 sm:$0xff]   ;;  %v7268_v55 = vld [vmem:[#allocation3 + $0x854] ss:$28 sps:$4 sm:$0xff]   ;;  %p8005_p6 = por %p8004_p5, %p8003_p4 }
 0x3d9   :  { %5547 = vmatprep.subr.bf16.mxu0 %v7208_v57  ;;  %v7271_v57 = vld [vmem:[#allocation3 + $0xbd4] ss:$28 sps:$4 sm:$0xff]  }
 0x3da   :  { %p8006_p7 = pnand %p8005_p6, %p7999_p3 }
 0x3db   :  { %5507 = vmatpush1.bf16.msra.mxu1 %v7210_v58  ;;  %v7274_v58 = vld [vmem:[#allocation3 + $0x81c] ss:$28 sps:$4 sm:$0xff]  }
 0x3dc   :  { %5548 = vmatpush1.bf16.msra.mxu0 %v7211_v59  ;;  %5508 = vmatprep.subr.bf16.mxu1 %v7212_v60  ;;  %v7283_v59 = vld [vmem:[#allocation3 + $0xb64] ss:$28 sps:$4 sm:$0xff]  }
 0x3dd   :  { %5549 = vmatprep.subr.bf16.mxu0 %v7214_v61  ;;  %v7278_v60 = vld [vmem:[#allocation3 + $0x7e0] ss:$28 sps:$4 sm:$0xff]  }
 0x3de   :  { %v7281_v61 = vld [vmem:[#allocation3 + $0xb60] ss:$28 sps:$4 sm:$0xff]  }
 0x3df   :  { %5509 = vmatpush2.bf16.msra.mxu1 %v7216_v62  ;;  %v7286_v62 = vld [vmem:[#allocation3 + $0x7ac] ss:$28 sps:$4 sm:$0xff]  }
 0x3e0   :  { %5550 = vmatpush2.bf16.msra.mxu0 %v7217_v63  ;;  %5510 = vmatprep.subr.bf16.mxu1 %v7218_v2  ;;  %v7289_v63 = vld [vmem:[#allocation3 + $0xb2c] ss:$28 sps:$4 sm:$0xff]  }
 0x3e1   :  { %5551 = vmatprep.subr.bf16.mxu0 %v7220_v3  ;;  %v7284_v2 = vld [vmem:[#allocation3 + $0x7a8] ss:$28 sps:$4 sm:$0xff]  }
 0x3e2   :  { %v7287_v3 = vld [vmem:[#allocation3 + $0xb28] ss:$28 sps:$4 sm:$0xff]  }
 0x3e3   :  { %5511 = vmatpush2.bf16.msra.mxu1 %v7222_v4  ;;  %v7292_v4 = vld [vmem:[#allocation3 + $0x774] ss:$28 sps:$4 sm:$0xff]  }
 0x3e4   :  { %5552 = vmatpush2.bf16.msra.mxu0 %v7223_v11  ;;  %5512 = vmatprep.subr.bf16.mxu1 %v7224_v12  ;;  %v7295_v11 = vld [vmem:[#allocation3 + $0xaf4] ss:$28 sps:$4 sm:$0xff]  }
 0x3e5   :  { %5553 = vmatprep.subr.bf16.mxu0 %v7226_v15  ;;  %v7290_v12 = vld [vmem:[#allocation3 + $0x770] ss:$28 sps:$4 sm:$0xff]  }
 0x3e6   :  { %v7293_v15 = vld [vmem:[#allocation3 + $0xaf0] ss:$28 sps:$4 sm:$0xff]  }
 0x3e7   :  { %5513 = vmatpush2.bf16.msra.mxu1 %v7228_v18  ;;  %v7298_v18 = vld [vmem:[#allocation3 + $0x73c] ss:$28 sps:$4 sm:$0xff]  }
 0x3e8   :  { %5554 = vmatpush2.bf16.msra.mxu0 %v7229_v21  ;;  %5514 = vmatprep.subr.bf16.mxu1 %v7230_v23  ;;  %v7301_v21 = vld [vmem:[#allocation3 + $0xabc] ss:$28 sps:$4 sm:$0xff]  }
 0x3e9   :  { %5555 = vmatprep.subr.bf16.mxu0 %v7232_v16  ;;  %v7296_v23 = vld [vmem:[#allocation3 + $0x738] ss:$28 sps:$4 sm:$0xff]  }
 0x3ea   :  { %v7299_v16 = vld [vmem:[#allocation3 + $0xab8] ss:$28 sps:$4 sm:$0xff]  }
 0x3eb   :  { %5515 = vmatpush2.bf16.msra.mxu1 %v7234_v25  ;;  %v7304_v25 = vld [vmem:[#allocation3 + $0x704] ss:$28 sps:$4 sm:$0xff]  }
 0x3ec   :  { %5556 = vmatpush2.bf16.msra.mxu0 %v7235_v26  ;;  %5516 = vmatprep.subr.bf16.mxu1 %v7236_v19  ;;  %v7307_v26 = vld [vmem:[#allocation3 + $0xa84] ss:$28 sps:$4 sm:$0xff]  }
 0x3ed   :  { %5557 = vmatprep.subr.bf16.mxu0 %v7238_v20  ;;  %v7302_v19 = vld [vmem:[#allocation3 + $0x700] ss:$28 sps:$4 sm:$0xff]  }
 0x3ee   :  { %v7305_v20 = vld [vmem:[#allocation3 + $0xa80] ss:$28 sps:$4 sm:$0xff]  }
 0x3ef   :  { %5517 = vmatpush2.bf16.msra.mxu1 %v7240_v31  ;;  %v7310_v31 = vld [vmem:[#allocation3 + $0xa4c] ss:$28 sps:$4 sm:$0xff]  }
 0x3f0   :  { %5558 = vmatpush2.bf16.msra.mxu0 %v7241_v35  ;;  %5518 = vmatprep.subr.bf16.mxu1 %v7242_v46  ;;  %v7313_v35 = vld [vmem:[#allocation3 + $0xdcc] ss:$28 sps:$4 sm:$0xff]  }
 0x3f1   :  { %5559 = vmatprep.subr.bf16.mxu0 %v7244_v27  ;;  %v7308_v46 = vld [vmem:[#allocation3 + $0xa48] ss:$28 sps:$4 sm:$0xff]  }
 0x3f2   :  { %v7311_v27 = vld [vmem:[#allocation3 + $0xdc8] ss:$28 sps:$4 sm:$0xff]  }
 0x3f3   :  { %5519 = vmatpush2.bf16.msra.mxu1 %v7246_v36  ;;  %v7316_v36 = vld [vmem:[#allocation3 + $0xa14] ss:$28 sps:$4 sm:$0xff]  }
 0x3f4   :  { %5560 = vmatpush2.bf16.msra.mxu0 %v7247_v28  ;;  %5520 = vmatprep.subr.bf16.mxu1 %v7248_v29  ;;  %v7319_v28 = vld [vmem:[#allocation3 + $0xd94] ss:$28 sps:$4 sm:$0xff]  }
 0x3f5   :  { %5561 = vmatprep.subr.bf16.mxu0 %v7250_v30  ;;  %v7314_v29 = vld [vmem:[#allocation3 + $0xa10] ss:$28 sps:$4 sm:$0xff]  }
 0x3f6   :  { %v7317_v30 = vld [vmem:[#allocation3 + $0xd90] ss:$28 sps:$4 sm:$0xff]  }
 0x3f7   :  { %5521 = vmatpush2.bf16.msra.mxu1 %v7252_v33  ;;  %v7322_v33 = vld [vmem:[#allocation3 + $0x9dc] ss:$28 sps:$4 sm:$0xff]  }
 0x3f8   :  { %5562 = vmatpush2.bf16.msra.mxu0 %v7253_v38  ;;  %5522 = vmatprep.subr.bf16.mxu1 %v7254_v39  ;;  %v7325_v38 = vld [vmem:[#allocation3 + $0xd5c] ss:$28 sps:$4 sm:$0xff]  }
 0x3f9   :  { %5563 = vmatprep.subr.bf16.mxu0 %v7256_v40  ;;  %v7320_v39 = vld [vmem:[#allocation3 + $0x9d8] ss:$28 sps:$4 sm:$0xff]  }
 0x3fa   :  { %v7323_v40 = vld [vmem:[#allocation3 + $0xd58] ss:$28 sps:$4 sm:$0xff]  }
 0x3fb   :  { %5523 = vmatpush2.bf16.msra.mxu1 %v7258_v41  ;;  %v7328_v41 = vld [vmem:[#allocation3 + $0x9a4] ss:$28 sps:$4 sm:$0xff]  }
 0x3fc   :  { %5564 = vmatpush2.bf16.msra.mxu0 %v7259_v42  ;;  %5574 = vmatprep.subr.bf16.mxu1 %v7262_v43  ;;  %v7331_v42 = vld [vmem:[#allocation3 + $0xd24] ss:$28 sps:$4 sm:$0xff]  }
 0x3fd   :  { %5615 = vmatprep.subr.bf16.mxu0 %v7265_v47  ;;  %v7326_v43 = vld [vmem:[#allocation3 + $0x9a0] ss:$28 sps:$4 sm:$0xff]  }
 0x3fe   :  { %5525 = vmatmul.mubr.bf16.vlgmr.msra.gmra.mxu1 %v8221_v48  ;;  %v7329_v47 = vld [vmem:[#allocation3 + $0xd20] ss:$28 sps:$4 sm:$0xff]  }
 0x3ff   :  { %5566 = vmatmul.mubr.bf16.vlgmr.msra.gmra.mxu0 %v8226_v49  ;;  %5575 = vmatpush1.bf16.msra.mxu1 %v7260_v52  ;;  %v7334_v52 = vld [vmem:[#allocation3 + $0x96c] ss:$28 sps:$4 sm:$0xff]  }
 0x400   :  { %5616 = vmatpush1.bf16.msra.mxu0 %v7263_v53  ;;  %5576 = vmatprep.subr.bf16.mxu1 %v7268_v55  ;;  %v7337_v53 = vld [vmem:[#allocation3 + $0xcec] ss:$28 sps:$4 sm:$0xff]  }
 0x401   :  { %5617 = vmatprep.subr.bf16.mxu0 %v7271_v57  ;;  %5606 = vmatprep.mubr.bf16.mxu1 %v8231_v10  ;;  %v7332_v55 = vld [vmem:[#allocation3 + $0x968] ss:$28 sps:$4 sm:$0xff]  }
 0x402   :  { %5647 = vmatprep.mubr.bf16.mxu0 %v8236_v14  ;;  %v7335_v57 = vld [vmem:[#allocation3 + $0xce8] ss:$28 sps:$4 sm:$0xff]  }
 0x403   :  { %5577 = vmatpush1.bf16.msra.mxu1 %v7266_v45  ;;  %v7340_v45 = vld [vmem:[#allocation3 + $0x934] ss:$28 sps:$4 sm:$0xff]  }
 0x404   :  { %5618 = vmatpush1.bf16.msra.mxu0 %v7269_v32  ;;  %5578 = vmatprep.subr.bf16.mxu1 %v7274_v58  ;;  %v7343_v32 = vld [vmem:[#allocation3 + $0xcb4] ss:$28 sps:$4 sm:$0xff]  }
 0x405   :  { %5619 = vmatprep.subr.bf16.mxu0 %v7277_v51  ;;  %v7338_v58 = vld [vmem:[#allocation3 + $0x930] ss:$28 sps:$4 sm:$0xff]  }
 0x406   :  { %v7341_v51 = vld [vmem:[#allocation3 + $0xcb0] ss:$28 sps:$4 sm:$0xff]  }
 0x407   :  { %5579 = vmatpush1.bf16.msra.mxu1 %v7272_v54  ;;  %v7346_v54 = vld [vmem:[#allocation3 + $0x8fc] ss:$28 sps:$4 sm:$0xff]  }
 0x408   :  { %5620 = vmatpush1.bf16.msra.mxu0 %v7275_v8  ;;  %5580 = vmatprep.subr.bf16.mxu1 %v7280_v13  ;;  %v7349_v8 = vld [vmem:[#allocation3 + $0xc7c] ss:$28 sps:$4 sm:$0xff]  }
 0x409   :  { %5621 = vmatprep.subr.bf16.mxu0 %v7283_v59  ;;  %v7344_v13 = vld [vmem:[#allocation3 + $0x8f8] ss:$28 sps:$4 sm:$0xff]  }
 0x40a   :  { %v7347_v59 = vld [vmem:[#allocation3 + $0xc78] ss:$28 sps:$4 sm:$0xff]  }
 0x40b   :  { %5581 = vmatpush1.bf16.msra.mxu1 %v7278_v60  ;;  %v7352_v60 = vld [vmem:[#allocation3 + $0x8c4] ss:$28 sps:$4 sm:$0xff]  }
 0x40c   :  { %5622 = vmatpush1.bf16.msra.mxu0 %v7281_v61  ;;  %5582 = vmatprep.subr.bf16.mxu1 %v7286_v62  ;;  %v7355_v61 = vld [vmem:[#allocation3 + $0xc44] ss:$28 sps:$4 sm:$0xff]  }
 0x40d   :  { %5623 = vmatprep.subr.bf16.mxu0 %v7289_v63  ;;  %v7350_v62 = vld [vmem:[#allocation3 + $0x8c0] ss:$28 sps:$4 sm:$0xff]  }
 0x40e   :  { %v7353_v63 = vld [vmem:[#allocation3 + $0xc40] ss:$28 sps:$4 sm:$0xff]  }
 0x40f   :  { %5583 = vmatpush1.bf16.msra.mxu1 %v7284_v2  ;;  %v7358_v2 = vld [vmem:[#allocation3 + $0x194] ss:$28 sps:$4 sm:$0xff]  }
 0x410   :  { %5624 = vmatpush1.bf16.msra.mxu0 %v7287_v3  ;;  %5584 = vmatprep.subr.bf16.mxu1 %v7292_v4  ;;  %v7361_v3 = vld [vmem:[#allocation3 + $0x514] ss:$28 sps:$4 sm:$0xff]   ;;  %v8245_v4 = vpack.c.bf16 %v2623_v50, %v2623_v50 }
 0x411   :  { %5625 = vmatprep.subr.bf16.mxu0 %v7295_v11  ;;  %v8250_v11 = vpack.c.bf16 %v2625_v5, %v2625_v5  ;;  %v7365_v50 = vld [vmem:[#allocation3 + $0x4d8] ss:$28 sps:$4 sm:$0xff]   ;;  %v7373_v5 = vld [vmem:[#allocation3 + $0x4a4] ss:$28 sps:$4 sm:$0xff]  }
 0x413   :  { %5585 = vmatpush1.bf16.msra.mxu1 %v7290_v12  ;;  %v7356_v12 = vld [vmem:[#allocation3 + $0x190] ss:$28 sps:$4 sm:$0xff]  }
 0x414   :  { %5626 = vmatpush1.bf16.msra.mxu0 %v7293_v15  ;;  %5586 = vmatprep.subr.bf16.mxu1 %v7298_v18  ;;  %v7359_v15 = vld [vmem:[#allocation3 + $0x510] ss:$28 sps:$4 sm:$0xff]   ;;  %v7364_v18 = vld [vmem:[#allocation3 + $0x15c] ss:$28 sps:$4 sm:$0xff]  }
 0x415   :  { %5627 = vmatprep.subr.bf16.mxu0 %v7301_v21  ;;  %v7367_v21 = vld [vmem:[#allocation3 + $0x4dc] ss:$28 sps:$4 sm:$0xff]  }
 0x417   :  { %5587 = vmatpush1.bf16.msra.mxu1 %v7296_v23  ;;  %v7368_v23 = vld [vmem:[#allocation3 + $0x120] ss:$28 sps:$4 sm:$0xff]  }
 0x418   :  { %5628 = vmatpush1.bf16.msra.mxu0 %v7299_v16  ;;  %5588 = vmatprep.subr.bf16.mxu1 %v7304_v25  ;;  %v7371_v16 = vld [vmem:[#allocation3 + $0x4a0] ss:$28 sps:$4 sm:$0xff]   ;;  %v7376_v25 = vld [vmem:[#allocation3 + $0xec] ss:$28 sps:$4 sm:$0xff]  }
 0x419   :  { %5629 = vmatprep.subr.bf16.mxu0 %v7307_v26  ;;  %v7379_v26 = vld [vmem:[#allocation3 + $0x46c] ss:$28 sps:$4 sm:$0xff]  }
 0x41b   :  { %5589 = vmatpush1.bf16.msra.mxu1 %v7302_v19  ;;  %v7374_v19 = vld [vmem:[#allocation3 + $0xe8] ss:$28 sps:$4 sm:$0xff]  }
 0x41c   :  { %5630 = vmatpush1.bf16.msra.mxu0 %v7305_v20  ;;  %5590 = vmatprep.subr.bf16.mxu1 %v7310_v31  ;;  %v7377_v20 = vld [vmem:[#allocation3 + $0x468] ss:$28 sps:$4 sm:$0xff]   ;;  %v7382_v31 = vld [vmem:[#allocation3 + $0xb4] ss:$28 sps:$4 sm:$0xff]  }
 0x41d   :  { %5631 = vmatprep.subr.bf16.mxu0 %v7313_v35  ;;  %v7385_v35 = vld [vmem:[#allocation3 + $0x434] ss:$28 sps:$4 sm:$0xff]  }
 0x41f   :  { %5591 = vmatpush2.bf16.msra.mxu1 %v7308_v46  ;;  %v7380_v46 = vld [vmem:[#allocation3 + $0xb0] ss:$28 sps:$4 sm:$0xff]  }
 0x420   :  { %5632 = vmatpush2.bf16.msra.mxu0 %v7311_v27  ;;  %5592 = vmatprep.subr.bf16.mxu1 %v7316_v36  ;;  %v7383_v27 = vld [vmem:[#allocation3 + $0x430] ss:$28 sps:$4 sm:$0xff]   ;;  %v7388_v36 = vld [vmem:[#allocation3 + $0x7c] ss:$28 sps:$4 sm:$0xff]  }
 0x421   :  { %5633 = vmatprep.subr.bf16.mxu0 %v7319_v28  ;;  %v7391_v28 = vld [vmem:[#allocation3 + $0x3fc] ss:$28 sps:$4 sm:$0xff]  }
 0x423   :  { %5593 = vmatpush2.bf16.msra.mxu1 %v7314_v29  ;;  %v7386_v29 = vld [vmem:[#allocation3 + $0x78] ss:$28 sps:$4 sm:$0xff]  }
 0x424   :  { %5634 = vmatpush2.bf16.msra.mxu0 %v7317_v30  ;;  %5594 = vmatprep.subr.bf16.mxu1 %v7322_v33  ;;  %v7389_v30 = vld [vmem:[#allocation3 + $0x3f8] ss:$28 sps:$4 sm:$0xff]   ;;  %v7394_v33 = vld [vmem:[#allocation3 + $0x44] ss:$28 sps:$4 sm:$0xff]  }
 0x425   :  { %5635 = vmatprep.subr.bf16.mxu0 %v7325_v38  ;;  %v7397_v38 = vld [vmem:[#allocation3 + $0x3c4] ss:$28 sps:$4 sm:$0xff]  }
 0x427   :  { %5595 = vmatpush2.bf16.msra.mxu1 %v7320_v39  ;;  %v7392_v39 = vld [vmem:[#allocation3 + $0x40] ss:$28 sps:$4 sm:$0xff]  }
 0x428   :  { %5636 = vmatpush2.bf16.msra.mxu0 %v7323_v40  ;;  %5596 = vmatprep.subr.bf16.mxu1 %v7328_v41  ;;  %v7395_v40 = vld [vmem:[#allocation3 + $0x3c0] ss:$28 sps:$4 sm:$0xff]   ;;  %v7400_v41 = vld [vmem:[#allocation3 + $0xc] ss:$28 sps:$4 sm:$0xff]  }
 0x429   :  { %5637 = vmatprep.subr.bf16.mxu0 %v7331_v42  ;;  %v7403_v42 = vld [vmem:[#allocation3 + $0x38c] ss:$28 sps:$4 sm:$0xff]  }
 0x42b   :  { %5597 = vmatpush2.bf16.msra.mxu1 %v7326_v43  ;;  %v7398_v43 = vld [vmem:[#allocation3 + $0x8] ss:$28 sps:$4 sm:$0xff]  }
 0x42c   :  { %5638 = vmatpush2.bf16.msra.mxu0 %v7329_v47  ;;  %5598 = vmatprep.subr.bf16.mxu1 %v7334_v52  ;;  %v7401_v47 = vld [vmem:[#allocation3 + $0x388] ss:$28 sps:$4 sm:$0xff]   ;;  %v7406_v52 = vld [vmem:[#allocation3 + $0x354] ss:$28 sps:$4 sm:$0xff]  }
 0x42d   :  { %5639 = vmatprep.subr.bf16.mxu0 %v7337_v53  ;;  %v7409_v53 = vld [vmem:[#allocation3 + $0x6d4] ss:$28 sps:$4 sm:$0xff]  }
 0x42f   :  { %5599 = vmatpush2.bf16.msra.mxu1 %v7332_v55  ;;  %v7404_v55 = vld [vmem:[#allocation3 + $0x350] ss:$28 sps:$4 sm:$0xff]  }
 0x430   :  { %5640 = vmatpush2.bf16.msra.mxu0 %v7335_v57  ;;  %5600 = vmatprep.subr.bf16.mxu1 %v7340_v45  ;;  %v7407_v57 = vld [vmem:[#allocation3 + $0x6d0] ss:$28 sps:$4 sm:$0xff]   ;;  %v7412_v45 = vld [vmem:[#allocation3 + $0x31c] ss:$28 sps:$4 sm:$0xff]  }
 0x431   :  { %5641 = vmatprep.subr.bf16.mxu0 %v7343_v32  ;;  %v7415_v32 = vld [vmem:[#allocation3 + $0x69c] ss:$28 sps:$4 sm:$0xff]  }
 0x433   :  { %5601 = vmatpush2.bf16.msra.mxu1 %v7338_v58  ;;  %v7410_v58 = vld [vmem:[#allocation3 + $0x318] ss:$28 sps:$4 sm:$0xff]  }
 0x434   :  { %5642 = vmatpush2.bf16.msra.mxu0 %v7341_v51  ;;  %5602 = vmatprep.subr.bf16.mxu1 %v7346_v54  ;;  %v7413_v51 = vld [vmem:[#allocation3 + $0x698] ss:$28 sps:$4 sm:$0xff]   ;;  %v7418_v54 = vld [vmem:[#allocation3 + $0x2e4] ss:$28 sps:$4 sm:$0xff]  }
 0x435   :  { %5643 = vmatprep.subr.bf16.mxu0 %v7349_v8  ;;  %v7421_v8 = vld [vmem:[#allocation3 + $0x664] ss:$28 sps:$4 sm:$0xff]  }
 0x437   :  { %5603 = vmatpush2.bf16.msra.mxu1 %v7344_v13  ;;  %v7416_v13 = vld [vmem:[#allocation3 + $0x2e0] ss:$28 sps:$4 sm:$0xff]  }
 0x438   :  { %5644 = vmatpush2.bf16.msra.mxu0 %v7347_v59  ;;  %5604 = vmatprep.subr.bf16.mxu1 %v7352_v60  ;;  %v7419_v59 = vld [vmem:[#allocation3 + $0x660] ss:$28 sps:$4 sm:$0xff]   ;;  %v7424_v60 = vld [vmem:[#allocation3 + $0x2ac] ss:$28 sps:$4 sm:$0xff]  }
 0x439   :  { %5645 = vmatprep.subr.bf16.mxu0 %v7355_v61  ;;  %v7427_v61 = vld [vmem:[#allocation3 + $0x62c] ss:$28 sps:$4 sm:$0xff]  }
 0x43b   :  { %5605 = vmatpush2.bf16.msra.mxu1 %v7350_v62  ;;  %v7422_v62 = vld [vmem:[#allocation3 + $0x2a8] ss:$28 sps:$4 sm:$0xff]  }
 0x43c   :  { %5646 = vmatpush2.bf16.msra.mxu0 %v7353_v63  ;;  %5656 = vmatprep.subr.bf16.mxu1 %v7358_v2  ;;  %v7425_v63 = vld [vmem:[#allocation3 + $0x628] ss:$28 sps:$4 sm:$0xff]   ;;  %v7430_v2 = vld [vmem:[#allocation3 + $0x274] ss:$28 sps:$4 sm:$0xff]  }
 0x43d   :  { %5697 = vmatprep.subr.bf16.mxu0 %v7361_v3  ;;  %v7433_v3 = vld [vmem:[#allocation3 + $0x5f4] ss:$28 sps:$4 sm:$0xff]  }
 0x43e   :  { %5607 = vmatmul.mubr.bf16.vlgmr.msra.gmra.mxu1 %v8245_v4 }
 0x43f   :  { %5648 = vmatmul.mubr.bf16.vlgmr.msra.gmra.mxu0 %v8250_v11  ;;  %5657 = vmatpush1.bf16.msra.mxu1 %v7356_v12  ;;  %v7428_v12 = vld [vmem:[#allocation3 + $0x270] ss:$28 sps:$4 sm:$0xff]  }
 0x440   :  { %5698 = vmatpush1.bf16.msra.mxu0 %v7359_v15  ;;  %5658 = vmatprep.subr.bf16.mxu1 %v7364_v18  ;;  %v7431_v15 = vld [vmem:[#allocation3 + $0x5f0] ss:$28 sps:$4 sm:$0xff]   ;;  %v7436_v18 = vld [vmem:[#allocation3 + $0x23c] ss:$28 sps:$4 sm:$0xff]  }
 0x441   :  { %5699 = vmatprep.subr.bf16.mxu0 %v7367_v21  ;;  %5688 = vmatprep.mubr.bf16.mxu1 %v8212_v0  ;;  %v7439_v21 = vld [vmem:[#allocation3 + $0x5bc] ss:$28 sps:$4 sm:$0xff]  }
 0x442   :  { %5729 = vmatprep.mubr.bf16.mxu0 %v8214_v17 }
 0x443   :  { %5659 = vmatpush1.bf16.msra.mxu1 %v7362_v44  ;;  %v7434_v44 = vld [vmem:[#allocation3 + $0x238] ss:$28 sps:$4 sm:$0xff]  }
 0x444   :  { %5700 = vmatpush1.bf16.msra.mxu0 %v7365_v50  ;;  %5660 = vmatprep.subr.bf16.mxu1 %v7370_v1  ;;  %v7437_v50 = vld [vmem:[#allocation3 + $0x5b8] ss:$28 sps:$4 sm:$0xff]   ;;  %v7442_v1 = vld [vmem:[#allocation3 + $0x204] ss:$28 sps:$4 sm:$0xff]  }
 0x445   :  { %5701 = vmatprep.subr.bf16.mxu0 %v7373_v5  ;;  %v7445_v5 = vld [vmem:[#allocation3 + $0x584] ss:$28 sps:$4 sm:$0xff]  }
 0x447   :  { %5661 = vmatpush1.bf16.msra.mxu1 %v7368_v23  ;;  %v7440_v23 = vld [vmem:[#allocation3 + $0x200] ss:$28 sps:$4 sm:$0xff]  }
 0x448   :  { %5702 = vmatpush1.bf16.msra.mxu0 %v7371_v16  ;;  %5662 = vmatprep.subr.bf16.mxu1 %v7376_v25  ;;  %v7443_v16 = vld [vmem:[#allocation3 + $0x580] ss:$28 sps:$4 sm:$0xff]   ;;  %v7448_v25 = vld [vmem:[#allocation3 + $0x1cc] ss:$28 sps:$4 sm:$0xff]  }
 0x449   :  { %5703 = vmatprep.subr.bf16.mxu0 %v7379_v26  ;;  %v7451_v26 = vld [vmem:[#allocation3 + $0x54c] ss:$28 sps:$4 sm:$0xff]  }
 0x44b   :  { %5663 = vmatpush1.bf16.msra.mxu1 %v7374_v19  ;;  %v7446_v19 = vld [vmem:[#allocation3 + $0x1c8] ss:$28 sps:$4 sm:$0xff]  }
 0x44c   :  { %5704 = vmatpush1.bf16.msra.mxu0 %v7377_v20  ;;  %5664 = vmatprep.subr.bf16.mxu1 %v7382_v31  ;;  %v7449_v20 = vld [vmem:[#allocation3 + $0x548] ss:$28 sps:$4 sm:$0xff]   ;;  %v7454_v31 = vld [vmem:[#allocation3 + $0x894] ss:$28 sps:$4 sm:$0xff]  }
 0x44d   :  { %5705 = vmatprep.subr.bf16.mxu0 %v7385_v35  ;;  %v7457_v35 = vld [vmem:[#allocation3 + $0xc14] ss:$28 sps:$4 sm:$0xff]  }
 0x44f   :  { %5665 = vmatpush1.bf16.msra.mxu1 %v7380_v46  ;;  %v7452_v46 = vld [vmem:[#allocation3 + $0x890] ss:$28 sps:$4 sm:$0xff]  }
 0x450   :  { %5706 = vmatpush1.bf16.msra.mxu0 %v7383_v27  ;;  %5666 = vmatprep.subr.bf16.mxu1 %v7388_v36  ;;  %v7455_v27 = vld [vmem:[#allocation3 + $0xc10] ss:$28 sps:$4 sm:$0xff]   ;;  %v7460_v36 = vld [vmem:[#allocation3 + $0x85c] ss:$28 sps:$4 sm:$0xff]  }
 0x451   :  { %5707 = vmatprep.subr.bf16.mxu0 %v7391_v28  ;;  %v7463_v28 = vld [vmem:[#allocation3 + $0xbdc] ss:$28 sps:$4 sm:$0xff]  }
 0x453   :  { %5667 = vmatpush1.bf16.msra.mxu1 %v7386_v29  ;;  %v7458_v29 = vld [vmem:[#allocation3 + $0x858] ss:$28 sps:$4 sm:$0xff]  }
 0x454   :  { %5708 = vmatpush1.bf16.msra.mxu0 %v7389_v30  ;;  %5668 = vmatprep.subr.bf16.mxu1 %v7394_v33  ;;  %v7461_v30 = vld [vmem:[#allocation3 + $0xbd8] ss:$28 sps:$4 sm:$0xff]   ;;  %v7466_v33 = vld [vmem:[#allocation3 + $0x824] ss:$28 sps:$4 sm:$0xff]  }
 0x455   :  { %5709 = vmatprep.subr.bf16.mxu0 %v7397_v38  ;;  %v7469_v38 = vld [vmem:[#allocation3 + $0xba4] ss:$28 sps:$4 sm:$0xff]  }
 0x457   :  { %5669 = vmatpush1.bf16.msra.mxu1 %v7392_v39  ;;  %v7464_v39 = vld [vmem:[#allocation3 + $0x820] ss:$28 sps:$4 sm:$0xff]  }
 0x458   :  { %5710 = vmatpush1.bf16.msra.mxu0 %v7395_v40  ;;  %5670 = vmatprep.subr.bf16.mxu1 %v7400_v41  ;;  %v7467_v40 = vld [vmem:[#allocation3 + $0xba0] ss:$28 sps:$4 sm:$0xff]   ;;  %v7472_v41 = vld [vmem:[#allocation3 + $0x7ec] ss:$28 sps:$4 sm:$0xff]  }
 0x459   :  { %5711 = vmatprep.subr.bf16.mxu0 %v7403_v42  ;;  %v7475_v42 = vld [vmem:[#allocation3 + $0xb6c] ss:$28 sps:$4 sm:$0xff]  }
 0x45b   :  { %5671 = vmatpush1.bf16.msra.mxu1 %v7398_v43  ;;  %v7470_v43 = vld [vmem:[#allocation3 + $0x7e8] ss:$28 sps:$4 sm:$0xff]  }
 0x45c   :  { %5712 = vmatpush1.bf16.msra.mxu0 %v7401_v47  ;;  %5672 = vmatprep.subr.bf16.mxu1 %v7406_v52  ;;  %v7473_v47 = vld [vmem:[#allocation3 + $0xb68] ss:$28 sps:$4 sm:$0xff]   ;;  %v7478_v52 = vld [vmem:[#allocation3 + $0x7b4] ss:$28 sps:$4 sm:$0xff]  }
 0x45d   :  { %5713 = vmatprep.subr.bf16.mxu0 %v7409_v53  ;;  %v7481_v53 = vld [vmem:[#allocation3 + $0xb34] ss:$28 sps:$4 sm:$0xff]  }
 0x45f   :  { %5673 = vmatpush2.bf16.msra.mxu1 %v7404_v55  ;;  %v7476_v55 = vld [vmem:[#allocation3 + $0x7b0] ss:$28 sps:$4 sm:$0xff]  }
 0x460   :  { %5714 = vmatpush2.bf16.msra.mxu0 %v7407_v57  ;;  %5674 = vmatprep.subr.bf16.mxu1 %v7412_v45  ;;  %v7479_v57 = vld [vmem:[#allocation3 + $0xb30] ss:$28 sps:$4 sm:$0xff]   ;;  %v7484_v45 = vld [vmem:[#allocation3 + $0x77c] ss:$28 sps:$4 sm:$0xff]  }
 0x461   :  { %5715 = vmatprep.subr.bf16.mxu0 %v7415_v32  ;;  %v7487_v32 = vld [vmem:[#allocation3 + $0xafc] ss:$28 sps:$4 sm:$0xff]  }
 0x463   :  { %5675 = vmatpush2.bf16.msra.mxu1 %v7410_v58  ;;  %v7482_v58 = vld [vmem:[#allocation3 + $0x778] ss:$28 sps:$4 sm:$0xff]  }
 0x464   :  { %5716 = vmatpush2.bf16.msra.mxu0 %v7413_v51  ;;  %5676 = vmatprep.subr.bf16.mxu1 %v7418_v54  ;;  %v7485_v51 = vld [vmem:[#allocation3 + $0xaf8] ss:$28 sps:$4 sm:$0xff]   ;;  %v7490_v54 = vld [vmem:[#allocation3 + $0x744] ss:$28 sps:$4 sm:$0xff]  }
 0x465   :  { %5717 = vmatprep.subr.bf16.mxu0 %v7421_v8  ;;  %v7493_v8 = vld [vmem:[#allocation3 + $0xac4] ss:$28 sps:$4 sm:$0xff]  }
 0x467   :  { %5677 = vmatpush2.bf16.msra.mxu1 %v7416_v13  ;;  %v7488_v13 = vld [vmem:[#allocation3 + $0x740] ss:$28 sps:$4 sm:$0xff]  }
 0x468   :  { %5718 = vmatpush2.bf16.msra.mxu0 %v7419_v59  ;;  %5678 = vmatprep.subr.bf16.mxu1 %v7424_v60  ;;  %v7491_v59 = vld [vmem:[#allocation3 + $0xac0] ss:$28 sps:$4 sm:$0xff]   ;;  %v7496_v60 = vld [vmem:[#allocation3 + $0x70c] ss:$28 sps:$4 sm:$0xff]  }
 0x469   :  { %5719 = vmatprep.subr.bf16.mxu0 %v7427_v61  ;;  %v7499_v61 = vld [vmem:[#allocation3 + $0xa8c] ss:$28 sps:$4 sm:$0xff]  }
 0x46b   :  { %5679 = vmatpush2.bf16.msra.mxu1 %v7422_v62  ;;  %v7494_v62 = vld [vmem:[#allocation3 + $0x708] ss:$28 sps:$4 sm:$0xff]  }
 0x46c   :  { %5720 = vmatpush2.bf16.msra.mxu0 %v7425_v63  ;;  %5680 = vmatprep.subr.bf16.mxu1 %v7430_v2  ;;  %v7497_v63 = vld [vmem:[#allocation3 + $0xa88] ss:$28 sps:$4 sm:$0xff]   ;;  %v7502_v2 = vld [vmem:[#allocation3 + $0xa54] ss:$28 sps:$4 sm:$0xff]  }
 0x46d   :  { %5721 = vmatprep.subr.bf16.mxu0 %v7433_v3  ;;  %v7505_v3 = vld [vmem:[#allocation3 + $0xdd4] ss:$28 sps:$4 sm:$0xff]  }
 0x46f   :  { %5681 = vmatpush2.bf16.msra.mxu1 %v7428_v12  ;;  %v7500_v12 = vld [vmem:[#allocation3 + $0xa50] ss:$28 sps:$4 sm:$0xff]  }
 0x470   :  { %5722 = vmatpush2.bf16.msra.mxu0 %v7431_v15  ;;  %5682 = vmatprep.subr.bf16.mxu1 %v7436_v18  ;;  %v7503_v15 = vld [vmem:[#allocation3 + $0xdd0] ss:$28 sps:$4 sm:$0xff]   ;;  %v7508_v18 = vld [vmem:[#allocation3 + $0xa1c] ss:$28 sps:$4 sm:$0xff]  }
 0x471   :  { %5723 = vmatprep.subr.bf16.mxu0 %v7439_v21  ;;  %v7511_v21 = vld [vmem:[#allocation3 + $0xd9c] ss:$28 sps:$4 sm:$0xff]  }
 0x473   :  { %5683 = vmatpush2.bf16.msra.mxu1 %v7434_v44  ;;  %v7506_v44 = vld [vmem:[#allocation3 + $0xa18] ss:$28 sps:$4 sm:$0xff]  }
 0x474   :  { %5724 = vmatpush2.bf16.msra.mxu0 %v7437_v50  ;;  %5684 = vmatprep.subr.bf16.mxu1 %v7442_v1  ;;  %v7509_v50 = vld [vmem:[#allocation3 + $0xd98] ss:$28 sps:$4 sm:$0xff]   ;;  %v7514_v1 = vld [vmem:[#allocation3 + $0x9e4] ss:$28 sps:$4 sm:$0xff]  }
 0x475   :  { %5725 = vmatprep.subr.bf16.mxu0 %v7445_v5  ;;  %v7517_v5 = vld [vmem:[#allocation3 + $0xd64] ss:$28 sps:$4 sm:$0xff]  }
 0x477   :  { %5685 = vmatpush2.bf16.msra.mxu1 %v7440_v23  ;;  %v7512_v23 = vld [vmem:[#allocation3 + $0x9e0] ss:$28 sps:$4 sm:$0xff]  }
 0x478   :  { %5726 = vmatpush2.bf16.msra.mxu0 %v7443_v16  ;;  %5686 = vmatprep.subr.bf16.mxu1 %v7448_v25  ;;  %v7515_v16 = vld [vmem:[#allocation3 + $0xd60] ss:$28 sps:$4 sm:$0xff]   ;;  %v7520_v25 = vld [vmem:[#allocation3 + $0x9ac] ss:$28 sps:$4 sm:$0xff]  }
 0x479   :  { %5727 = vmatprep.subr.bf16.mxu0 %v7451_v26  ;;  %v7523_v26 = vld [vmem:[#allocation3 + $0xd2c] ss:$28 sps:$4 sm:$0xff]  }
 0x47b   :  { %5687 = vmatpush2.bf16.msra.mxu1 %v7446_v19  ;;  %v7518_v19 = vld [vmem:[#allocation3 + $0x9a8] ss:$28 sps:$4 sm:$0xff]  }
 0x47c   :  { %5728 = vmatpush2.bf16.msra.mxu0 %v7449_v20  ;;  %5738 = vmatprep.subr.bf16.mxu1 %v7454_v31  ;;  %v7521_v20 = vld [vmem:[#allocation3 + $0xd28] ss:$28 sps:$4 sm:$0xff]   ;;  %v7526_v31 = vld [vmem:[#allocation3 + $0x974] ss:$28 sps:$4 sm:$0xff]  }
 0x47d   :  { %5779 = vmatprep.subr.bf16.mxu0 %v7457_v35  ;;  %v7529_v35 = vld [vmem:[#allocation3 + $0xcf4] ss:$28 sps:$4 sm:$0xff]  }
 0x47e   :  { %5689 = vmatmul.mubr.bf16.vlgmr.msra.gmra.mxu1 %v8221_v48 }
 0x47f   :  { %5730 = vmatmul.mubr.bf16.vlgmr.msra.gmra.mxu0 %v8226_v49  ;;  %5739 = vmatpush1.bf16.msra.mxu1 %v7452_v46  ;;  %v7524_v46 = vld [vmem:[#allocation3 + $0x970] ss:$28 sps:$4 sm:$0xff]  }
 0x480   :  { %5780 = vmatpush1.bf16.msra.mxu0 %v7455_v27  ;;  %5740 = vmatprep.subr.bf16.mxu1 %v7460_v36  ;;  %v7527_v27 = vld [vmem:[#allocation3 + $0xcf0] ss:$28 sps:$4 sm:$0xff]   ;;  %v7532_v36 = vld [vmem:[#allocation3 + $0x93c] ss:$28 sps:$4 sm:$0xff]  }
 0x481   :  { %5781 = vmatprep.subr.bf16.mxu0 %v7463_v28  ;;  %5770 = vmatprep.mubr.bf16.mxu1 %v8231_v10  ;;  %v7535_v28 = vld [vmem:[#allocation3 + $0xcbc] ss:$28 sps:$4 sm:$0xff]  }
 0x482   :  { %5811 = vmatprep.mubr.bf16.mxu0 %v8236_v14 }
 0x483   :  { %5741 = vmatpush1.bf16.msra.mxu1 %v7458_v29  ;;  %v7530_v29 = vld [vmem:[#allocation3 + $0x938] ss:$28 sps:$4 sm:$0xff]  }
 0x484   :  { %5782 = vmatpush1.bf16.msra.mxu0 %v7461_v30  ;;  %5742 = vmatprep.subr.bf16.mxu1 %v7466_v33  ;;  %v7533_v30 = vld [vmem:[#allocation3 + $0xcb8] ss:$28 sps:$4 sm:$0xff]   ;;  %v7538_v33 = vld [vmem:[#allocation3 + $0x904] ss:$28 sps:$4 sm:$0xff]  }
 0x485   :  { %5783 = vmatprep.subr.bf16.mxu0 %v7469_v38  ;;  %v7541_v38 = vld [vmem:[#allocation3 + $0xc84] ss:$28 sps:$4 sm:$0xff]  }
 0x487   :  { %5743 = vmatpush1.bf16.msra.mxu1 %v7464_v39  ;;  %v7536_v39 = vld [vmem:[#allocation3 + $0x900] ss:$28 sps:$4 sm:$0xff]  }
 0x488   :  { %5784 = vmatpush1.bf16.msra.mxu0 %v7467_v40  ;;  %5744 = vmatprep.subr.bf16.mxu1 %v7472_v41  ;;  %v7539_v40 = vld [vmem:[#allocation3 + $0xc80] ss:$28 sps:$4 sm:$0xff]   ;;  %v7544_v41 = vld [vmem:[#allocation3 + $0x8cc] ss:$28 sps:$4 sm:$0xff]  }
 0x489   :  { %5785 = vmatprep.subr.bf16.mxu0 %v7475_v42  ;;  %v7547_v42 = vld [vmem:[#allocation3 + $0xc4c] ss:$28 sps:$4 sm:$0xff]  }
 0x48b   :  { %5745 = vmatpush1.bf16.msra.mxu1 %v7470_v43  ;;  %v7542_v43 = vld [vmem:[#allocation3 + $0x8c8] ss:$28 sps:$4 sm:$0xff]  }
 0x48c   :  { %5786 = vmatpush1.bf16.msra.mxu0 %v7473_v47  ;;  %5746 = vmatprep.subr.bf16.mxu1 %v7478_v52  ;;  %v7545_v47 = vld [vmem:[#allocation3 + $0xc48] ss:$28 sps:$4 sm:$0xff]   ;;  %v7550_v52 = vld [vmem:[#allocation3 + $0x19c] ss:$28 sps:$4 sm:$0xff]  }
 0x48d   :  { %5787 = vmatprep.subr.bf16.mxu0 %v7481_v53  ;;  %v7553_v53 = vld [vmem:[#allocation3 + $0x51c] ss:$28 sps:$4 sm:$0xff]  }
 0x48f   :  { %5747 = vmatpush1.bf16.msra.mxu1 %v7476_v55  ;;  %v7548_v55 = vld [vmem:[#allocation3 + $0x198] ss:$28 sps:$4 sm:$0xff]  }
 0x490   :  { %5788 = vmatpush1.bf16.msra.mxu0 %v7479_v57  ;;  %5748 = vmatprep.subr.bf16.mxu1 %v7484_v45  ;;  %v7551_v57 = vld [vmem:[#allocation3 + $0x518] ss:$28 sps:$4 sm:$0xff]   ;;  %v7556_v45 = vld [vmem:[#allocation3 + $0x164] ss:$28 sps:$4 sm:$0xff]  }
 0x491   :  { %5789 = vmatprep.subr.bf16.mxu0 %v7487_v32  ;;  %v7559_v32 = vld [vmem:[#allocation3 + $0x4e4] ss:$28 sps:$4 sm:$0xff]  }
 0x493   :  { %5749 = vmatpush1.bf16.msra.mxu1 %v7482_v58  ;;  %v7554_v58 = vld [vmem:[#allocation3 + $0x160] ss:$28 sps:$4 sm:$0xff]  }
 0x494   :  { %5790 = vmatpush1.bf16.msra.mxu0 %v7485_v51  ;;  %5750 = vmatprep.subr.bf16.mxu1 %v7490_v54 }
 0x495   :  { %5791 = vmatprep.subr.bf16.mxu0 %v7493_v8  ;;  %v7557_v8 = vld [vmem:[#allocation3 + $0x4e0] ss:$28 sps:$4 sm:$0xff]  }
 0x497   :  { %5751 = vmatpush1.bf16.msra.mxu1 %v7488_v13  ;;  %v7562_v13 = vld [vmem:[#allocation3 + $0x12c] ss:$28 sps:$4 sm:$0xff]  }
 0x498   :  { %5792 = vmatpush1.bf16.msra.mxu0 %v7491_v59  ;;  %5752 = vmatprep.subr.bf16.mxu1 %v7496_v60 }
 0x499   :  { %5793 = vmatprep.subr.bf16.mxu0 %v7499_v61  ;;  %v7565_v61 = vld [vmem:[#allocation3 + $0x4ac] ss:$28 sps:$4 sm:$0xff]  }
 0x49b   :  { %5753 = vmatpush1.bf16.msra.mxu1 %v7494_v62  ;;  %v7560_v62 = vld [vmem:[#allocation3 + $0x128] ss:$28 sps:$4 sm:$0xff]  }
 0x49c   :  { %5794 = vmatpush1.bf16.msra.mxu0 %v7497_v63  ;;  %5754 = vmatprep.subr.bf16.mxu1 %v7502_v2 }
 0x49d   :  { %5795 = vmatprep.subr.bf16.mxu0 %v7505_v3  ;;  %v7563_v3 = vld [vmem:[#allocation3 + $0x4a8] ss:$28 sps:$4 sm:$0xff]  }
 0x49f   :  { %5755 = vmatpush2.bf16.msra.mxu1 %v7500_v12  ;;  %v7568_v12 = vld [vmem:[#allocation3 + $0xf4] ss:$28 sps:$4 sm:$0xff]  }
 0x4a0   :  { %5796 = vmatpush2.bf16.msra.mxu0 %v7503_v15  ;;  %5756 = vmatprep.subr.bf16.mxu1 %v7508_v18 }
 0x4a1   :  { %5797 = vmatprep.subr.bf16.mxu0 %v7511_v21  ;;  %v7571_v21 = vld [vmem:[#allocation3 + $0x474] ss:$28 sps:$4 sm:$0xff]  }
 0x4a3   :  { %5757 = vmatpush2.bf16.msra.mxu1 %v7506_v44  ;;  %v7566_v44 = vld [vmem:[#allocation3 + $0xf0] ss:$28 sps:$4 sm:$0xff]  }
 0x4a4   :  { %5798 = vmatpush2.bf16.msra.mxu0 %v7509_v50  ;;  %5758 = vmatprep.subr.bf16.mxu1 %v7514_v1  ;;  %v7569_v50 = vld [vmem:[#allocation3 + $0x470] ss:$28 sps:$4 sm:$0xff]   ;;  %v7574_v1 = vld [vmem:[#allocation3 + $0xbc] ss:$28 sps:$4 sm:$0xff]  }
 0x4a5   :  { %5799 = vmatprep.subr.bf16.mxu0 %v7517_v5  ;;  %v7577_v5 = vld [vmem:[#allocation3 + $0x43c] ss:$28 sps:$4 sm:$0xff]  }
 0x4a7   :  { %5759 = vmatpush2.bf16.msra.mxu1 %v7512_v23  ;;  %v7572_v23 = vld [vmem:[#allocation3 + $0xb8] ss:$28 sps:$4 sm:$0xff]  }
 0x4a8   :  { %5800 = vmatpush2.bf16.msra.mxu0 %v7515_v16  ;;  %5760 = vmatprep.subr.bf16.mxu1 %v7520_v25  ;;  %v7575_v16 = vld [vmem:[#allocation3 + $0x438] ss:$28 sps:$4 sm:$0xff]   ;;  %v7580_v25 = vld [vmem:[#allocation3 + $0x84] ss:$28 sps:$4 sm:$0xff]  }
 0x4a9   :  { %5801 = vmatprep.subr.bf16.mxu0 %v7523_v26  ;;  %v7583_v26 = vld [vmem:[#allocation3 + $0x404] ss:$28 sps:$4 sm:$0xff]  }
 0x4ab   :  { %5761 = vmatpush2.bf16.msra.mxu1 %v7518_v19  ;;  %v7578_v19 = vld [vmem:[#allocation3 + $0x80] ss:$28 sps:$4 sm:$0xff]  }
 0x4ac   :  { %5802 = vmatpush2.bf16.msra.mxu0 %v7521_v20  ;;  %5762 = vmatprep.subr.bf16.mxu1 %v7526_v31  ;;  %v7581_v20 = vld [vmem:[#allocation3 + $0x400] ss:$28 sps:$4 sm:$0xff]   ;;  %v7586_v31 = vld [vmem:[#allocation3 + $0x4c] ss:$28 sps:$4 sm:$0xff]  }
 0x4ad   :  { %5803 = vmatprep.subr.bf16.mxu0 %v7529_v35  ;;  %v7589_v35 = vld [vmem:[#allocation3 + $0x3cc] ss:$28 sps:$4 sm:$0xff]  }
 0x4af   :  { %5763 = vmatpush2.bf16.msra.mxu1 %v7524_v46  ;;  %v7584_v46 = vld [vmem:[#allocation3 + $0x48] ss:$28 sps:$4 sm:$0xff]  }
 0x4b0   :  { %5804 = vmatpush2.bf16.msra.mxu0 %v7527_v27  ;;  %5764 = vmatprep.subr.bf16.mxu1 %v7532_v36  ;;  %v7587_v27 = vld [vmem:[#allocation3 + $0x3c8] ss:$28 sps:$4 sm:$0xff]   ;;  %v7592_v36 = vld [vmem:[#allocation3 + $0x14] ss:$28 sps:$4 sm:$0xff]  }
 0x4b1   :  { %5805 = vmatprep.subr.bf16.mxu0 %v7535_v28  ;;  %v7595_v28 = vld [vmem:[#allocation3 + $0x394] ss:$28 sps:$4 sm:$0xff]  }
 0x4b3   :  { %5765 = vmatpush2.bf16.msra.mxu1 %v7530_v29  ;;  %v7590_v29 = vld [vmem:[#allocation3 + $0x10] ss:$28 sps:$4 sm:$0xff]  }
 0x4b4   :  { %5806 = vmatpush2.bf16.msra.mxu0 %v7533_v30  ;;  %5766 = vmatprep.subr.bf16.mxu1 %v7538_v33  ;;  %v7593_v30 = vld [vmem:[#allocation3 + $0x390] ss:$28 sps:$4 sm:$0xff]   ;;  %v7598_v33 = vld [vmem:[#allocation3 + $0x35c] ss:$28 sps:$4 sm:$0xff]  }
 0x4b5   :  { %5807 = vmatprep.subr.bf16.mxu0 %v7541_v38  ;;  %v7601_v38 = vld [vmem:[#allocation3 + $0x6dc] ss:$28 sps:$4 sm:$0xff]  }
 0x4b7   :  { %5767 = vmatpush2.bf16.msra.mxu1 %v7536_v39  ;;  %v7596_v39 = vld [vmem:[#allocation3 + $0x358] ss:$28 sps:$4 sm:$0xff]  }
 0x4b8   :  { %5808 = vmatpush2.bf16.msra.mxu0 %v7539_v40  ;;  %5768 = vmatprep.subr.bf16.mxu1 %v7544_v41  ;;  %v7599_v40 = vld [vmem:[#allocation3 + $0x6d8] ss:$28 sps:$4 sm:$0xff]   ;;  %v7604_v41 = vld [vmem:[#allocation3 + $0x324] ss:$28 sps:$4 sm:$0xff]  }
 0x4b9   :  { %5809 = vmatprep.subr.bf16.mxu0 %v7547_v42  ;;  %v7607_v42 = vld [vmem:[#allocation3 + $0x6a4] ss:$28 sps:$4 sm:$0xff]  }
 0x4bb   :  { %5769 = vmatpush2.bf16.msra.mxu1 %v7542_v43  ;;  %v7602_v43 = vld [vmem:[#allocation3 + $0x320] ss:$28 sps:$4 sm:$0xff]  }
 0x4bc   :  { %5810 = vmatpush2.bf16.msra.mxu0 %v7545_v47  ;;  %5820 = vmatprep.subr.bf16.mxu1 %v7550_v52  ;;  %v7605_v47 = vld [vmem:[#allocation3 + $0x6a0] ss:$28 sps:$4 sm:$0xff]   ;;  %v7610_v52 = vld [vmem:[#allocation3 + $0x2ec] ss:$28 sps:$4 sm:$0xff]  }
 0x4bd   :  { %5861 = vmatprep.subr.bf16.mxu0 %v7553_v53  ;;  %v7613_v53 = vld [vmem:[#allocation3 + $0x66c] ss:$28 sps:$4 sm:$0xff]  }
 0x4be   :  { %v8260_v51 = vpop.f32.mrf.mxu1  ;;  %5771 = vmatmul.mubr.bf16.vlgmr.msra.gmra.mxu1 %v8245_v4 }
 0x4bf   :  { %v8262_v54 = vpop.f32.mrf.mxu0  ;;  %5812 = vmatmul.mubr.bf16.vlgmr.msra.gmra.mxu0 %v8250_v11  ;;  %5821 = vmatpush1.bf16.msra.mxu1 %v7548_v55  ;;  %v7608_v55 = vld [vmem:[#allocation3 + $0x2e8] ss:$28 sps:$4 sm:$0xff]  }
 0x4c0   :  { %5862 = vmatpush1.bf16.msra.mxu0 %v7551_v57  ;;  %v8266_v59 = vpop.f32.mrf.mxu1  ;;  %5822 = vmatprep.subr.bf16.mxu1 %v7556_v45  ;;  %v7611_v57 = vld [vmem:[#allocation3 + $0x668] ss:$28 sps:$4 sm:$0xff]   ;;  %v7616_v45 = vld [vmem:[#allocation3 + $0x2b4] ss:$28 sps:$4 sm:$0xff]  }
 0x4c1   :  { %v8268_v60 = vpop.f32.mrf.mxu0  ;;  %5863 = vmatprep.subr.bf16.mxu0 %v7559_v32  ;;  %5852 = vmatprep.mubr.bf16.mxu1 %v8212_v0  ;;  %v7619_v32 = vld [vmem:[#allocation3 + $0x634] ss:$28 sps:$4 sm:$0xff]  }
 0x4c2   :  { %5893 = vmatprep.mubr.bf16.mxu0 %v8214_v17  ;;  %v5530_v63 = vpop.f32.mrf.mxu1 }
 0x4c3   :  { %v5571_v2 = vpop.f32.mrf.mxu0  ;;  %5823 = vmatpush1.bf16.msra.mxu1 %v7554_v58  ;;  %v7614_v58 = vld [vmem:[#allocation3 + $0x2b0] ss:$28 sps:$4 sm:$0xff]   ;;  %v7623_v63 = vld [vmem:[#allocation3 + $0x5f8] ss:$28 sps:$4 sm:$0xff]  }
 0x4c4   :  { %5864 = vmatpush1.bf16.msra.mxu0 %v7557_v8  ;;  %v5531_v15 = vpop.f32.mrf.mxu1  ;;  %5824 = vmatprep.subr.bf16.mxu1 %v7562_v13  ;;  %v7617_v8 = vld [vmem:[#allocation3 + $0x630] ss:$28 sps:$4 sm:$0xff]   ;;  %v7622_v13 = vld [vmem:[#allocation3 + $0x27c] ss:$28 sps:$4 sm:$0xff]   ;;  %v7628_v2 = vld [vmem:[#allocation3 + $0x244] ss:$28 sps:$4 sm:$0xff]  }
 0x4c5   :  { %v5572_v18 = vpop.f32.mrf.mxu0  ;;  %5865 = vmatprep.subr.bf16.mxu0 %v7565_v61  ;;  %v7625_v61 = vld [vmem:[#allocation3 + $0x5fc] ss:$28 sps:$4 sm:$0xff]  }
 0x4c6   :  { %v7629_v15 = vld [vmem:[#allocation3 + $0x5c0] ss:$28 sps:$4 sm:$0xff]   ;;  %v7634_v18 = vld [vmem:[#allocation3 + $0x20c] ss:$28 sps:$4 sm:$0xff]  }
 0x4c7   :  { %5825 = vmatpush1.bf16.msra.mxu1 %v7560_v62  ;;  %v7620_v62 = vld [vmem:[#allocation3 + $0x278] ss:$28 sps:$4 sm:$0xff]  }
 0x4c8   :  { %5866 = vmatpush1.bf16.msra.mxu0 %v7563_v3  ;;  %5826 = vmatprep.subr.bf16.mxu1 %v7568_v12  ;;  %v7631_v3 = vld [vmem:[#allocation3 + $0x5c4] ss:$28 sps:$4 sm:$0xff]  }
 0x4c9   :  { %5867 = vmatprep.subr.bf16.mxu0 %v7571_v21  ;;  %v7626_v12 = vld [vmem:[#allocation3 + $0x240] ss:$28 sps:$4 sm:$0xff]   ;;  %v8272_v21 = vld [vmem:[#allocation16] sm:$0xff] }
 0x4cb   :  { %5827 = vmatpush1.bf16.msra.mxu1 %v7566_v44  ;;  %v7637_v44 = vld [vmem:[#allocation3 + $0x58c] ss:$28 sps:$4 sm:$0xff]  }
 0x4cc   :  { %5868 = vmatpush1.bf16.msra.mxu0 %v7569_v50  ;;  %5828 = vmatprep.subr.bf16.mxu1 %v7574_v1  ;;  %v7632_v50 = vld [vmem:[#allocation3 + $0x208] ss:$28 sps:$4 sm:$0xff]  }
 0x4cd   :  { %5869 = vmatprep.subr.bf16.mxu0 %v7577_v5  ;;  %v7635_v1 = vld [vmem:[#allocation3 + $0x588] ss:$28 sps:$4 sm:$0xff]   ;;  %v7640_v5 = vld [vmem:[#allocation3 + $0x1d4] ss:$28 sps:$4 sm:$0xff]  }
 0x4cf   :  { %5829 = vmatpush1.bf16.msra.mxu1 %v7572_v23  ;;  %v7643_v23 = vld [vmem:[#allocation3 + $0x554] ss:$28 sps:$4 sm:$0xff]  }
 0x4d0   :  { %5870 = vmatpush1.bf16.msra.mxu0 %v7575_v16  ;;  %5830 = vmatprep.subr.bf16.mxu1 %v7580_v25  ;;  %v3156_v16 = vrot.slane %v8272_v21, %v8121_v7  ;;  %v7638_v25 = vld [vmem:[#allocation3 + $0x1d0] ss:$28 sps:$4 sm:$0xff]   ;;  %v7652_v7 = vld [vmem:[#allocation3 + $0x864] ss:$28 sps:$4 sm:$0xff]  }
 0x4d1   :  { %5871 = vmatprep.subr.bf16.mxu0 %v7583_v26  ;;  %v7641_v26 = vld [vmem:[#allocation3 + $0x550] ss:$28 sps:$4 sm:$0xff]  }
 0x4d3   :  { %5831 = vmatpush1.bf16.msra.mxu1 %v7578_v19  ;;  %v3160_v19 = vrot.slane %v8272_v21, %v8124_v9 }
 0x4d4   :  { %5872 = vmatpush1.bf16.msra.mxu0 %v7581_v20  ;;  %5832 = vmatprep.subr.bf16.mxu1 %v7586_v31  ;;  %v7646_v20 = vld [vmem:[#allocation3 + $0x89c] ss:$28 sps:$4 sm:$0xff]  }
 0x4d5   :  { %5873 = vmatprep.subr.bf16.mxu0 %v7589_v35  ;;  %v7649_v31 = vld [vmem:[#allocation3 + $0xc1c] ss:$28 sps:$4 sm:$0xff]   ;;  %v5527_v35 = vadd.f32 %v8260_v51, %v3156_v16  ;;  %v7683_v16 = vld [vmem:[#allocation3 + $0xac8] ss:$28 sps:$4 sm:$0xff]  }
 0x4d7   :  { %5833 = vmatpush1.bf16.msra.mxu1 %v7584_v46  ;;  %v5529_v46 = vadd.f32 %v8266_v59, %v3160_v19  ;;  %v5568_v9 = vadd.f32 %v8262_v54, %v5527_v35  ;;  %v7650_v59 = vld [vmem:[#allocation3 + $0x860] ss:$28 sps:$4 sm:$0xff]   ;;  %v7686_v19 = vld [vmem:[#allocation3 + $0x710] ss:$28 sps:$4 sm:$0xff]  }
 0x4d8   :  { %5874 = vmatpush1.bf16.msra.mxu0 %v7587_v27  ;;  %5834 = vmatprep.subr.bf16.mxu1 %v7592_v36  ;;  %v7644_v27 = vld [vmem:[#allocation3 + $0x898] ss:$28 sps:$4 sm:$0xff]  }
 0x4d9   :  { %5875 = vmatprep.subr.bf16.mxu0 %v7595_v28  ;;  %v7647_v36 = vld [vmem:[#allocation3 + $0xc18] ss:$28 sps:$4 sm:$0xff]   ;;  %v7655_v28 = vld [vmem:[#allocation3 + $0xbe4] ss:$28 sps:$4 sm:$0xff]   ;;  %v5570_v51 = vadd.f32 %v8268_v60, %v5529_v46 }
 0x4da   :  { %v7697_v35 = vld [vmem:[#allocation3 + $0xddc] ss:$28 sps:$4 sm:$0xff]  }
 0x4db   :  { %5835 = vmatpush1.bf16.msra.mxu1 %v7590_v29  ;;  %v7692_v46 = vld [vmem:[#allocation3 + $0xa58] ss:$28 sps:$4 sm:$0xff]  }
 0x4dc   :  { %5876 = vmatpush1.bf16.msra.mxu0 %v7593_v30  ;;  %5836 = vmatprep.subr.bf16.mxu1 %v7598_v33 }
 0x4dd   :  { %5877 = vmatprep.subr.bf16.mxu0 %v7601_v38  ;;  %v7653_v38 = vld [vmem:[#allocation3 + $0xbe0] ss:$28 sps:$4 sm:$0xff]  }
 0x4df   :  { %5837 = vmatpush2.bf16.msra.mxu1 %v7596_v39 }
 0x4e0   :  { %5878 = vmatpush2.bf16.msra.mxu0 %v7599_v40  ;;  %5838 = vmatprep.subr.bf16.mxu1 %v7604_v41  ;;  %v7658_v41 = vld [vmem:[#allocation3 + $0x82c] ss:$28 sps:$4 sm:$0xff]  }
 0x4e1   :  { %5879 = vmatprep.subr.bf16.mxu0 %v7607_v42  ;;  %v7661_v42 = vld [vmem:[#allocation3 + $0xbac] ss:$28 sps:$4 sm:$0xff]  }
 0x4e3   :  { %5839 = vmatpush2.bf16.msra.mxu1 %v7602_v43 }
 0x4e4   :  { %5880 = vmatpush2.bf16.msra.mxu0 %v7605_v47  ;;  %5840 = vmatprep.subr.bf16.mxu1 %v7610_v52 }
 0x4e5   :  { %5881 = vmatprep.subr.bf16.mxu0 %v7613_v53  ;;  %v7656_v53 = vld [vmem:[#allocation3 + $0x828] ss:$28 sps:$4 sm:$0xff]  }
 0x4e7   :  { %5841 = vmatpush2.bf16.msra.mxu1 %v7608_v55  ;;  %v7659_v55 = vld [vmem:[#allocation3 + $0xba8] ss:$28 sps:$4 sm:$0xff]  }
 0x4e8   :  { %5882 = vmatpush2.bf16.msra.mxu0 %v7611_v57  ;;  %5842 = vmatprep.subr.bf16.mxu1 %v7616_v45 }
 0x4e9   :  { %5883 = vmatprep.subr.bf16.mxu0 %v7619_v32  ;;  %v7664_v32 = vld [vmem:[#allocation3 + $0x7f4] ss:$28 sps:$4 sm:$0xff]  }
 0x4eb   :  { %5843 = vmatpush2.bf16.msra.mxu1 %v7614_v58  ;;  %v7667_v58 = vld [vmem:[#allocation3 + $0xb74] ss:$28 sps:$4 sm:$0xff]  }
 0x4ec   :  { %5884 = vmatpush2.bf16.msra.mxu0 %v7617_v8  ;;  %5844 = vmatprep.subr.bf16.mxu1 %v7622_v13  ;;  %v7662_v8 = vld [vmem:[#allocation3 + $0x7f0] ss:$28 sps:$4 sm:$0xff]  }
 0x4ed   :  { %5885 = vmatprep.subr.bf16.mxu0 %v7625_v61  ;;  %v7665_v13 = vld [vmem:[#allocation3 + $0xb70] ss:$28 sps:$4 sm:$0xff]   ;;  %v7670_v61 = vld [vmem:[#allocation3 + $0x7bc] ss:$28 sps:$4 sm:$0xff]  }
 0x4ef   :  { %5845 = vmatpush2.bf16.msra.mxu1 %v7620_v62  ;;  %v7673_v62 = vld [vmem:[#allocation3 + $0xb3c] ss:$28 sps:$4 sm:$0xff]  }
 0x4f0   :  { %5886 = vmatpush2.bf16.msra.mxu0 %v7623_v63  ;;  %5846 = vmatprep.subr.bf16.mxu1 %v7628_v2  ;;  %v7668_v63 = vld [vmem:[#allocation3 + $0x7b8] ss:$28 sps:$4 sm:$0xff]  }
 0x4f1   :  { %5887 = vmatprep.subr.bf16.mxu0 %v7631_v3  ;;  %v7671_v2 = vld [vmem:[#allocation3 + $0xb38] ss:$28 sps:$4 sm:$0xff]   ;;  %v7676_v3 = vld [vmem:[#allocation3 + $0x784] ss:$28 sps:$4 sm:$0xff]  }
 0x4f3   :  { %5847 = vmatpush2.bf16.msra.mxu1 %v7626_v12  ;;  %v7679_v12 = vld [vmem:[#allocation3 + $0xb04] ss:$28 sps:$4 sm:$0xff]  }
 0x4f4   :  { %5888 = vmatpush2.bf16.msra.mxu0 %v7629_v15  ;;  %5848 = vmatprep.subr.bf16.mxu1 %v7634_v18  ;;  %v7674_v15 = vld [vmem:[#allocation3 + $0x780] ss:$28 sps:$4 sm:$0xff]  }
 0x4f5   :  { %5889 = vmatprep.subr.bf16.mxu0 %v7637_v44  ;;  %v7677_v18 = vld [vmem:[#allocation3 + $0xb00] ss:$28 sps:$4 sm:$0xff]  }
 0x4f7   :  { %5849 = vmatpush2.bf16.msra.mxu1 %v7632_v50  ;;  %v7682_v50 = vld [vmem:[#allocation3 + $0x74c] ss:$28 sps:$4 sm:$0xff]  }
 0x4f8   :  { %5890 = vmatpush2.bf16.msra.mxu0 %v7635_v1  ;;  %5850 = vmatprep.subr.bf16.mxu1 %v7640_v5  ;;  %v7685_v1 = vld [vmem:[#allocation3 + $0xacc] ss:$28 sps:$4 sm:$0xff]  }
 0x4f9   :  { %5891 = vmatprep.subr.bf16.mxu0 %v7643_v23  ;;  %v7680_v23 = vld [vmem:[#allocation3 + $0x748] ss:$28 sps:$4 sm:$0xff]  }
 0x4fb   :  { %5851 = vmatpush2.bf16.msra.mxu1 %v7638_v25  ;;  %v7688_v25 = vld [vmem:[#allocation3 + $0x714] ss:$28 sps:$4 sm:$0xff]  }
 0x4fc   :  { %5892 = vmatpush2.bf16.msra.mxu0 %v7641_v26  ;;  %5902 = vmatprep.subr.bf16.mxu1 %v7646_v20  ;;  %v7691_v26 = vld [vmem:[#allocation3 + $0xa94] ss:$28 sps:$4 sm:$0xff]  }
 0x4fd   :  { %5943 = vmatprep.subr.bf16.mxu0 %v7649_v31  ;;  %v7689_v20 = vld [vmem:[#allocation3 + $0xa90] ss:$28 sps:$4 sm:$0xff]   ;;  %v7694_v31 = vld [vmem:[#allocation3 + $0xa5c] ss:$28 sps:$4 sm:$0xff]  }
 0x4fe   :  { %v5608_v29 = vpop.f32.mrf.mxu1  ;;  %5853 = vmatmul.mubr.bf16.vlgmr.msra.gmra.mxu1 %v8221_v48 }
 0x4ff   :  { %v5649_v30 = vpop.f32.mrf.mxu0  ;;  %5894 = vmatmul.mubr.bf16.vlgmr.msra.gmra.mxu0 %v8226_v49  ;;  %v5609_v33 = vadd.f32 %v5608_v29, %v5568_v9  ;;  %5903 = vmatpush1.bf16.msra.mxu1 %v7644_v27  ;;  %v7695_v27 = vld [vmem:[#allocation3 + $0xdd8] ss:$28 sps:$4 sm:$0xff]   ;;  %v7701_v9 = vld [vmem:[#allocation3 + $0xda0] ss:$28 sps:$4 sm:$0xff]   ;;  %v7706_v29 = vld [vmem:[#allocation3 + $0x9ec] ss:$28 sps:$4 sm:$0xff]  }
 0x500   :  { %5944 = vmatpush1.bf16.msra.mxu0 %v7647_v36  ;;  %v5610_v39 = vpop.f32.mrf.mxu1  ;;  %5904 = vmatprep.subr.bf16.mxu1 %v7652_v7  ;;  %v7700_v36 = vld [vmem:[#allocation3 + $0xa24] ss:$28 sps:$4 sm:$0xff]  }
 0x501   :  { %v5651_v40 = vpop.f32.mrf.mxu0  ;;  %5945 = vmatprep.subr.bf16.mxu0 %v7655_v28  ;;  %v5650_v54 = vadd.f32 %v5649_v30, %v5609_v33  ;;  %v5611_v43 = vadd.f32 %v5610_v39, %v5570_v51  ;;  %5934 = vmatprep.mubr.bf16.mxu1 %v8231_v10  ;;  %v7703_v7 = vld [vmem:[#allocation3 + $0xda4] ss:$28 sps:$4 sm:$0xff]   ;;  %v7709_v30 = vld [vmem:[#allocation3 + $0xd6c] ss:$28 sps:$4 sm:$0xff]  }
 0x502   :  { %5975 = vmatprep.mubr.bf16.mxu0 %v8236_v14  ;;  %v5612_v47 = vpop.f32.mrf.mxu1  ;;  %v7698_v28 = vld [vmem:[#allocation3 + $0xa20] ss:$28 sps:$4 sm:$0xff]   ;;  %v7704_v51 = vld [vmem:[#allocation3 + $0x9e8] ss:$28 sps:$4 sm:$0xff]   ;;  %v7710_v39 = vld [vmem:[#allocation3 + $0x9b0] ss:$28 sps:$4 sm:$0xff]  }
 0x503   :  { %v5653_v52 = vpop.f32.mrf.mxu0  ;;  %7804 = vtanh.f32 %v5650_v54  ;;  %v5652_v60 = vadd.f32 %v5651_v40, %v5611_v43  ;;  %5905 = vmatpush1.bf16.msra.mxu1 %v7650_v59  ;;  %v7707_v33 = vld [vmem:[#allocation3 + $0xd68] ss:$28 sps:$4 sm:$0xff]   ;;  %v7712_v59 = vld [vmem:[#allocation3 + $0x9b4] ss:$28 sps:$4 sm:$0xff]  }
 0x504   :  { %5946 = vmatpush1.bf16.msra.mxu0 %v7653_v38  ;;  %v5613_v57 = vpop.f32.mrf.mxu1  ;;  %5906 = vmatprep.subr.bf16.mxu1 %v7658_v41  ;;  %v7715_v38 = vld [vmem:[#allocation3 + $0xd34] ss:$28 sps:$4 sm:$0xff]   ;;  %v7718_v41 = vld [vmem:[#allocation3 + $0x97c] ss:$28 sps:$4 sm:$0xff]   ;;  %v7724_v47 = vld [vmem:[#allocation3 + $0x944] ss:$28 sps:$4 sm:$0xff]  }
 0x505   :  { %v5654_v45 = vpop.f32.mrf.mxu0  ;;  %5947 = vmatprep.subr.bf16.mxu0 %v7661_v42  ;;  %7806 = vtanh.f32 %v5652_v60  ;;  %v7713_v40 = vld [vmem:[#allocation3 + $0xd30] ss:$28 sps:$4 sm:$0xff]   ;;  %v7721_v42 = vld [vmem:[#allocation3 + $0xcfc] ss:$28 sps:$4 sm:$0xff]   ;;  %v7727_v52 = vld [vmem:[#allocation3 + $0xcc4] ss:$28 sps:$4 sm:$0xff]  }
 0x506   :  { %v7716_v54 = vld [vmem:[#allocation3 + $0x978] ss:$28 sps:$4 sm:$0xff]   ;;  %v7722_v60 = vld [vmem:[#allocation3 + $0x940] ss:$28 sps:$4 sm:$0xff]   ;;  %v7733_v57 = vld [vmem:[#allocation3 + $0xc8c] ss:$28 sps:$4 sm:$0xff]  }
 0x507   :  { %5907 = vmatpush1.bf16.msra.mxu1 %v7656_v53  ;;  %v7719_v43 = vld [vmem:[#allocation3 + $0xcf8] ss:$28 sps:$4 sm:$0xff]   ;;  %v7725_v53 = vld [vmem:[#allocation3 + $0xcc0] ss:$28 sps:$4 sm:$0xff]   ;;  %v7728_v45 = vld [vmem:[#allocation3 + $0x908] ss:$28 sps:$4 sm:$0xff]  }
 0x508   :  { %5948 = vmatpush1.bf16.msra.mxu0 %v7659_v55  ;;  %5908 = vmatprep.subr.bf16.mxu1 %v7664_v32  ;;  %v7730_v55 = vld [vmem:[#allocation3 + $0x90c] ss:$28 sps:$4 sm:$0xff]  }
 0x509   :  { %5949 = vmatprep.subr.bf16.mxu0 %v7667_v58  ;;  %v7731_v32 = vld [vmem:[#allocation3 + $0xc88] ss:$28 sps:$4 sm:$0xff]   ;;  %v7736_v58 = vld [vmem:[#allocation3 + $0x8d4] ss:$28 sps:$4 sm:$0xff]  }
 0x50b   :  { %5909 = vmatpush1.bf16.msra.mxu1 %v7662_v8  ;;  %v7739_v8 = vld [vmem:[#allocation3 + $0xc54] ss:$28 sps:$4 sm:$0xff]  }
 0x50c   :  { %5950 = vmatpush1.bf16.msra.mxu0 %v7665_v13  ;;  %5910 = vmatprep.subr.bf16.mxu1 %v7670_v61  ;;  %v7734_v13 = vld [vmem:[#allocation3 + $0x8d0] ss:$28 sps:$4 sm:$0xff]  }
 0x50d   :  { %5951 = vmatprep.subr.bf16.mxu0 %v7673_v62  ;;  %v7737_v61 = vld [vmem:[#allocation3 + $0xc50] ss:$28 sps:$4 sm:$0xff]   ;;  %v7740_v62 = vld [vmem:[#allocation3 + $0x360] ss:$28 sps:$4 sm:$0xff]  }
 0x50f   :  { %5911 = vmatpush1.bf16.msra.mxu1 %v7668_v63  ;;  %v7741_v63 = vld [vmem:[#allocation3 + $0x6e0] ss:$28 sps:$4 sm:$0xff]  }
 0x510   :  { %5952 = vmatpush1.bf16.msra.mxu0 %v7671_v2  ;;  %v7805_v44 = vpop.eup %7804  ;;  %5912 = vmatprep.subr.bf16.mxu1 %v7676_v3  ;;  %v7742_v2 = vld [vmem:[#allocation3 + $0x1a0] ss:$28 sps:$4 sm:$0xff]  }
 0x511   :  { %5953 = vmatprep.subr.bf16.mxu0 %v7679_v12  ;;  %6151 = vst [vmem:[#allocation17] sm:$0xff] %v7805_v44  ;;  %v7743_v3 = vld [vmem:[#allocation3 + $0x520] ss:$28 sps:$4 sm:$0xff]   ;;  %v7744_v12 = vld [vmem:[#allocation3 + $0x328] ss:$28 sps:$4 sm:$0xff]  }
 0x512   :  { %v7807_v5 = vpop.eup %7806 }
 0x513   :  { %6152 = vst [vmem:[#allocation17 + $0x8] sm:$0xff] %v7807_v5  ;;  %5913 = vmatpush1.bf16.msra.mxu1 %v7674_v15  ;;  %v7745_v15 = vld [vmem:[#allocation3 + $0x6a8] ss:$28 sps:$4 sm:$0xff]  }
 0x514   :  { %5954 = vmatpush1.bf16.msra.mxu0 %v7677_v18  ;;  %5914 = vmatprep.subr.bf16.mxu1 %v7682_v50  ;;  %v7746_v50 = vld [vmem:[#allocation3 + $0x168] ss:$28 sps:$4 sm:$0xff]  }
 0x515   :  { %5955 = vmatprep.subr.bf16.mxu0 %v7685_v1  ;;  %v7747_v1 = vld [vmem:[#allocation3 + $0x4e8] ss:$28 sps:$4 sm:$0xff]  }
 0x517   :  { %5915 = vmatpush1.bf16.msra.mxu1 %v7680_v23 }
 0x518   :  { %5956 = vmatpush1.bf16.msra.mxu0 %v7683_v16  ;;  %5916 = vmatprep.subr.bf16.mxu1 %v7688_v25  ;;  %v7748_v16 = vld [vmem:[#allocation3 + $0x2f0] ss:$28 sps:$4 sm:$0xff]  }
 0x519   :  { %5957 = vmatprep.subr.bf16.mxu0 %v7691_v26  ;;  %v7749_v25 = vld [vmem:[#allocation3 + $0x670] ss:$28 sps:$4 sm:$0xff]  }
 0x51b   :  { %5917 = vmatpush1.bf16.msra.mxu1 %v7686_v19 }
 0x51c   :  { %5958 = vmatpush1.bf16.msra.mxu0 %v7689_v20  ;;  %5918 = vmatprep.subr.bf16.mxu1 %v7694_v31  ;;  %v7750_v20 = vld [vmem:[#allocation3 + $0x130] ss:$28 sps:$4 sm:$0xff]  }
 0x51d   :  { %5959 = vmatprep.subr.bf16.mxu0 %v7697_v35  ;;  %v7751_v31 = vld [vmem:[#allocation3 + $0x4b0] ss:$28 sps:$4 sm:$0xff]  }
 0x51f   :  { %5919 = vmatpush2.bf16.msra.mxu1 %v7692_v46 }
 0x520   :  { %5960 = vmatpush2.bf16.msra.mxu0 %v7695_v27  ;;  %5920 = vmatprep.subr.bf16.mxu1 %v7700_v36  ;;  %v7752_v27 = vld [vmem:[#allocation3 + $0x2b8] ss:$28 sps:$4 sm:$0xff]  }
 0x521   :  { %5961 = vmatprep.subr.bf16.mxu0 %v7703_v7  ;;  %v7753_v36 = vld [vmem:[#allocation3 + $0x638] ss:$28 sps:$4 sm:$0xff]  }
 0x522   :  { %v7754_v7 = vld [vmem:[#allocation3 + $0xf8] ss:$28 sps:$4 sm:$0xff]  }
 0x523   :  { %5921 = vmatpush2.bf16.msra.mxu1 %v7698_v28  ;;  %v7755_v28 = vld [vmem:[#allocation3 + $0x478] ss:$28 sps:$4 sm:$0xff]  }
 0x524   :  { %5962 = vmatpush2.bf16.msra.mxu0 %v7701_v9  ;;  %5922 = vmatprep.subr.bf16.mxu1 %v7706_v29  ;;  %v7758_v9 = vld [vmem:[#allocation3 + $0xc0] ss:$28 sps:$4 sm:$0xff]  }
 0x525   :  { %5963 = vmatprep.subr.bf16.mxu0 %v7709_v30  ;;  %v7759_v29 = vld [vmem:[#allocation3 + $0x440] ss:$28 sps:$4 sm:$0xff]   ;;  %v7760_v30 = vld [vmem:[#allocation3 + $0x248] ss:$28 sps:$4 sm:$0xff]  }
 0x527   :  { %5923 = vmatpush2.bf16.msra.mxu1 %v7704_v51  ;;  %v7761_v51 = vld [vmem:[#allocation3 + $0x5c8] ss:$28 sps:$4 sm:$0xff]  }
 0x528   :  { %5964 = vmatpush2.bf16.msra.mxu0 %v7707_v33  ;;  %5924 = vmatprep.subr.bf16.mxu1 %v7712_v59  ;;  %v7762_v33 = vld [vmem:[#allocation3 + $0x88] ss:$28 sps:$4 sm:$0xff]  }
 0x529   :  { %5965 = vmatprep.subr.bf16.mxu0 %v7715_v38  ;;  %v7763_v59 = vld [vmem:[#allocation3 + $0x408] ss:$28 sps:$4 sm:$0xff]   ;;  %v7764_v38 = vld [vmem:[#allocation3 + $0x210] ss:$28 sps:$4 sm:$0xff]  }
 0x52b   :  { %5925 = vmatpush2.bf16.msra.mxu1 %v7710_v39  ;;  %v7765_v39 = vld [vmem:[#allocation3 + $0x590] ss:$28 sps:$4 sm:$0xff]  }
 0x52c   :  { %5966 = vmatpush2.bf16.msra.mxu0 %v7713_v40  ;;  %5926 = vmatprep.subr.bf16.mxu1 %v7718_v41  ;;  %v7766_v40 = vld [vmem:[#allocation3 + $0x50] ss:$28 sps:$4 sm:$0xff]  }
 0x52d   :  { %5967 = vmatprep.subr.bf16.mxu0 %v7721_v42  ;;  %v7767_v41 = vld [vmem:[#allocation3 + $0x3d0] ss:$28 sps:$4 sm:$0xff]   ;;  %v7768_v42 = vld [vmem:[#allocation3 + $0x1d8] ss:$28 sps:$4 sm:$0xff]  }
 0x52f   :  { %5927 = vmatpush2.bf16.msra.mxu1 %v7716_v54  ;;  %v7769_v54 = vld [vmem:[#allocation3 + $0x558] ss:$28 sps:$4 sm:$0xff]  }
 0x530   :  { %5968 = vmatpush2.bf16.msra.mxu0 %v7719_v43  ;;  %5928 = vmatprep.subr.bf16.mxu1 %v7724_v47  ;;  %v7770_v43 = vld [vmem:[#allocation3 + $0x18] ss:$28 sps:$4 sm:$0xff]  }
 0x531   :  { %5969 = vmatprep.subr.bf16.mxu0 %v7727_v52  ;;  %v7771_v47 = vld [vmem:[#allocation3 + $0x398] ss:$28 sps:$4 sm:$0xff]   ;;  %v7772_v52 = vld [vmem:[#allocation3 + $0xa60] ss:$28 sps:$4 sm:$0xff]  }
 0x533   :  { %5929 = vmatpush2.bf16.msra.mxu1 %v7722_v60  ;;  %v7773_v60 = vld [vmem:[#allocation3 + $0xde0] ss:$28 sps:$4 sm:$0xff]  }
 0x534   :  { %5970 = vmatpush2.bf16.msra.mxu0 %v7725_v53  ;;  %5930 = vmatprep.subr.bf16.mxu1 %v7730_v55  ;;  %v7774_v53 = vld [vmem:[#allocation3 + $0x8a0] ss:$28 sps:$4 sm:$0xff]  }
 0x535   :  { %5971 = vmatprep.subr.bf16.mxu0 %v7733_v57  ;;  %v7775_v55 = vld [vmem:[#allocation3 + $0xc20] ss:$28 sps:$4 sm:$0xff]   ;;  %v7776_v57 = vld [vmem:[#allocation3 + $0xa28] ss:$28 sps:$4 sm:$0xff]  }
 0x537   :  { %5931 = vmatpush2.bf16.msra.mxu1 %v7728_v45  ;;  %v7777_v45 = vld [vmem:[#allocation3 + $0xda8] ss:$28 sps:$4 sm:$0xff]  }
 0x538   :  { %5972 = vmatpush2.bf16.msra.mxu0 %v7731_v32  ;;  %5932 = vmatprep.subr.bf16.mxu1 %v7736_v58  ;;  %v7778_v32 = vld [vmem:[#allocation3 + $0x868] ss:$28 sps:$4 sm:$0xff]  }
 0x539   :  { %5973 = vmatprep.subr.bf16.mxu0 %v7739_v8  ;;  %v7779_v58 = vld [vmem:[#allocation3 + $0xbe8] ss:$28 sps:$4 sm:$0xff]   ;;  %v7780_v8 = vld [vmem:[#allocation3 + $0x9f0] ss:$28 sps:$4 sm:$0xff]  }
 0x53b   :  { %5933 = vmatpush2.bf16.msra.mxu1 %v7734_v13  ;;  %v7781_v13 = vld [vmem:[#allocation3 + $0xd70] ss:$28 sps:$4 sm:$0xff]  }
 0x53c   :  { %5974 = vmatpush2.bf16.msra.mxu0 %v7737_v61  ;;  %6962 = vmatprep.subr.bf16.mxu1 %v7740_v62  ;;  %v7782_v61 = vld [vmem:[#allocation3 + $0x830] ss:$28 sps:$4 sm:$0xff]  }
 0x53d   :  { %6984 = vmatprep.subr.bf16.mxu0 %v7741_v63  ;;  %v7783_v62 = vld [vmem:[#allocation3 + $0xbb0] ss:$28 sps:$4 sm:$0xff]   ;;  %v7786_v63 = vld [vmem:[#allocation3 + $0x7f8] ss:$28 sps:$4 sm:$0xff]  }
 0x53e   :  { %v8286_v18 = vpop.f32.mrf.mxu1  ;;  %5935 = vmatmul.mubr.bf16.vlgmr.msra.gmra.mxu1 %v8245_v4 }
 0x53f   :  { %v8288_v44 = vpop.f32.mrf.mxu0  ;;  %5976 = vmatmul.mubr.bf16.vlgmr.msra.gmra.mxu0 %v8250_v11  ;;  %6963 = vmatpush3.bf16.msra.mxu1 %v7742_v2  ;;  %v7787_v2 = vld [vmem:[#allocation3 + $0xb78] ss:$28 sps:$4 sm:$0xff]  }
 0x540   :  { %6985 = vmatpush3.bf16.msra.mxu0 %v7743_v3  ;;  %v8292_v5 = vpop.f32.mrf.mxu1  ;;  %6964 = vmatprep.subr.bf16.mxu1 %v7744_v12  ;;  %v7788_v3 = vld [vmem:[#allocation3 + $0x980] ss:$28 sps:$4 sm:$0xff]  }
 0x541   :  { %v8294_v23 = vpop.f32.mrf.mxu0  ;;  %6986 = vmatprep.subr.bf16.mxu0 %v7745_v15  ;;  %6016 = vmatprep.mubr.bf16.mxu1 %v8212_v0  ;;  %v7756_v0 = vld [vmem:[#allocation3 + $0x280] ss:$28 sps:$4 sm:$0xff]   ;;  %v7792_v15 = vld [vmem:[#allocation3 + $0x948] ss:$28 sps:$4 sm:$0xff]  }
 0x542   :  { %6056 = vmatprep.mubr.bf16.mxu0 %v8214_v17  ;;  %v5694_v26 = vpop.f32.mrf.mxu1  ;;  %v7757_v17 = vld [vmem:[#allocation3 + $0x600] ss:$28 sps:$4 sm:$0xff]  }
 0x543   :  { %v5735_v19 = vpop.f32.mrf.mxu0  ;;  %6965 = vmatpush3.bf16.msra.mxu1 %v7746_v50  ;;  %v7789_v12 = vld [vmem:[#allocation3 + $0xd00] ss:$28 sps:$4 sm:$0xff]   ;;  %v7793_v50 = vld [vmem:[#allocation3 + $0xcc8] ss:$28 sps:$4 sm:$0xff]   ;;  %v7797_v26 = vld [vmem:[#allocation3 + $0xc90] ss:$28 sps:$4 sm:$0xff]  }
 0x544   :  { %6987 = vmatpush3.bf16.msra.mxu0 %v7747_v1  ;;  %v5695_v35 = vpop.f32.mrf.mxu1  ;;  %6966 = vmatprep.subr.bf16.mxu1 %v7748_v16  ;;  %v7794_v1 = vld [vmem:[#allocation3 + $0x788] ss:$28 sps:$4 sm:$0xff]   ;;  %v7798_v19 = vld [vmem:[#allocation3 + $0x750] ss:$28 sps:$4 sm:$0xff]  }
 0x545   :  { %v5736_v46 = vpop.f32.mrf.mxu0  ;;  %6988 = vmatprep.subr.bf16.mxu0 %v7749_v25  ;;  %v7795_v16 = vld [vmem:[#allocation3 + $0xb08] ss:$28 sps:$4 sm:$0xff]   ;;  %v7796_v25 = vld [vmem:[#allocation3 + $0x910] ss:$28 sps:$4 sm:$0xff]   ;;  %v7801_v35 = vld [vmem:[#allocation3 + $0xc58] ss:$28 sps:$4 sm:$0xff]  }
 0x546   :  { %v3164_v46 = vrot.slane %v8272_v21, %v8135_v22 }
 0x547   :  { %6967 = vmatpush3.bf16.msra.mxu1 %v7750_v20  ;;  %v7799_v20 = vld [vmem:[#allocation3 + $0xad0] ss:$28 sps:$4 sm:$0xff]  }
 0x548   :  { %6989 = vmatpush3.bf16.msra.mxu0 %v7751_v31  ;;  %6968 = vmatprep.subr.bf16.mxu1 %v7752_v27  ;;  %v7800_v31 = vld [vmem:[#allocation3 + $0x8d8] ss:$28 sps:$4 sm:$0xff]   ;;  %v3168_v27 = vrot.slane %v8272_v21, %v8138_v24 }
 0x549   :  { %6990 = vmatprep.subr.bf16.mxu0 %v7753_v36  ;;  %v7802_v36 = vld [vmem:[#allocation3 + $0x718] ss:$28 sps:$4 sm:$0xff]  }
 0x54b   :  { %6969 = vmatpush3.bf16.msra.mxu1 %v7754_v7  ;;  %v7803_v7 = vld [vmem:[#allocation3 + $0xa98] ss:$28 sps:$4 sm:$0xff]  }
 0x54c   :  { %6991 = vmatpush3.bf16.msra.mxu0 %v7755_v28  ;;  %6970 = vmatprep.subr.bf16.mxu1 %v7756_v0  ;;  %v5691_v28 = vadd.f32 %v8286_v18, %v3164_v46  ;;  %v5693_v0 = vadd.f32 %v8292_v5, %v3168_v27 }
 0x54d   :  { %6992 = vmatprep.subr.bf16.mxu0 %v7757_v17 }
 0x54e   :  { %v5732_v17 = vadd.f32 %v8288_v44, %v5691_v28  ;;  %v5734_v22 = vadd.f32 %v8294_v23, %v5693_v0 }
 0x54f   :  { %6971 = vmatpush3.bf16.msra.mxu1 %v7758_v9 }
 0x550   :  { %6993 = vmatpush3.bf16.msra.mxu0 %v7759_v29  ;;  %6972 = vmatprep.subr.bf16.mxu1 %v7760_v30 }
 0x551   :  { %6994 = vmatprep.subr.bf16.mxu0 %v7761_v51 }
 0x553   :  { %6973 = vmatpush3.bf16.msra.mxu1 %v7762_v33 }
 0x554   :  { %6995 = vmatpush3.bf16.msra.mxu0 %v7763_v59  ;;  %6974 = vmatprep.subr.bf16.mxu1 %v7764_v38 }
 0x555   :  { %6996 = vmatprep.subr.bf16.mxu0 %v7765_v39 }
 0x557   :  { %6975 = vmatpush3.bf16.msra.mxu1 %v7766_v40 }
 0x558   :  { %6997 = vmatpush3.bf16.msra.mxu0 %v7767_v41  ;;  %6976 = vmatprep.subr.bf16.mxu1 %v7768_v42 }
 0x559   :  { %6998 = vmatprep.subr.bf16.mxu0 %v7769_v54 }
 0x55b   :  { %6977 = vmatpush3.bf16.msra.mxu1 %v7770_v43 }
 0x55c   :  { %6999 = vmatpush3.bf16.msra.mxu0 %v7771_v47  ;;  %7006 = vmatprep.subr.bf16.mxu1 %v7772_v52 }
 0x55d   :  { %7028 = vmatprep.subr.bf16.mxu0 %v7773_v60  ;;  %v3172_v60 = vrot.slane %v8272_v21, %v989_v34 }
 0x55e   :  { %6017 = vmatmul.mubr.bf16.vlgmr.msra.gmra.mxu1 %v8221_v48  ;;  %v7784_v48 = vld [vmem:[#allocation3 + $0x9b8] ss:$28 sps:$4 sm:$0xff]  }
 0x55f   :  { %6057 = vmatmul.mubr.bf16.vlgmr.msra.gmra.mxu0 %v8226_v49  ;;  %7007 = vmatpush3.bf16.msra.mxu1 %v7774_v53  ;;  %v7785_v49 = vld [vmem:[#allocation3 + $0xd38] ss:$28 sps:$4 sm:$0xff]   ;;  %v3176_v53 = vrot.slane %v8272_v21, %v993_v37 }
 0x560   :  { %7029 = vmatpush3.bf16.msra.mxu0 %v7775_v55  ;;  %7008 = vmatprep.subr.bf16.mxu1 %v7776_v57 }
 0x561   :  { %7030 = vmatprep.subr.bf16.mxu0 %v7777_v45  ;;  %6096 = vmatprep.mubr.bf16.mxu1 %v8231_v10  ;;  %v7790_v10 = vld [vmem:[#allocation3 + $0x7c0] ss:$28 sps:$4 sm:$0xff]  }
 0x562   :  { %6136 = vmatprep.mubr.bf16.mxu0 %v8236_v14  ;;  %v7791_v14 = vld [vmem:[#allocation3 + $0xb40] ss:$28 sps:$4 sm:$0xff]  }
 0x563   :  { %7009 = vmatpush3.bf16.msra.mxu1 %v7778_v32 }
 0x564   :  { %7031 = vmatpush3.bf16.msra.mxu0 %v7779_v58  ;;  %7010 = vmatprep.subr.bf16.mxu1 %v7780_v8 }
 0x565   :  { %7032 = vmatprep.subr.bf16.mxu0 %v7781_v13 }
 0x567   :  { %7011 = vmatpush3.bf16.msra.mxu1 %v7782_v61 }
 0x568   :  { %7033 = vmatpush3.bf16.msra.mxu0 %v7783_v62  ;;  %7012 = vmatprep.subr.bf16.mxu1 %v7784_v48 }
 0x569   :  { %7034 = vmatprep.subr.bf16.mxu0 %v7785_v49 }
 0x56b   :  { %7013 = vmatpush3.bf16.msra.mxu1 %v7786_v63 }
 0x56c   :  { %7035 = vmatpush3.bf16.msra.mxu0 %v7787_v2  ;;  %7014 = vmatprep.subr.bf16.mxu1 %v7788_v3 }
 0x56d   :  { %7036 = vmatprep.subr.bf16.mxu0 %v7789_v12 }
 0x56f   :  { %7015 = vmatpush3.bf16.msra.mxu1 %v7790_v10 }
 0x570   :  { %7037 = vmatpush3.bf16.msra.mxu0 %v7791_v14  ;;  %7016 = vmatprep.subr.bf16.mxu1 %v7792_v15 }
 0x571   :  { %7038 = vmatprep.subr.bf16.mxu0 %v7793_v50 }
 0x573   :  { %7017 = vmatpush3.bf16.msra.mxu1 %v7794_v1 }
 0x574   :  { %7039 = vmatpush3.bf16.msra.mxu0 %v7795_v16  ;;  %7018 = vmatprep.subr.bf16.mxu1 %v7796_v25 }
 0x575   :  { %7040 = vmatprep.subr.bf16.mxu0 %v7797_v26 }
 0x577   :  { %7019 = vmatpush3.bf16.msra.mxu1 %v7798_v19 }
 0x578   :  { %7041 = vmatpush3.bf16.msra.mxu0 %v7799_v20  ;;  %7020 = vmatprep.subr.bf16.mxu1 %v7800_v31  ;;  %v3180_v20 = vrot.slane %v8272_v21, %v997_v56 }
 0x579   :  { %7042 = vmatprep.subr.bf16.mxu0 %v7801_v35 }
 0x57b   :  { %7021 = vmatpush3.bf16.msra.mxu1 %v7802_v36 }
 0x57c   :  { %7043 = vmatpush3.bf16.msra.mxu0 %v7803_v7 }
 0x57e   :  { %v5772_v9 = vpop.f32.mrf.mxu1  ;;  %6097 = vmatmul.mubr.bf16.vlgmr.msra.gmra.mxu1 %v8245_v4 }
 0x57f   :  { %v5813_v29 = vpop.f32.mrf.mxu0  ;;  %6137 = vmatmul.mubr.bf16.vlgmr.msra.gmra.mxu0 %v8250_v11  ;;  %v5773_v24 = vadd.f32 %v5772_v9, %v5732_v17 }
 0x580   :  { %v5774_v30 = vpop.f32.mrf.mxu1 }
 0x581   :  { %v5815_v51 = vpop.f32.mrf.mxu0  ;;  %v5814_v33 = vadd.f32 %v5813_v29, %v5773_v24  ;;  %v5775_v59 = vadd.f32 %v5774_v30, %v5734_v22 }
 0x582   :  { %v5776_v18 = vpop.f32.mrf.mxu1 }
 0x583   :  { %v5817_v38 = vpop.f32.mrf.mxu0  ;;  %7808 = vtanh.f32 %v5814_v33  ;;  %v5816_v5 = vadd.f32 %v5815_v51, %v5775_v59 }
 0x584   :  { %v5777_v39 = vpop.f32.mrf.mxu1 }
 0x585   :  { %v5818_v40 = vpop.f32.mrf.mxu0  ;;  %7810 = vtanh.f32 %v5816_v5 }
 0x590   :  { %v7809_v44 = vpop.eup %7808 }
 0x591   :  { %6153 = vst [vmem:[#allocation17 + $0x10] sm:$0xff] %v7809_v44 }
 0x592   :  { %v7811_v41 = vpop.eup %7810 }
 0x593   :  { %6154 = vst [vmem:[#allocation17 + $0x18] sm:$0xff] %v7811_v41 }
 0x5be   :  { %v5854_v4 = vpop.f32.mrf.mxu1 }
 0x5bf   :  { %v5895_v11 = vpop.f32.mrf.mxu0  ;;  %v5855_v55 = vadd.f32 %v5854_v4, %v3172_v60 }
 0x5c0   :  { %v5856_v42 = vpop.f32.mrf.mxu1 }
 0x5c1   :  { %v5897_v23 = vpop.f32.mrf.mxu0  ;;  %v5857_v57 = vadd.f32 %v5856_v42, %v3176_v53  ;;  %v5896_v45 = vadd.f32 %v5895_v11, %v5855_v55 }
 0x5c2   :  { %v5858_v54 = vpop.f32.mrf.mxu1 }
 0x5c3   :  { %v5899_v43 = vpop.f32.mrf.mxu0  ;;  %v5898_v8 = vadd.f32 %v5897_v23, %v5857_v57 }
 0x5c4   :  { %v5859_v47 = vpop.f32.mrf.mxu1 }
 0x5c5   :  { %v5900_v52 = vpop.f32.mrf.mxu0 }
 0x5fe   :  { %v5936_v32 = vpop.f32.mrf.mxu1 }
 0x5ff   :  { %v5977_v58 = vpop.f32.mrf.mxu0  ;;  %v5937_v13 = vadd.f32 %v5936_v32, %v5896_v45 }
 0x600   :  { %v5938_v61 = vpop.f32.mrf.mxu1 }
 0x601   :  { %v5979_v62 = vpop.f32.mrf.mxu0  ;;  %v5978_v48 = vadd.f32 %v5977_v58, %v5937_v13  ;;  %v5939_v49 = vadd.f32 %v5938_v61, %v5898_v8 }
 0x602   :  { %v5940_v63 = vpop.f32.mrf.mxu1 }
 0x603   :  { %v5981_v2 = vpop.f32.mrf.mxu0  ;;  %7812 = vtanh.f32 %v5978_v48  ;;  %v5980_v3 = vadd.f32 %v5979_v62, %v5939_v49 }
 0x604   :  { %v5941_v34 = vpop.f32.mrf.mxu1 }
 0x605   :  { %v5982_v12 = vpop.f32.mrf.mxu0  ;;  %7814 = vtanh.f32 %v5980_v3 }
 0x610   :  { %v7813_v10 = vpop.eup %7812 }
 0x611   :  { %6155 = vst [vmem:[#allocation17 + $0x20] sm:$0xff] %v7813_v10 }
 0x612   :  { %v7815_v37 = vpop.eup %7814 }
 0x613   :  { %6156 = vst [vmem:[#allocation17 + $0x28] sm:$0xff] %v7815_v37 }
 0x61e   :  { %v6978_v14 = vpop.f32.mrf.mxu1 }
 0x61f   :  { %v7000_v15 = vpop.f32.mrf.mxu0 }
 0x620   :  { %v6979_v50 = vpop.f32.mrf.mxu1 }
 0x621   :  { %v7001_v1 = vpop.f32.mrf.mxu0  ;;  %v6980_v31 = vadd.f32 %v6979_v50, %v6978_v14 }
 0x622   :  { %v6981_v16 = vpop.f32.mrf.mxu1  ;;  %v7002_v46 = vadd.f32 %v7001_v1, %v7000_v15 }
 0x623   :  { %v7003_v25 = vpop.f32.mrf.mxu0  ;;  %v6019_v35 = vadd.f32 %v6980_v31, %v3180_v20 }
 0x624   :  { %v6982_v26 = vpop.f32.mrf.mxu1 }
 0x625   :  { %v7004_v19 = vpop.f32.mrf.mxu0  ;;  %v6059_v0 = vadd.f32 %v7002_v46, %v6019_v35 }
 0x63e   :  { %v7022_v27 = vpop.f32.mrf.mxu1 }
 0x63f   :  { %v7044_v36 = vpop.f32.mrf.mxu0 }
 0x640   :  { %v7023_v7 = vpop.f32.mrf.mxu1 }
 0x641   :  { %v7045_v28 = vpop.f32.mrf.mxu0  ;;  %v7024_v17 = vadd.f32 %v7023_v7, %v7022_v27 }
 0x642   :  { %v7025_v9 = vpop.f32.mrf.mxu1  ;;  %v7046_v24 = vadd.f32 %v7045_v28, %v7044_v36 }
 0x643   :  { %v7047_v29 = vpop.f32.mrf.mxu0  ;;  %v6099_v22 = vadd.f32 %v7024_v17, %v6059_v0 }
 0x644   :  { %v7026_v30 = vpop.f32.mrf.mxu1 }
 0x645   :  { %v7048_v51 = vpop.f32.mrf.mxu0  ;;  %v6139_v33 = vadd.f32 %v7046_v24, %v6099_v22 }
 0x647   :  { %7816 = vtanh.f32 %v6139_v33 }
 0x654   :  { %v7817_v6 = vpop.eup %7816 }
 0x655   :  { %6157 = vst [vmem:[#allocation17 + $0x30] sm:$0xff] %v7817_v6 }
 0x656   :  { %8009 = shalt.err (!%p8006_p7)
}
 0x657   :  { %6167 = dma.vmem_to_hbm [thread:$0]  %s6165_s8, 896, %s8333_s9, [#allocation7]  }
 0x658   :  { %8030 = dma.done.wait [#allocation7], 896  }
 0x659   :  { %8031 = vsyncadd [#allocation7], 4294966400 }
 0x65a   :  { %6171 = vsyncpa [#allocation6], 1 }
 0x65b   :  { %6172 = vsyncpa [#allocation9], 1 }
 0x65c   :  { %6173 = vsyncpa [#allocation12], 1 }
 0x65d   :  { %6174 = vsyncpa [#allocation15], 1 }
 0x65e   :  { %6175 = vsyncpa [#allocation7], 1 }
 0x65f   :  { %6176 = vsyncmov [#allocation4] }
 0x662   :  { %s6177_s11 = vpop.sfrf %6176 }
 0x663   :  { %p6960_p8 = scmp.ne.s32.totalorder %s6177_s11, 0 }
 0x665   :  { %6181 = shalt.err (%p6960_p8)  }
 0x666   :  { %6183 = vsyncmov [#allocation4 + $0x1] }
 0x669   :  { %s6184_s12 = vpop.sfrf %6183 }
 0x66a   :  { %p6961_p9 = scmp.ne.s32.totalorder %s6184_s12, 0 }
 0x66c   :  { %6188 = shalt.err (%p6961_p9)  }

</bundles_post_ra>
